<compile_context>
chip_gen: v6e
topology: v6e:2x2x1
jax: 0.10.0
libtpu: 0.0.40
codegen_flags: <defaults>
</compile_context>

<pallas_src>
import math

import jax
import jax.numpy as jnp
from jax.experimental import pallas as pl
from jax.experimental.pallas import tpu as pltpu

# Small, structure-preserving hyper-parameters (module uses H1=128, H2=64,
# seq=100; scaled down, 2 layers + bidirectional + num_classes kept).
B = 16         # batch
B_TILE = 8     # batch per grid step (parallel grid axis -> 2 TCs on v7x)
L = 8          # sequence length (== MaxPool1d kernel size, as in the module)
V = 50         # vocab size
E = 16         # embedding dim
H1 = 32        # GRU hidden size (hidden_size1)
H2 = 16        # fc1 hidden size (hidden_size2)
C = 35         # num_classes
C_PAD = 128    # lane-dense padded logits width (sliced back to C in wrapper)
NUM_LAYERS = 2

G3 = 3 * H1        # per-direction gate width (r|z|n)
DPAD = 128         # per-direction 128-lane aligned stride
W2 = 2 * DPAD      # both directions, padded


def textrcnn_kernel(embed_ref, gru_w0, gru_b0, gru_w1, gru_b1,
                    attn_w, fc1_w, fc1_b, fc2_w, fc2_b, out_ref):
    f32 = jnp.float32
    bf16 = jnp.bfloat16
    BT = B_TILE

    def bigru_layer(x2d, w_slab_ref, b_slab_ref, in_sz):
        # weight slab rows: [0:in_sz] = input proj (both dirs), rest = block-diag whh
        w_all = w_slab_ref[...]
        wih = w_all[0:in_sz, :].astype(bf16)                    # (in_sz, 256)
        whh = w_all[in_sz:in_sz + 2 * H1, :].astype(bf16)       # (2*H1, 256) block-diag
        b_slab = b_slab_ref[...]                                # (2, 256)
        bih = b_slab[0:1, :]
        bhh = jnp.broadcast_to(b_slab[1:2, :], (BT, W2))        # hoisted broadcast

        # hoisted input projection: all L steps, both directions, one MXU matmul
        gi = jnp.dot(x2d.astype(bf16), wih, preferred_element_type=f32) + bih
        gi3 = gi.reshape(L, BT, W2)                             # value-resident

        h_f = jnp.zeros((BT, H1), f32)
        h_b = jnp.zeros((BT, H1), f32)
        hs_f, hs_b = [], []
        # fused fwd/bwd recurrence, fully unrolled (L is small & static)
        for i in range(L):
            tf, tb = i, L - 1 - i
            h_cat = jnp.concatenate([h_f, h_b], axis=-1)        # (BT, 2*H1)
            # single block-diagonal h matmul for both directions
            gh = jnp.dot(h_cat.astype(bf16), whh, preferred_element_type=f32) + bhh
            gi_f = gi3[tf, :, 0:G3]
            gi_b = gi3[tb, :, DPAD:DPAD + G3]                   # lane-128 aligned
            gh_f = gh[:, 0:G3]
            gh_b = gh[:, DPAD:DPAD + G3]

            # PyTorch GRU gate order: r, z, n ; n = tanh(gi_n + r*(W_hn h + b_hn))
            rz_f = jax.nn.sigmoid(gi_f[:, 0:2 * H1] + gh_f[:, 0:2 * H1])
            rz_b = jax.nn.sigmoid(gi_b[:, 0:2 * H1] + gh_b[:, 0:2 * H1])
            n_f = jnp.tanh(gi_f[:, 2 * H1:G3] + rz_f[:, 0:H1] * gh_f[:, 2 * H1:G3])
            n_b = jnp.tanh(gi_b[:, 2 * H1:G3] + rz_b[:, 0:H1] * gh_b[:, 2 * H1:G3])
            z_f = rz_f[:, H1:2 * H1]
            z_b = rz_b[:, H1:2 * H1]
            h_f = (1.0 - z_f) * n_f + z_f * h_f
            h_b = (1.0 - z_b) * n_b + z_b * h_b
            hs_f.append(h_f)
            hs_b.append(h_b)

        # (L, BT, 2*H1): fwd output at t in lanes [0:H1], bwd output at t in [H1:2H1]
        return jnp.concatenate(
            [jnp.stack(hs_f, axis=0), jnp.stack(hs_b[::-1], axis=0)], axis=-1)

    # ---- bidirectional GRU, 2 layers (inter-layer dropout = identity at eval) ----
    emb3 = embed_ref[...]                                       # (L, BT, E)
    x1 = bigru_layer(emb3.reshape(L * BT, E), gru_w0, gru_b0, E)
    H_all = bigru_layer(x1.reshape(L * BT, 2 * H1), gru_w1, gru_b1, 2 * H1)

    # ---- attention over the sequence (softmax along L), lane-dense reduction ----
    M = jnp.tanh(H_all)                                         # (L, BT, 2*H1)
    scores = jnp.sum(M * attn_w[...], axis=-1)                  # (L, BT)
    scores_bl = scores.T                                        # (BT, L): L along lanes
    smax = jnp.max(scores_bl, axis=-1, keepdims=True)
    e = jnp.exp(scores_bl - smax)
    denom = jnp.sum(e, axis=-1, keepdims=True)
    alpha_bl = e * pl.reciprocal(denom, approx=True)            # EUP rcp (free slot)
    alpha = alpha_bl.T[:, :, None]                              # (L, BT, 1)
    attended = H_all * alpha

    # ---- relu + max-pool commute with cat((embed, out), 2): split pools & fc1 ----
    pooled_emb = jnp.max(jnp.maximum(emb3, 0.0), axis=0)        # (BT, E)
    pooled_att = jnp.max(jnp.maximum(attended, 0.0), axis=0)    # (BT, 2*H1)
    w1 = fc1_w[...]                                             # rows [0:E | E:E+2H1]
    hdd = (jnp.dot(pooled_emb.astype(bf16), w1[0:E, :].astype(bf16),
                   preferred_element_type=f32)
           + jnp.dot(pooled_att.astype(bf16), w1[E:E + 2 * H1, :].astype(bf16),
                     preferred_element_type=f32)
           + fc1_b[...])
    logits = jnp.dot(hdd.astype(bf16), fc2_w[...].astype(bf16),
                     preferred_element_type=f32) + fc2_b[...]
    out_ref[...] = logits.astype(out_ref.dtype)                 # (BT, C_PAD) dense store


def make_params(key):
    keys = iter(jax.random.split(key, 32))

    def u(shape, scale):
        return jax.random.uniform(next(keys), shape, jnp.float32, -scale, scale)

    emb_table = jax.random.normal(next(keys), (V, E), jnp.float32)

    k_gru = 1.0 / math.sqrt(H1)
    gru_slabs = []
    in_sizes = [E, 2 * H1]
    for layer in range(NUM_LAYERS):
        in_sz = in_sizes[layer]
        wih_f = u((in_sz, G3), k_gru)
        wih_b = u((in_sz, G3), k_gru)
        bih_f = u((1, G3), k_gru)
        bih_b = u((1, G3), k_gru)
        whh_f = u((H1, G3), k_gru)
        bhh_f = u((1, G3), k_gru)
        whh_b = u((H1, G3), k_gru)
        bhh_b = u((1, G3), k_gru)

        # 128-lane aligned per-direction layout: [fwd 0:96 | pad | bwd 128:224 | pad]
        wih_fb = (jnp.zeros((in_sz, W2), jnp.float32)
                  .at[:, 0:G3].set(wih_f).at[:, DPAD:DPAD + G3].set(wih_b))
        bih_fb = (jnp.zeros((1, W2), jnp.float32)
                  .at[:, 0:G3].set(bih_f).at[:, DPAD:DPAD + G3].set(bih_b))
        # block-diagonal hidden weights: [h_f | h_b] @ whh_fb does both directions
        whh_fb = (jnp.zeros((2 * H1, W2), jnp.float32)
                  .at[0:H1, 0:G3].set(whh_f)
                  .at[H1:2 * H1, DPAD:DPAD + G3].set(whh_b))
        bhh_fb = (jnp.zeros((1, W2), jnp.float32)
                  .at[:, 0:G3].set(bhh_f).at[:, DPAD:DPAD + G3].set(bhh_b))

        w_slab = jnp.concatenate([wih_fb, whh_fb], axis=0)      # (in_sz + 2*H1, 256)
        b_slab = jnp.concatenate([bih_fb, bhh_fb], axis=0)      # (2, 256)
        gru_slabs += [w_slab, b_slab]

    # module inits self.w to zeros; small random values here for a non-trivial test
    attn_w = u((1, 2 * H1), 0.1)
    k1 = 1.0 / math.sqrt(2 * H1 + E)
    fc1_w = u((E + 2 * H1, H2), k1)       # (in, out) = Linear weight .T; rows [emb|att]
    fc1_b = u((1, H2), k1)
    k2 = 1.0 / math.sqrt(H2)
    fc2_w = u((H2, C), k2)
    fc2_b = u((1, C), k2)
    # pad fc2 to a lane-dense 128-wide output; wrapper slices back to C
    fc2_w_pad = jnp.zeros((H2, C_PAD), jnp.float32).at[:, :C].set(fc2_w)
    fc2_b_pad = jnp.zeros((1, C_PAD), jnp.float32).at[:, :C].set(fc2_b)

    return emb_table, gru_slabs + [attn_w, fc1_w, fc1_b, fc2_w_pad, fc2_b_pad]


@jax.jit
def textrcnn_attn_forward(x_tokens, emb_table, params):
    # Embedding gather directly into time-major (L, B, E); SpatialDropout is
    # identity at inference.
    embed_t = jnp.take(emb_table, x_tokens.T, axis=0)           # (L, B, E)

    in_specs = [
        pl.BlockSpec((L, B_TILE, E), lambda b: (0, b, 0)),      # batch-tiled embeddings
        pl.BlockSpec((E + 2 * H1, W2), lambda b: (0, 0)),       # gru layer-0 weight slab
        pl.BlockSpec((2, W2), lambda b: (0, 0)),                # gru layer-0 bias slab
        pl.BlockSpec((4 * H1, W2), lambda b: (0, 0)),           # gru layer-1 weight slab
        pl.BlockSpec((2, W2), lambda b: (0, 0)),                # gru layer-1 bias slab
        pl.BlockSpec((1, 2 * H1), lambda b: (0, 0)),            # attention w
        pl.BlockSpec((E + 2 * H1, H2), lambda b: (0, 0)),       # fc1 weight
        pl.BlockSpec((1, H2), lambda b: (0, 0)),                # fc1 bias
        pl.BlockSpec((H2, C_PAD), lambda b: (0, 0)),            # fc2 weight (padded)
        pl.BlockSpec((1, C_PAD), lambda b: (0, 0)),             # fc2 bias (padded)
    ]
    out_specs = pl.BlockSpec((B_TILE, C_PAD), lambda b: (b, 0))

    logits_pad = pl.pallas_call(
        textrcnn_kernel,
        out_shape=jax.ShapeDtypeStruct((B, C_PAD), jnp.float32),
        grid_spec=pltpu.PrefetchScalarGridSpec(
            num_scalar_prefetch=0,
            grid=(B // B_TILE,),
            in_specs=in_specs,
            out_specs=out_specs,
        ),
        compiler_params=pltpu.CompilerParams(
            dimension_semantics=("parallel",)),
    )(embed_t, *params)
    return logits_pad[:, :C]


if __name__ == "__main__":
    key = jax.random.PRNGKey(0)
    kx, kp = jax.random.split(key)
    x = jax.random.randint(kx, (B, L), 0, V, dtype=jnp.int32)   # token ids
    emb_table, params = make_params(kp)

    out = textrcnn_attn_forward(x, emb_table, params)
    out = jax.block_until_ready(out)
    assert out.shape == (B, C) and out.dtype == jnp.float32
    assert bool(jnp.all(jnp.isfinite(out)))
    print("KERNEL_OK")
</pallas_src>

<mosaic_0001>
module attributes {stable_mosaic.version = 11 : i64} {
  func.func @textrcnn_kernel(%arg0: i32, %arg1: memref<8x8x16xf32, #tpu.memory_space<vmem>>, %arg2: memref<80x256xf32, #tpu.memory_space<vmem>>, %arg3: memref<2x256xf32, #tpu.memory_space<vmem>>, %arg4: memref<128x256xf32, #tpu.memory_space<vmem>>, %arg5: memref<2x256xf32, #tpu.memory_space<vmem>>, %arg6: memref<1x64xf32, #tpu.memory_space<vmem>>, %arg7: memref<80x16xf32, #tpu.memory_space<vmem>>, %arg8: memref<1x16xf32, #tpu.memory_space<vmem>>, %arg9: memref<16x128xf32, #tpu.memory_space<vmem>>, %arg10: memref<1x128xf32, #tpu.memory_space<vmem>>, %arg11: memref<8x128xf32, #tpu.memory_space<vmem>>) attributes {dimension_semantics = [#tpu.dimension_semantics<parallel>], iteration_bounds = array<i64: 2>, scalar_prefetch = 0 : i64, scratch_operands = 0 : i64, tpu.core_type = #tpu.core_type<tc>, window_params = [{transform_indices = @transform_0, window_bounds = array<i64: 8, 8, 16>}, {pipeline_mode = #tpu.pipeline_mode<synchronous>, transform_indices = @transform_1, window_bounds = array<i64: 80, 256>}, {pipeline_mode = #tpu.pipeline_mode<synchronous>, transform_indices = @transform_2, window_bounds = array<i64: 2, 256>}, {pipeline_mode = #tpu.pipeline_mode<synchronous>, transform_indices = @transform_3, window_bounds = array<i64: 128, 256>}, {pipeline_mode = #tpu.pipeline_mode<synchronous>, transform_indices = @transform_4, window_bounds = array<i64: 2, 256>}, {pipeline_mode = #tpu.pipeline_mode<synchronous>, transform_indices = @transform_5, window_bounds = array<i64: 1, 64>}, {pipeline_mode = #tpu.pipeline_mode<synchronous>, transform_indices = @transform_6, window_bounds = array<i64: 80, 16>}, {pipeline_mode = #tpu.pipeline_mode<synchronous>, transform_indices = @transform_7, window_bounds = array<i64: 1, 16>}, {pipeline_mode = #tpu.pipeline_mode<synchronous>, transform_indices = @transform_8, window_bounds = array<i64: 16, 128>}, {pipeline_mode = #tpu.pipeline_mode<synchronous>, transform_indices = @transform_9, window_bounds = array<i64: 1, 128>}, {transform_indices = @transform_10, window_bounds = array<i64: 8, 128>}]} {
    %c0 = arith.constant 0 : index
    %c0_0 = arith.constant 0 : index
    %c0_1 = arith.constant 0 : index
    %0 = vector.load %arg1[%c0, %c0_0, %c0_1] : memref<8x8x16xf32, #tpu.memory_space<vmem>>, vector<8x8x16xf32>
    %1 = vector.shape_cast %0 : vector<8x8x16xf32> to vector<64x16xf32>
    %c0_2 = arith.constant 0 : index
    %c0_3 = arith.constant 0 : index
    %2 = vector.load %arg2[%c0_2, %c0_3] : memref<80x256xf32, #tpu.memory_space<vmem>>, vector<80x256xf32>
    %3 = vector.extract_strided_slice %2 {offsets = [0, 0], sizes = [16, 256], strides = [1, 1]} : vector<80x256xf32> to vector<16x256xf32>
    %4 = arith.truncf %3 : vector<16x256xf32> to vector<16x256xbf16>
    %5 = vector.extract_strided_slice %2 {offsets = [16, 0], sizes = [64, 256], strides = [1, 1]} : vector<80x256xf32> to vector<64x256xf32>
    %6 = arith.truncf %5 : vector<64x256xf32> to vector<64x256xbf16>
    %c0_4 = arith.constant 0 : index
    %c0_5 = arith.constant 0 : index
    %7 = vector.load %arg3[%c0_4, %c0_5] : memref<2x256xf32, #tpu.memory_space<vmem>>, vector<2x256xf32>
    %8 = vector.extract_strided_slice %7 {offsets = [0, 0], sizes = [1, 256], strides = [1, 1]} : vector<2x256xf32> to vector<1x256xf32>
    %9 = vector.extract_strided_slice %7 {offsets = [1, 0], sizes = [1, 256], strides = [1, 1]} : vector<2x256xf32> to vector<1x256xf32>
    %10 = vector.shape_cast %9 : vector<1x256xf32> to vector<1x256xf32>
    %11 = vector.broadcast %10 : vector<1x256xf32> to vector<8x256xf32>
    %12 = arith.truncf %1 : vector<64x16xf32> to vector<64x16xbf16>
    %cst = arith.constant dense<0.000000e+00> : vector<64x256xf32>
    %13 = tpu.matmul %12, %4, %cst {dimension_numbers = #tpu.dot_dimension_numbers<[1], [0], [0], [1], [0, 0, 1, 1], [], []>} : vector<64x16xbf16>, vector<16x256xbf16>, vector<64x256xf32> -> vector<64x256xf32>
    %14 = vector.broadcast %8 : vector<1x256xf32> to vector<64x256xf32>
    %15 = arith.addf %13, %14 : vector<64x256xf32>
    %16 = vector.shape_cast %15 : vector<64x256xf32> to vector<8x8x256xf32>
    %cst_6 = arith.constant 0.000000e+00 : f32
    %17 = vector.broadcast %cst_6 : f32 to vector<8x32xf32>
    %cst_7 = arith.constant 0.000000e+00 : f32
    %18 = vector.broadcast %cst_7 : f32 to vector<8x32xf32>
    %19 = tpu.concatenate %17, %18 in 1 : vector<8x32xf32>, vector<8x32xf32> -> vector<8x64xf32>
    %20 = arith.truncf %19 : vector<8x64xf32> to vector<8x64xbf16>
    %cst_8 = arith.constant dense<0.000000e+00> : vector<8x256xf32>
    %21 = tpu.matmul %20, %6, %cst_8 {dimension_numbers = #tpu.dot_dimension_numbers<[1], [0], [0], [1], [0, 0, 1, 1], [], []>} : vector<8x64xbf16>, vector<64x256xbf16>, vector<8x256xf32> -> vector<8x256xf32>
    %22 = arith.addf %21, %11 : vector<8x256xf32>
    %23 = vector.extract_strided_slice %16 {offsets = [0, 0, 0], sizes = [1, 8, 96], strides = [1, 1, 1]} : vector<8x8x256xf32> to vector<1x8x96xf32>
    %24 = vector.shape_cast %23 : vector<1x8x96xf32> to vector<8x96xf32>
    %25 = vector.extract_strided_slice %16 {offsets = [7, 0, 128], sizes = [1, 8, 96], strides = [1, 1, 1]} : vector<8x8x256xf32> to vector<1x8x96xf32>
    %26 = vector.shape_cast %25 : vector<1x8x96xf32> to vector<8x96xf32>
    %27 = vector.extract_strided_slice %22 {offsets = [0, 0], sizes = [8, 96], strides = [1, 1]} : vector<8x256xf32> to vector<8x96xf32>
    %28 = vector.extract_strided_slice %22 {offsets = [0, 128], sizes = [8, 96], strides = [1, 1]} : vector<8x256xf32> to vector<8x96xf32>
    %29 = vector.extract_strided_slice %24 {offsets = [0, 0], sizes = [8, 64], strides = [1, 1]} : vector<8x96xf32> to vector<8x64xf32>
    %30 = vector.extract_strided_slice %27 {offsets = [0, 0], sizes = [8, 64], strides = [1, 1]} : vector<8x96xf32> to vector<8x64xf32>
    %31 = arith.addf %29, %30 : vector<8x64xf32>
    %32 = arith.negf %31 : vector<8x64xf32>
    %33 = math.exp %32 : vector<8x64xf32>
    %cst_9 = arith.constant 1.000000e+00 : f32
    %34 = vector.broadcast %cst_9 : f32 to vector<8x64xf32>
    %35 = arith.addf %34, %33 : vector<8x64xf32>
    %36 = arith.divf %34, %35 : vector<8x64xf32>
    %37 = vector.extract_strided_slice %26 {offsets = [0, 0], sizes = [8, 64], strides = [1, 1]} : vector<8x96xf32> to vector<8x64xf32>
    %38 = vector.extract_strided_slice %28 {offsets = [0, 0], sizes = [8, 64], strides = [1, 1]} : vector<8x96xf32> to vector<8x64xf32>
    %39 = arith.addf %37, %38 : vector<8x64xf32>
    %40 = arith.negf %39 : vector<8x64xf32>
    %41 = math.exp %40 : vector<8x64xf32>
    %cst_10 = arith.constant 1.000000e+00 : f32
    %42 = vector.broadcast %cst_10 : f32 to vector<8x64xf32>
    %43 = arith.addf %42, %41 : vector<8x64xf32>
    %44 = arith.divf %42, %43 : vector<8x64xf32>
    %45 = vector.extract_strided_slice %24 {offsets = [0, 64], sizes = [8, 32], strides = [1, 1]} : vector<8x96xf32> to vector<8x32xf32>
    %46 = vector.extract_strided_slice %36 {offsets = [0, 0], sizes = [8, 32], strides = [1, 1]} : vector<8x64xf32> to vector<8x32xf32>
    %47 = vector.extract_strided_slice %27 {offsets = [0, 64], sizes = [8, 32], strides = [1, 1]} : vector<8x96xf32> to vector<8x32xf32>
    %48 = arith.mulf %46, %47 : vector<8x32xf32>
    %49 = arith.addf %45, %48 : vector<8x32xf32>
    %50 = math.tanh %49 : vector<8x32xf32>
    %51 = vector.extract_strided_slice %26 {offsets = [0, 64], sizes = [8, 32], strides = [1, 1]} : vector<8x96xf32> to vector<8x32xf32>
    %52 = vector.extract_strided_slice %44 {offsets = [0, 0], sizes = [8, 32], strides = [1, 1]} : vector<8x64xf32> to vector<8x32xf32>
    %53 = vector.extract_strided_slice %28 {offsets = [0, 64], sizes = [8, 32], strides = [1, 1]} : vector<8x96xf32> to vector<8x32xf32>
    %54 = arith.mulf %52, %53 : vector<8x32xf32>
    %55 = arith.addf %51, %54 : vector<8x32xf32>
    %56 = math.tanh %55 : vector<8x32xf32>
    %57 = vector.extract_strided_slice %36 {offsets = [0, 32], sizes = [8, 32], strides = [1, 1]} : vector<8x64xf32> to vector<8x32xf32>
    %58 = vector.extract_strided_slice %44 {offsets = [0, 32], sizes = [8, 32], strides = [1, 1]} : vector<8x64xf32> to vector<8x32xf32>
    %cst_11 = arith.constant 1.000000e+00 : f32
    %59 = vector.broadcast %cst_11 : f32 to vector<8x32xf32>
    %60 = arith.subf %59, %57 : vector<8x32xf32>
    %61 = arith.mulf %60, %50 : vector<8x32xf32>
    %62 = arith.mulf %57, %17 : vector<8x32xf32>
    %63 = arith.addf %61, %62 : vector<8x32xf32>
    %cst_12 = arith.constant 1.000000e+00 : f32
    %64 = vector.broadcast %cst_12 : f32 to vector<8x32xf32>
    %65 = arith.subf %64, %58 : vector<8x32xf32>
    %66 = arith.mulf %65, %56 : vector<8x32xf32>
    %67 = arith.mulf %58, %18 : vector<8x32xf32>
    %68 = arith.addf %66, %67 : vector<8x32xf32>
    %69 = tpu.concatenate %63, %68 in 1 : vector<8x32xf32>, vector<8x32xf32> -> vector<8x64xf32>
    %70 = arith.truncf %69 : vector<8x64xf32> to vector<8x64xbf16>
    %cst_13 = arith.constant dense<0.000000e+00> : vector<8x256xf32>
    %71 = tpu.matmul %70, %6, %cst_13 {dimension_numbers = #tpu.dot_dimension_numbers<[1], [0], [0], [1], [0, 0, 1, 1], [], []>} : vector<8x64xbf16>, vector<64x256xbf16>, vector<8x256xf32> -> vector<8x256xf32>
    %72 = arith.addf %71, %11 : vector<8x256xf32>
    %73 = vector.extract_strided_slice %16 {offsets = [1, 0, 0], sizes = [1, 8, 96], strides = [1, 1, 1]} : vector<8x8x256xf32> to vector<1x8x96xf32>
    %74 = vector.shape_cast %73 : vector<1x8x96xf32> to vector<8x96xf32>
    %75 = vector.extract_strided_slice %16 {offsets = [6, 0, 128], sizes = [1, 8, 96], strides = [1, 1, 1]} : vector<8x8x256xf32> to vector<1x8x96xf32>
    %76 = vector.shape_cast %75 : vector<1x8x96xf32> to vector<8x96xf32>
    %77 = vector.extract_strided_slice %72 {offsets = [0, 0], sizes = [8, 96], strides = [1, 1]} : vector<8x256xf32> to vector<8x96xf32>
    %78 = vector.extract_strided_slice %72 {offsets = [0, 128], sizes = [8, 96], strides = [1, 1]} : vector<8x256xf32> to vector<8x96xf32>
    %79 = vector.extract_strided_slice %74 {offsets = [0, 0], sizes = [8, 64], strides = [1, 1]} : vector<8x96xf32> to vector<8x64xf32>
    %80 = vector.extract_strided_slice %77 {offsets = [0, 0], sizes = [8, 64], strides = [1, 1]} : vector<8x96xf32> to vector<8x64xf32>
    %81 = arith.addf %79, %80 : vector<8x64xf32>
    %82 = arith.negf %81 : vector<8x64xf32>
    %83 = math.exp %82 : vector<8x64xf32>
    %cst_14 = arith.constant 1.000000e+00 : f32
    %84 = vector.broadcast %cst_14 : f32 to vector<8x64xf32>
    %85 = arith.addf %84, %83 : vector<8x64xf32>
    %86 = arith.divf %84, %85 : vector<8x64xf32>
    %87 = vector.extract_strided_slice %76 {offsets = [0, 0], sizes = [8, 64], strides = [1, 1]} : vector<8x96xf32> to vector<8x64xf32>
    %88 = vector.extract_strided_slice %78 {offsets = [0, 0], sizes = [8, 64], strides = [1, 1]} : vector<8x96xf32> to vector<8x64xf32>
    %89 = arith.addf %87, %88 : vector<8x64xf32>
    %90 = arith.negf %89 : vector<8x64xf32>
    %91 = math.exp %90 : vector<8x64xf32>
    %cst_15 = arith.constant 1.000000e+00 : f32
    %92 = vector.broadcast %cst_15 : f32 to vector<8x64xf32>
    %93 = arith.addf %92, %91 : vector<8x64xf32>
    %94 = arith.divf %92, %93 : vector<8x64xf32>
    %95 = vector.extract_strided_slice %74 {offsets = [0, 64], sizes = [8, 32], strides = [1, 1]} : vector<8x96xf32> to vector<8x32xf32>
    %96 = vector.extract_strided_slice %86 {offsets = [0, 0], sizes = [8, 32], strides = [1, 1]} : vector<8x64xf32> to vector<8x32xf32>
    %97 = vector.extract_strided_slice %77 {offsets = [0, 64], sizes = [8, 32], strides = [1, 1]} : vector<8x96xf32> to vector<8x32xf32>
    %98 = arith.mulf %96, %97 : vector<8x32xf32>
    %99 = arith.addf %95, %98 : vector<8x32xf32>
    %100 = math.tanh %99 : vector<8x32xf32>
    %101 = vector.extract_strided_slice %76 {offsets = [0, 64], sizes = [8, 32], strides = [1, 1]} : vector<8x96xf32> to vector<8x32xf32>
    %102 = vector.extract_strided_slice %94 {offsets = [0, 0], sizes = [8, 32], strides = [1, 1]} : vector<8x64xf32> to vector<8x32xf32>
    %103 = vector.extract_strided_slice %78 {offsets = [0, 64], sizes = [8, 32], strides = [1, 1]} : vector<8x96xf32> to vector<8x32xf32>
    %104 = arith.mulf %102, %103 : vector<8x32xf32>
    %105 = arith.addf %101, %104 : vector<8x32xf32>
    %106 = math.tanh %105 : vector<8x32xf32>
    %107 = vector.extract_strided_slice %86 {offsets = [0, 32], sizes = [8, 32], strides = [1, 1]} : vector<8x64xf32> to vector<8x32xf32>
    %108 = vector.extract_strided_slice %94 {offsets = [0, 32], sizes = [8, 32], strides = [1, 1]} : vector<8x64xf32> to vector<8x32xf32>
    %cst_16 = arith.constant 1.000000e+00 : f32
    %109 = vector.broadcast %cst_16 : f32 to vector<8x32xf32>
    %110 = arith.subf %109, %107 : vector<8x32xf32>
    %111 = arith.mulf %110, %100 : vector<8x32xf32>
    %112 = arith.mulf %107, %63 : vector<8x32xf32>
    %113 = arith.addf %111, %112 : vector<8x32xf32>
    %cst_17 = arith.constant 1.000000e+00 : f32
    %114 = vector.broadcast %cst_17 : f32 to vector<8x32xf32>
    %115 = arith.subf %114, %108 : vector<8x32xf32>
    %116 = arith.mulf %115, %106 : vector<8x32xf32>
    %117 = arith.mulf %108, %68 : vector<8x32xf32>
    %118 = arith.addf %116, %117 : vector<8x32xf32>
    %119 = tpu.concatenate %113, %118 in 1 : vector<8x32xf32>, vector<8x32xf32> -> vector<8x64xf32>
    %120 = arith.truncf %119 : vector<8x64xf32> to vector<8x64xbf16>
    %cst_18 = arith.constant dense<0.000000e+00> : vector<8x256xf32>
    %121 = tpu.matmul %120, %6, %cst_18 {dimension_numbers = #tpu.dot_dimension_numbers<[1], [0], [0], [1], [0, 0, 1, 1], [], []>} : vector<8x64xbf16>, vector<64x256xbf16>, vector<8x256xf32> -> vector<8x256xf32>
    %122 = arith.addf %121, %11 : vector<8x256xf32>
    %123 = vector.extract_strided_slice %16 {offsets = [2, 0, 0], sizes = [1, 8, 96], strides = [1, 1, 1]} : vector<8x8x256xf32> to vector<1x8x96xf32>
    %124 = vector.shape_cast %123 : vector<1x8x96xf32> to vector<8x96xf32>
    %125 = vector.extract_strided_slice %16 {offsets = [5, 0, 128], sizes = [1, 8, 96], strides = [1, 1, 1]} : vector<8x8x256xf32> to vector<1x8x96xf32>
    %126 = vector.shape_cast %125 : vector<1x8x96xf32> to vector<8x96xf32>
    %127 = vector.extract_strided_slice %122 {offsets = [0, 0], sizes = [8, 96], strides = [1, 1]} : vector<8x256xf32> to vector<8x96xf32>
    %128 = vector.extract_strided_slice %122 {offsets = [0, 128], sizes = [8, 96], strides = [1, 1]} : vector<8x256xf32> to vector<8x96xf32>
    %129 = vector.extract_strided_slice %124 {offsets = [0, 0], sizes = [8, 64], strides = [1, 1]} : vector<8x96xf32> to vector<8x64xf32>
    %130 = vector.extract_strided_slice %127 {offsets = [0, 0], sizes = [8, 64], strides = [1, 1]} : vector<8x96xf32> to vector<8x64xf32>
    %131 = arith.addf %129, %130 : vector<8x64xf32>
    %132 = arith.negf %131 : vector<8x64xf32>
    %133 = math.exp %132 : vector<8x64xf32>
    %cst_19 = arith.constant 1.000000e+00 : f32
    %134 = vector.broadcast %cst_19 : f32 to vector<8x64xf32>
    %135 = arith.addf %134, %133 : vector<8x64xf32>
    %136 = arith.divf %134, %135 : vector<8x64xf32>
    %137 = vector.extract_strided_slice %126 {offsets = [0, 0], sizes = [8, 64], strides = [1, 1]} : vector<8x96xf32> to vector<8x64xf32>
    %138 = vector.extract_strided_slice %128 {offsets = [0, 0], sizes = [8, 64], strides = [1, 1]} : vector<8x96xf32> to vector<8x64xf32>
    %139 = arith.addf %137, %138 : vector<8x64xf32>
    %140 = arith.negf %139 : vector<8x64xf32>
    %141 = math.exp %140 : vector<8x64xf32>
    %cst_20 = arith.constant 1.000000e+00 : f32
    %142 = vector.broadcast %cst_20 : f32 to vector<8x64xf32>
    %143 = arith.addf %142, %141 : vector<8x64xf32>
    %144 = arith.divf %142, %143 : vector<8x64xf32>
    %145 = vector.extract_strided_slice %124 {offsets = [0, 64], sizes = [8, 32], strides = [1, 1]} : vector<8x96xf32> to vector<8x32xf32>
    %146 = vector.extract_strided_slice %136 {offsets = [0, 0], sizes = [8, 32], strides = [1, 1]} : vector<8x64xf32> to vector<8x32xf32>
    %147 = vector.extract_strided_slice %127 {offsets = [0, 64], sizes = [8, 32], strides = [1, 1]} : vector<8x96xf32> to vector<8x32xf32>
    %148 = arith.mulf %146, %147 : vector<8x32xf32>
    %149 = arith.addf %145, %148 : vector<8x32xf32>
    %150 = math.tanh %149 : vector<8x32xf32>
    %151 = vector.extract_strided_slice %126 {offsets = [0, 64], sizes = [8, 32], strides = [1, 1]} : vector<8x96xf32> to vector<8x32xf32>
    %152 = vector.extract_strided_slice %144 {offsets = [0, 0], sizes = [8, 32], strides = [1, 1]} : vector<8x64xf32> to vector<8x32xf32>
    %153 = vector.extract_strided_slice %128 {offsets = [0, 64], sizes = [8, 32], strides = [1, 1]} : vector<8x96xf32> to vector<8x32xf32>
    %154 = arith.mulf %152, %153 : vector<8x32xf32>
    %155 = arith.addf %151, %154 : vector<8x32xf32>
    %156 = math.tanh %155 : vector<8x32xf32>
    %157 = vector.extract_strided_slice %136 {offsets = [0, 32], sizes = [8, 32], strides = [1, 1]} : vector<8x64xf32> to vector<8x32xf32>
    %158 = vector.extract_strided_slice %144 {offsets = [0, 32], sizes = [8, 32], strides = [1, 1]} : vector<8x64xf32> to vector<8x32xf32>
    %cst_21 = arith.constant 1.000000e+00 : f32
    %159 = vector.broadcast %cst_21 : f32 to vector<8x32xf32>
    %160 = arith.subf %159, %157 : vector<8x32xf32>
    %161 = arith.mulf %160, %150 : vector<8x32xf32>
    %162 = arith.mulf %157, %113 : vector<8x32xf32>
    %163 = arith.addf %161, %162 : vector<8x32xf32>
    %cst_22 = arith.constant 1.000000e+00 : f32
    %164 = vector.broadcast %cst_22 : f32 to vector<8x32xf32>
    %165 = arith.subf %164, %158 : vector<8x32xf32>
    %166 = arith.mulf %165, %156 : vector<8x32xf32>
    %167 = arith.mulf %158, %118 : vector<8x32xf32>
    %168 = arith.addf %166, %167 : vector<8x32xf32>
    %169 = tpu.concatenate %163, %168 in 1 : vector<8x32xf32>, vector<8x32xf32> -> vector<8x64xf32>
    %170 = arith.truncf %169 : vector<8x64xf32> to vector<8x64xbf16>
    %cst_23 = arith.constant dense<0.000000e+00> : vector<8x256xf32>
    %171 = tpu.matmul %170, %6, %cst_23 {dimension_numbers = #tpu.dot_dimension_numbers<[1], [0], [0], [1], [0, 0, 1, 1], [], []>} : vector<8x64xbf16>, vector<64x256xbf16>, vector<8x256xf32> -> vector<8x256xf32>
    %172 = arith.addf %171, %11 : vector<8x256xf32>
    %173 = vector.extract_strided_slice %16 {offsets = [3, 0, 0], sizes = [1, 8, 96], strides = [1, 1, 1]} : vector<8x8x256xf32> to vector<1x8x96xf32>
    %174 = vector.shape_cast %173 : vector<1x8x96xf32> to vector<8x96xf32>
    %175 = vector.extract_strided_slice %16 {offsets = [4, 0, 128], sizes = [1, 8, 96], strides = [1, 1, 1]} : vector<8x8x256xf32> to vector<1x8x96xf32>
    %176 = vector.shape_cast %175 : vector<1x8x96xf32> to vector<8x96xf32>
    %177 = vector.extract_strided_slice %172 {offsets = [0, 0], sizes = [8, 96], strides = [1, 1]} : vector<8x256xf32> to vector<8x96xf32>
    %178 = vector.extract_strided_slice %172 {offsets = [0, 128], sizes = [8, 96], strides = [1, 1]} : vector<8x256xf32> to vector<8x96xf32>
    %179 = vector.extract_strided_slice %174 {offsets = [0, 0], sizes = [8, 64], strides = [1, 1]} : vector<8x96xf32> to vector<8x64xf32>
    %180 = vector.extract_strided_slice %177 {offsets = [0, 0], sizes = [8, 64], strides = [1, 1]} : vector<8x96xf32> to vector<8x64xf32>
    %181 = arith.addf %179, %180 : vector<8x64xf32>
    %182 = arith.negf %181 : vector<8x64xf32>
    %183 = math.exp %182 : vector<8x64xf32>
    %cst_24 = arith.constant 1.000000e+00 : f32
    %184 = vector.broadcast %cst_24 : f32 to vector<8x64xf32>
    %185 = arith.addf %184, %183 : vector<8x64xf32>
    %186 = arith.divf %184, %185 : vector<8x64xf32>
    %187 = vector.extract_strided_slice %176 {offsets = [0, 0], sizes = [8, 64], strides = [1, 1]} : vector<8x96xf32> to vector<8x64xf32>
    %188 = vector.extract_strided_slice %178 {offsets = [0, 0], sizes = [8, 64], strides = [1, 1]} : vector<8x96xf32> to vector<8x64xf32>
    %189 = arith.addf %187, %188 : vector<8x64xf32>
    %190 = arith.negf %189 : vector<8x64xf32>
    %191 = math.exp %190 : vector<8x64xf32>
    %cst_25 = arith.constant 1.000000e+00 : f32
    %192 = vector.broadcast %cst_25 : f32 to vector<8x64xf32>
    %193 = arith.addf %192, %191 : vector<8x64xf32>
    %194 = arith.divf %192, %193 : vector<8x64xf32>
    %195 = vector.extract_strided_slice %174 {offsets = [0, 64], sizes = [8, 32], strides = [1, 1]} : vector<8x96xf32> to vector<8x32xf32>
    %196 = vector.extract_strided_slice %186 {offsets = [0, 0], sizes = [8, 32], strides = [1, 1]} : vector<8x64xf32> to vector<8x32xf32>
    %197 = vector.extract_strided_slice %177 {offsets = [0, 64], sizes = [8, 32], strides = [1, 1]} : vector<8x96xf32> to vector<8x32xf32>
    %198 = arith.mulf %196, %197 : vector<8x32xf32>
    %199 = arith.addf %195, %198 : vector<8x32xf32>
    %200 = math.tanh %199 : vector<8x32xf32>
    %201 = vector.extract_strided_slice %176 {offsets = [0, 64], sizes = [8, 32], strides = [1, 1]} : vector<8x96xf32> to vector<8x32xf32>
    %202 = vector.extract_strided_slice %194 {offsets = [0, 0], sizes = [8, 32], strides = [1, 1]} : vector<8x64xf32> to vector<8x32xf32>
    %203 = vector.extract_strided_slice %178 {offsets = [0, 64], sizes = [8, 32], strides = [1, 1]} : vector<8x96xf32> to vector<8x32xf32>
    %204 = arith.mulf %202, %203 : vector<8x32xf32>
    %205 = arith.addf %201, %204 : vector<8x32xf32>
    %206 = math.tanh %205 : vector<8x32xf32>
    %207 = vector.extract_strided_slice %186 {offsets = [0, 32], sizes = [8, 32], strides = [1, 1]} : vector<8x64xf32> to vector<8x32xf32>
    %208 = vector.extract_strided_slice %194 {offsets = [0, 32], sizes = [8, 32], strides = [1, 1]} : vector<8x64xf32> to vector<8x32xf32>
    %cst_26 = arith.constant 1.000000e+00 : f32
    %209 = vector.broadcast %cst_26 : f32 to vector<8x32xf32>
    %210 = arith.subf %209, %207 : vector<8x32xf32>
    %211 = arith.mulf %210, %200 : vector<8x32xf32>
    %212 = arith.mulf %207, %163 : vector<8x32xf32>
    %213 = arith.addf %211, %212 : vector<8x32xf32>
    %cst_27 = arith.constant 1.000000e+00 : f32
    %214 = vector.broadcast %cst_27 : f32 to vector<8x32xf32>
    %215 = arith.subf %214, %208 : vector<8x32xf32>
    %216 = arith.mulf %215, %206 : vector<8x32xf32>
    %217 = arith.mulf %208, %168 : vector<8x32xf32>
    %218 = arith.addf %216, %217 : vector<8x32xf32>
    %219 = tpu.concatenate %213, %218 in 1 : vector<8x32xf32>, vector<8x32xf32> -> vector<8x64xf32>
    %220 = arith.truncf %219 : vector<8x64xf32> to vector<8x64xbf16>
    %cst_28 = arith.constant dense<0.000000e+00> : vector<8x256xf32>
    %221 = tpu.matmul %220, %6, %cst_28 {dimension_numbers = #tpu.dot_dimension_numbers<[1], [0], [0], [1], [0, 0, 1, 1], [], []>} : vector<8x64xbf16>, vector<64x256xbf16>, vector<8x256xf32> -> vector<8x256xf32>
    %222 = arith.addf %221, %11 : vector<8x256xf32>
    %223 = vector.extract_strided_slice %16 {offsets = [4, 0, 0], sizes = [1, 8, 96], strides = [1, 1, 1]} : vector<8x8x256xf32> to vector<1x8x96xf32>
    %224 = vector.shape_cast %223 : vector<1x8x96xf32> to vector<8x96xf32>
    %225 = vector.extract_strided_slice %16 {offsets = [3, 0, 128], sizes = [1, 8, 96], strides = [1, 1, 1]} : vector<8x8x256xf32> to vector<1x8x96xf32>
    %226 = vector.shape_cast %225 : vector<1x8x96xf32> to vector<8x96xf32>
    %227 = vector.extract_strided_slice %222 {offsets = [0, 0], sizes = [8, 96], strides = [1, 1]} : vector<8x256xf32> to vector<8x96xf32>
    %228 = vector.extract_strided_slice %222 {offsets = [0, 128], sizes = [8, 96], strides = [1, 1]} : vector<8x256xf32> to vector<8x96xf32>
    %229 = vector.extract_strided_slice %224 {offsets = [0, 0], sizes = [8, 64], strides = [1, 1]} : vector<8x96xf32> to vector<8x64xf32>
    %230 = vector.extract_strided_slice %227 {offsets = [0, 0], sizes = [8, 64], strides = [1, 1]} : vector<8x96xf32> to vector<8x64xf32>
    %231 = arith.addf %229, %230 : vector<8x64xf32>
    %232 = arith.negf %231 : vector<8x64xf32>
    %233 = math.exp %232 : vector<8x64xf32>
    %cst_29 = arith.constant 1.000000e+00 : f32
    %234 = vector.broadcast %cst_29 : f32 to vector<8x64xf32>
    %235 = arith.addf %234, %233 : vector<8x64xf32>
    %236 = arith.divf %234, %235 : vector<8x64xf32>
    %237 = vector.extract_strided_slice %226 {offsets = [0, 0], sizes = [8, 64], strides = [1, 1]} : vector<8x96xf32> to vector<8x64xf32>
    %238 = vector.extract_strided_slice %228 {offsets = [0, 0], sizes = [8, 64], strides = [1, 1]} : vector<8x96xf32> to vector<8x64xf32>
    %239 = arith.addf %237, %238 : vector<8x64xf32>
    %240 = arith.negf %239 : vector<8x64xf32>
    %241 = math.exp %240 : vector<8x64xf32>
    %cst_30 = arith.constant 1.000000e+00 : f32
    %242 = vector.broadcast %cst_30 : f32 to vector<8x64xf32>
    %243 = arith.addf %242, %241 : vector<8x64xf32>
    %244 = arith.divf %242, %243 : vector<8x64xf32>
    %245 = vector.extract_strided_slice %224 {offsets = [0, 64], sizes = [8, 32], strides = [1, 1]} : vector<8x96xf32> to vector<8x32xf32>
    %246 = vector.extract_strided_slice %236 {offsets = [0, 0], sizes = [8, 32], strides = [1, 1]} : vector<8x64xf32> to vector<8x32xf32>
    %247 = vector.extract_strided_slice %227 {offsets = [0, 64], sizes = [8, 32], strides = [1, 1]} : vector<8x96xf32> to vector<8x32xf32>
    %248 = arith.mulf %246, %247 : vector<8x32xf32>
    %249 = arith.addf %245, %248 : vector<8x32xf32>
    %250 = math.tanh %249 : vector<8x32xf32>
    %251 = vector.extract_strided_slice %226 {offsets = [0, 64], sizes = [8, 32], strides = [1, 1]} : vector<8x96xf32> to vector<8x32xf32>
    %252 = vector.extract_strided_slice %244 {offsets = [0, 0], sizes = [8, 32], strides = [1, 1]} : vector<8x64xf32> to vector<8x32xf32>
    %253 = vector.extract_strided_slice %228 {offsets = [0, 64], sizes = [8, 32], strides = [1, 1]} : vector<8x96xf32> to vector<8x32xf32>
    %254 = arith.mulf %252, %253 : vector<8x32xf32>
    %255 = arith.addf %251, %254 : vector<8x32xf32>
    %256 = math.tanh %255 : vector<8x32xf32>
    %257 = vector.extract_strided_slice %236 {offsets = [0, 32], sizes = [8, 32], strides = [1, 1]} : vector<8x64xf32> to vector<8x32xf32>
    %258 = vector.extract_strided_slice %244 {offsets = [0, 32], sizes = [8, 32], strides = [1, 1]} : vector<8x64xf32> to vector<8x32xf32>
    %cst_31 = arith.constant 1.000000e+00 : f32
    %259 = vector.broadcast %cst_31 : f32 to vector<8x32xf32>
    %260 = arith.subf %259, %257 : vector<8x32xf32>
    %261 = arith.mulf %260, %250 : vector<8x32xf32>
    %262 = arith.mulf %257, %213 : vector<8x32xf32>
    %263 = arith.addf %261, %262 : vector<8x32xf32>
    %cst_32 = arith.constant 1.000000e+00 : f32
    %264 = vector.broadcast %cst_32 : f32 to vector<8x32xf32>
    %265 = arith.subf %264, %258 : vector<8x32xf32>
    %266 = arith.mulf %265, %256 : vector<8x32xf32>
    %267 = arith.mulf %258, %218 : vector<8x32xf32>
    %268 = arith.addf %266, %267 : vector<8x32xf32>
    %269 = tpu.concatenate %263, %268 in 1 : vector<8x32xf32>, vector<8x32xf32> -> vector<8x64xf32>
    %270 = arith.truncf %269 : vector<8x64xf32> to vector<8x64xbf16>
    %cst_33 = arith.constant dense<0.000000e+00> : vector<8x256xf32>
    %271 = tpu.matmul %270, %6, %cst_33 {dimension_numbers = #tpu.dot_dimension_numbers<[1], [0], [0], [1], [0, 0, 1, 1], [], []>} : vector<8x64xbf16>, vector<64x256xbf16>, vector<8x256xf32> -> vector<8x256xf32>
    %272 = arith.addf %271, %11 : vector<8x256xf32>
    %273 = vector.extract_strided_slice %16 {offsets = [5, 0, 0], sizes = [1, 8, 96], strides = [1, 1, 1]} : vector<8x8x256xf32> to vector<1x8x96xf32>
    %274 = vector.shape_cast %273 : vector<1x8x96xf32> to vector<8x96xf32>
    %275 = vector.extract_strided_slice %16 {offsets = [2, 0, 128], sizes = [1, 8, 96], strides = [1, 1, 1]} : vector<8x8x256xf32> to vector<1x8x96xf32>
    %276 = vector.shape_cast %275 : vector<1x8x96xf32> to vector<8x96xf32>
    %277 = vector.extract_strided_slice %272 {offsets = [0, 0], sizes = [8, 96], strides = [1, 1]} : vector<8x256xf32> to vector<8x96xf32>
    %278 = vector.extract_strided_slice %272 {offsets = [0, 128], sizes = [8, 96], strides = [1, 1]} : vector<8x256xf32> to vector<8x96xf32>
    %279 = vector.extract_strided_slice %274 {offsets = [0, 0], sizes = [8, 64], strides = [1, 1]} : vector<8x96xf32> to vector<8x64xf32>
    %280 = vector.extract_strided_slice %277 {offsets = [0, 0], sizes = [8, 64], strides = [1, 1]} : vector<8x96xf32> to vector<8x64xf32>
    %281 = arith.addf %279, %280 : vector<8x64xf32>
    %282 = arith.negf %281 : vector<8x64xf32>
    %283 = math.exp %282 : vector<8x64xf32>
    %cst_34 = arith.constant 1.000000e+00 : f32
    %284 = vector.broadcast %cst_34 : f32 to vector<8x64xf32>
    %285 = arith.addf %284, %283 : vector<8x64xf32>
    %286 = arith.divf %284, %285 : vector<8x64xf32>
    %287 = vector.extract_strided_slice %276 {offsets = [0, 0], sizes = [8, 64], strides = [1, 1]} : vector<8x96xf32> to vector<8x64xf32>
    %288 = vector.extract_strided_slice %278 {offsets = [0, 0], sizes = [8, 64], strides = [1, 1]} : vector<8x96xf32> to vector<8x64xf32>
    %289 = arith.addf %287, %288 : vector<8x64xf32>
    %290 = arith.negf %289 : vector<8x64xf32>
    %291 = math.exp %290 : vector<8x64xf32>
    %cst_35 = arith.constant 1.000000e+00 : f32
    %292 = vector.broadcast %cst_35 : f32 to vector<8x64xf32>
    %293 = arith.addf %292, %291 : vector<8x64xf32>
    %294 = arith.divf %292, %293 : vector<8x64xf32>
    %295 = vector.extract_strided_slice %274 {offsets = [0, 64], sizes = [8, 32], strides = [1, 1]} : vector<8x96xf32> to vector<8x32xf32>
    %296 = vector.extract_strided_slice %286 {offsets = [0, 0], sizes = [8, 32], strides = [1, 1]} : vector<8x64xf32> to vector<8x32xf32>
    %297 = vector.extract_strided_slice %277 {offsets = [0, 64], sizes = [8, 32], strides = [1, 1]} : vector<8x96xf32> to vector<8x32xf32>
    %298 = arith.mulf %296, %297 : vector<8x32xf32>
    %299 = arith.addf %295, %298 : vector<8x32xf32>
    %300 = math.tanh %299 : vector<8x32xf32>
    %301 = vector.extract_strided_slice %276 {offsets = [0, 64], sizes = [8, 32], strides = [1, 1]} : vector<8x96xf32> to vector<8x32xf32>
    %302 = vector.extract_strided_slice %294 {offsets = [0, 0], sizes = [8, 32], strides = [1, 1]} : vector<8x64xf32> to vector<8x32xf32>
    %303 = vector.extract_strided_slice %278 {offsets = [0, 64], sizes = [8, 32], strides = [1, 1]} : vector<8x96xf32> to vector<8x32xf32>
    %304 = arith.mulf %302, %303 : vector<8x32xf32>
    %305 = arith.addf %301, %304 : vector<8x32xf32>
    %306 = math.tanh %305 : vector<8x32xf32>
    %307 = vector.extract_strided_slice %286 {offsets = [0, 32], sizes = [8, 32], strides = [1, 1]} : vector<8x64xf32> to vector<8x32xf32>
    %308 = vector.extract_strided_slice %294 {offsets = [0, 32], sizes = [8, 32], strides = [1, 1]} : vector<8x64xf32> to vector<8x32xf32>
    %cst_36 = arith.constant 1.000000e+00 : f32
    %309 = vector.broadcast %cst_36 : f32 to vector<8x32xf32>
    %310 = arith.subf %309, %307 : vector<8x32xf32>
    %311 = arith.mulf %310, %300 : vector<8x32xf32>
    %312 = arith.mulf %307, %263 : vector<8x32xf32>
    %313 = arith.addf %311, %312 : vector<8x32xf32>
    %cst_37 = arith.constant 1.000000e+00 : f32
    %314 = vector.broadcast %cst_37 : f32 to vector<8x32xf32>
    %315 = arith.subf %314, %308 : vector<8x32xf32>
    %316 = arith.mulf %315, %306 : vector<8x32xf32>
    %317 = arith.mulf %308, %268 : vector<8x32xf32>
    %318 = arith.addf %316, %317 : vector<8x32xf32>
    %319 = tpu.concatenate %313, %318 in 1 : vector<8x32xf32>, vector<8x32xf32> -> vector<8x64xf32>
    %320 = arith.truncf %319 : vector<8x64xf32> to vector<8x64xbf16>
    %cst_38 = arith.constant dense<0.000000e+00> : vector<8x256xf32>
    %321 = tpu.matmul %320, %6, %cst_38 {dimension_numbers = #tpu.dot_dimension_numbers<[1], [0], [0], [1], [0, 0, 1, 1], [], []>} : vector<8x64xbf16>, vector<64x256xbf16>, vector<8x256xf32> -> vector<8x256xf32>
    %322 = arith.addf %321, %11 : vector<8x256xf32>
    %323 = vector.extract_strided_slice %16 {offsets = [6, 0, 0], sizes = [1, 8, 96], strides = [1, 1, 1]} : vector<8x8x256xf32> to vector<1x8x96xf32>
    %324 = vector.shape_cast %323 : vector<1x8x96xf32> to vector<8x96xf32>
    %325 = vector.extract_strided_slice %16 {offsets = [1, 0, 128], sizes = [1, 8, 96], strides = [1, 1, 1]} : vector<8x8x256xf32> to vector<1x8x96xf32>
    %326 = vector.shape_cast %325 : vector<1x8x96xf32> to vector<8x96xf32>
    %327 = vector.extract_strided_slice %322 {offsets = [0, 0], sizes = [8, 96], strides = [1, 1]} : vector<8x256xf32> to vector<8x96xf32>
    %328 = vector.extract_strided_slice %322 {offsets = [0, 128], sizes = [8, 96], strides = [1, 1]} : vector<8x256xf32> to vector<8x96xf32>
    %329 = vector.extract_strided_slice %324 {offsets = [0, 0], sizes = [8, 64], strides = [1, 1]} : vector<8x96xf32> to vector<8x64xf32>
    %330 = vector.extract_strided_slice %327 {offsets = [0, 0], sizes = [8, 64], strides = [1, 1]} : vector<8x96xf32> to vector<8x64xf32>
    %331 = arith.addf %329, %330 : vector<8x64xf32>
    %332 = arith.negf %331 : vector<8x64xf32>
    %333 = math.exp %332 : vector<8x64xf32>
    %cst_39 = arith.constant 1.000000e+00 : f32
    %334 = vector.broadcast %cst_39 : f32 to vector<8x64xf32>
    %335 = arith.addf %334, %333 : vector<8x64xf32>
    %336 = arith.divf %334, %335 : vector<8x64xf32>
    %337 = vector.extract_strided_slice %326 {offsets = [0, 0], sizes = [8, 64], strides = [1, 1]} : vector<8x96xf32> to vector<8x64xf32>
    %338 = vector.extract_strided_slice %328 {offsets = [0, 0], sizes = [8, 64], strides = [1, 1]} : vector<8x96xf32> to vector<8x64xf32>
    %339 = arith.addf %337, %338 : vector<8x64xf32>
    %340 = arith.negf %339 : vector<8x64xf32>
    %341 = math.exp %340 : vector<8x64xf32>
    %cst_40 = arith.constant 1.000000e+00 : f32
    %342 = vector.broadcast %cst_40 : f32 to vector<8x64xf32>
    %343 = arith.addf %342, %341 : vector<8x64xf32>
    %344 = arith.divf %342, %343 : vector<8x64xf32>
    %345 = vector.extract_strided_slice %324 {offsets = [0, 64], sizes = [8, 32], strides = [1, 1]} : vector<8x96xf32> to vector<8x32xf32>
    %346 = vector.extract_strided_slice %336 {offsets = [0, 0], sizes = [8, 32], strides = [1, 1]} : vector<8x64xf32> to vector<8x32xf32>
    %347 = vector.extract_strided_slice %327 {offsets = [0, 64], sizes = [8, 32], strides = [1, 1]} : vector<8x96xf32> to vector<8x32xf32>
    %348 = arith.mulf %346, %347 : vector<8x32xf32>
    %349 = arith.addf %345, %348 : vector<8x32xf32>
    %350 = math.tanh %349 : vector<8x32xf32>
    %351 = vector.extract_strided_slice %326 {offsets = [0, 64], sizes = [8, 32], strides = [1, 1]} : vector<8x96xf32> to vector<8x32xf32>
    %352 = vector.extract_strided_slice %344 {offsets = [0, 0], sizes = [8, 32], strides = [1, 1]} : vector<8x64xf32> to vector<8x32xf32>
    %353 = vector.extract_strided_slice %328 {offsets = [0, 64], sizes = [8, 32], strides = [1, 1]} : vector<8x96xf32> to vector<8x32xf32>
    %354 = arith.mulf %352, %353 : vector<8x32xf32>
    %355 = arith.addf %351, %354 : vector<8x32xf32>
    %356 = math.tanh %355 : vector<8x32xf32>
    %357 = vector.extract_strided_slice %336 {offsets = [0, 32], sizes = [8, 32], strides = [1, 1]} : vector<8x64xf32> to vector<8x32xf32>
    %358 = vector.extract_strided_slice %344 {offsets = [0, 32], sizes = [8, 32], strides = [1, 1]} : vector<8x64xf32> to vector<8x32xf32>
    %cst_41 = arith.constant 1.000000e+00 : f32
    %359 = vector.broadcast %cst_41 : f32 to vector<8x32xf32>
    %360 = arith.subf %359, %357 : vector<8x32xf32>
    %361 = arith.mulf %360, %350 : vector<8x32xf32>
    %362 = arith.mulf %357, %313 : vector<8x32xf32>
    %363 = arith.addf %361, %362 : vector<8x32xf32>
    %cst_42 = arith.constant 1.000000e+00 : f32
    %364 = vector.broadcast %cst_42 : f32 to vector<8x32xf32>
    %365 = arith.subf %364, %358 : vector<8x32xf32>
    %366 = arith.mulf %365, %356 : vector<8x32xf32>
    %367 = arith.mulf %358, %318 : vector<8x32xf32>
    %368 = arith.addf %366, %367 : vector<8x32xf32>
    %369 = tpu.concatenate %363, %368 in 1 : vector<8x32xf32>, vector<8x32xf32> -> vector<8x64xf32>
    %370 = arith.truncf %369 : vector<8x64xf32> to vector<8x64xbf16>
    %cst_43 = arith.constant dense<0.000000e+00> : vector<8x256xf32>
    %371 = tpu.matmul %370, %6, %cst_43 {dimension_numbers = #tpu.dot_dimension_numbers<[1], [0], [0], [1], [0, 0, 1, 1], [], []>} : vector<8x64xbf16>, vector<64x256xbf16>, vector<8x256xf32> -> vector<8x256xf32>
    %372 = arith.addf %371, %11 : vector<8x256xf32>
    %373 = vector.extract_strided_slice %16 {offsets = [7, 0, 0], sizes = [1, 8, 96], strides = [1, 1, 1]} : vector<8x8x256xf32> to vector<1x8x96xf32>
    %374 = vector.shape_cast %373 : vector<1x8x96xf32> to vector<8x96xf32>
    %375 = vector.extract_strided_slice %16 {offsets = [0, 0, 128], sizes = [1, 8, 96], strides = [1, 1, 1]} : vector<8x8x256xf32> to vector<1x8x96xf32>
    %376 = vector.shape_cast %375 : vector<1x8x96xf32> to vector<8x96xf32>
    %377 = vector.extract_strided_slice %372 {offsets = [0, 0], sizes = [8, 96], strides = [1, 1]} : vector<8x256xf32> to vector<8x96xf32>
    %378 = vector.extract_strided_slice %372 {offsets = [0, 128], sizes = [8, 96], strides = [1, 1]} : vector<8x256xf32> to vector<8x96xf32>
    %379 = vector.extract_strided_slice %374 {offsets = [0, 0], sizes = [8, 64], strides = [1, 1]} : vector<8x96xf32> to vector<8x64xf32>
    %380 = vector.extract_strided_slice %377 {offsets = [0, 0], sizes = [8, 64], strides = [1, 1]} : vector<8x96xf32> to vector<8x64xf32>
    %381 = arith.addf %379, %380 : vector<8x64xf32>
    %382 = arith.negf %381 : vector<8x64xf32>
    %383 = math.exp %382 : vector<8x64xf32>
    %cst_44 = arith.constant 1.000000e+00 : f32
    %384 = vector.broadcast %cst_44 : f32 to vector<8x64xf32>
    %385 = arith.addf %384, %383 : vector<8x64xf32>
    %386 = arith.divf %384, %385 : vector<8x64xf32>
    %387 = vector.extract_strided_slice %376 {offsets = [0, 0], sizes = [8, 64], strides = [1, 1]} : vector<8x96xf32> to vector<8x64xf32>
    %388 = vector.extract_strided_slice %378 {offsets = [0, 0], sizes = [8, 64], strides = [1, 1]} : vector<8x96xf32> to vector<8x64xf32>
    %389 = arith.addf %387, %388 : vector<8x64xf32>
    %390 = arith.negf %389 : vector<8x64xf32>
    %391 = math.exp %390 : vector<8x64xf32>
    %cst_45 = arith.constant 1.000000e+00 : f32
    %392 = vector.broadcast %cst_45 : f32 to vector<8x64xf32>
    %393 = arith.addf %392, %391 : vector<8x64xf32>
    %394 = arith.divf %392, %393 : vector<8x64xf32>
    %395 = vector.extract_strided_slice %374 {offsets = [0, 64], sizes = [8, 32], strides = [1, 1]} : vector<8x96xf32> to vector<8x32xf32>
    %396 = vector.extract_strided_slice %386 {offsets = [0, 0], sizes = [8, 32], strides = [1, 1]} : vector<8x64xf32> to vector<8x32xf32>
    %397 = vector.extract_strided_slice %377 {offsets = [0, 64], sizes = [8, 32], strides = [1, 1]} : vector<8x96xf32> to vector<8x32xf32>
    %398 = arith.mulf %396, %397 : vector<8x32xf32>
    %399 = arith.addf %395, %398 : vector<8x32xf32>
    %400 = math.tanh %399 : vector<8x32xf32>
    %401 = vector.extract_strided_slice %376 {offsets = [0, 64], sizes = [8, 32], strides = [1, 1]} : vector<8x96xf32> to vector<8x32xf32>
    %402 = vector.extract_strided_slice %394 {offsets = [0, 0], sizes = [8, 32], strides = [1, 1]} : vector<8x64xf32> to vector<8x32xf32>
    %403 = vector.extract_strided_slice %378 {offsets = [0, 64], sizes = [8, 32], strides = [1, 1]} : vector<8x96xf32> to vector<8x32xf32>
    %404 = arith.mulf %402, %403 : vector<8x32xf32>
    %405 = arith.addf %401, %404 : vector<8x32xf32>
    %406 = math.tanh %405 : vector<8x32xf32>
    %407 = vector.extract_strided_slice %386 {offsets = [0, 32], sizes = [8, 32], strides = [1, 1]} : vector<8x64xf32> to vector<8x32xf32>
    %408 = vector.extract_strided_slice %394 {offsets = [0, 32], sizes = [8, 32], strides = [1, 1]} : vector<8x64xf32> to vector<8x32xf32>
    %cst_46 = arith.constant 1.000000e+00 : f32
    %409 = vector.broadcast %cst_46 : f32 to vector<8x32xf32>
    %410 = arith.subf %409, %407 : vector<8x32xf32>
    %411 = arith.mulf %410, %400 : vector<8x32xf32>
    %412 = arith.mulf %407, %363 : vector<8x32xf32>
    %413 = arith.addf %411, %412 : vector<8x32xf32>
    %cst_47 = arith.constant 1.000000e+00 : f32
    %414 = vector.broadcast %cst_47 : f32 to vector<8x32xf32>
    %415 = arith.subf %414, %408 : vector<8x32xf32>
    %416 = arith.mulf %415, %406 : vector<8x32xf32>
    %417 = arith.mulf %408, %368 : vector<8x32xf32>
    %418 = arith.addf %416, %417 : vector<8x32xf32>
    %419 = vector.shape_cast %63 : vector<8x32xf32> to vector<1x8x32xf32>
    %420 = vector.shape_cast %113 : vector<8x32xf32> to vector<1x8x32xf32>
    %421 = vector.shape_cast %163 : vector<8x32xf32> to vector<1x8x32xf32>
    %422 = vector.shape_cast %213 : vector<8x32xf32> to vector<1x8x32xf32>
    %423 = vector.shape_cast %263 : vector<8x32xf32> to vector<1x8x32xf32>
    %424 = vector.shape_cast %313 : vector<8x32xf32> to vector<1x8x32xf32>
    %425 = vector.shape_cast %363 : vector<8x32xf32> to vector<1x8x32xf32>
    %426 = vector.shape_cast %413 : vector<8x32xf32> to vector<1x8x32xf32>
    %427 = tpu.concatenate %419, %420, %421, %422, %423, %424, %425, %426 in 0 : vector<1x8x32xf32>, vector<1x8x32xf32>, vector<1x8x32xf32>, vector<1x8x32xf32>, vector<1x8x32xf32>, vector<1x8x32xf32>, vector<1x8x32xf32>, vector<1x8x32xf32> -> vector<8x8x32xf32>
    %428 = vector.shape_cast %418 : vector<8x32xf32> to vector<1x8x32xf32>
    %429 = vector.shape_cast %368 : vector<8x32xf32> to vector<1x8x32xf32>
    %430 = vector.shape_cast %318 : vector<8x32xf32> to vector<1x8x32xf32>
    %431 = vector.shape_cast %268 : vector<8x32xf32> to vector<1x8x32xf32>
    %432 = vector.shape_cast %218 : vector<8x32xf32> to vector<1x8x32xf32>
    %433 = vector.shape_cast %168 : vector<8x32xf32> to vector<1x8x32xf32>
    %434 = vector.shape_cast %118 : vector<8x32xf32> to vector<1x8x32xf32>
    %435 = vector.shape_cast %68 : vector<8x32xf32> to vector<1x8x32xf32>
    %436 = tpu.concatenate %428, %429, %430, %431, %432, %433, %434, %435 in 0 : vector<1x8x32xf32>, vector<1x8x32xf32>, vector<1x8x32xf32>, vector<1x8x32xf32>, vector<1x8x32xf32>, vector<1x8x32xf32>, vector<1x8x32xf32>, vector<1x8x32xf32> -> vector<8x8x32xf32>
    %437 = tpu.concatenate %427, %436 in 2 : vector<8x8x32xf32>, vector<8x8x32xf32> -> vector<8x8x64xf32>
    %438 = vector.shape_cast %437 : vector<8x8x64xf32> to vector<64x64xf32>
    %c0_48 = arith.constant 0 : index
    %c0_49 = arith.constant 0 : index
    %439 = vector.load %arg4[%c0_48, %c0_49] : memref<128x256xf32, #tpu.memory_space<vmem>>, vector<128x256xf32>
    %440 = vector.extract_strided_slice %439 {offsets = [0, 0], sizes = [64, 256], strides = [1, 1]} : vector<128x256xf32> to vector<64x256xf32>
    %441 = arith.truncf %440 : vector<64x256xf32> to vector<64x256xbf16>
    %442 = vector.extract_strided_slice %439 {offsets = [64, 0], sizes = [64, 256], strides = [1, 1]} : vector<128x256xf32> to vector<64x256xf32>
    %443 = arith.truncf %442 : vector<64x256xf32> to vector<64x256xbf16>
    %c0_50 = arith.constant 0 : index
    %c0_51 = arith.constant 0 : index
    %444 = vector.load %arg5[%c0_50, %c0_51] : memref<2x256xf32, #tpu.memory_space<vmem>>, vector<2x256xf32>
    %445 = vector.extract_strided_slice %444 {offsets = [0, 0], sizes = [1, 256], strides = [1, 1]} : vector<2x256xf32> to vector<1x256xf32>
    %446 = vector.extract_strided_slice %444 {offsets = [1, 0], sizes = [1, 256], strides = [1, 1]} : vector<2x256xf32> to vector<1x256xf32>
    %447 = vector.shape_cast %446 : vector<1x256xf32> to vector<1x256xf32>
    %448 = vector.broadcast %447 : vector<1x256xf32> to vector<8x256xf32>
    %449 = arith.truncf %438 : vector<64x64xf32> to vector<64x64xbf16>
    %cst_52 = arith.constant dense<0.000000e+00> : vector<64x256xf32>
    %450 = tpu.matmul %449, %441, %cst_52 {dimension_numbers = #tpu.dot_dimension_numbers<[1], [0], [0], [1], [0, 0, 1, 1], [], []>} : vector<64x64xbf16>, vector<64x256xbf16>, vector<64x256xf32> -> vector<64x256xf32>
    %451 = vector.broadcast %445 : vector<1x256xf32> to vector<64x256xf32>
    %452 = arith.addf %450, %451 : vector<64x256xf32>
    %453 = vector.shape_cast %452 : vector<64x256xf32> to vector<8x8x256xf32>
    %cst_53 = arith.constant 0.000000e+00 : f32
    %454 = vector.broadcast %cst_53 : f32 to vector<8x32xf32>
    %cst_54 = arith.constant 0.000000e+00 : f32
    %455 = vector.broadcast %cst_54 : f32 to vector<8x32xf32>
    %456 = tpu.concatenate %454, %455 in 1 : vector<8x32xf32>, vector<8x32xf32> -> vector<8x64xf32>
    %457 = arith.truncf %456 : vector<8x64xf32> to vector<8x64xbf16>
    %cst_55 = arith.constant dense<0.000000e+00> : vector<8x256xf32>
    %458 = tpu.matmul %457, %443, %cst_55 {dimension_numbers = #tpu.dot_dimension_numbers<[1], [0], [0], [1], [0, 0, 1, 1], [], []>} : vector<8x64xbf16>, vector<64x256xbf16>, vector<8x256xf32> -> vector<8x256xf32>
    %459 = arith.addf %458, %448 : vector<8x256xf32>
    %460 = vector.extract_strided_slice %453 {offsets = [0, 0, 0], sizes = [1, 8, 96], strides = [1, 1, 1]} : vector<8x8x256xf32> to vector<1x8x96xf32>
    %461 = vector.shape_cast %460 : vector<1x8x96xf32> to vector<8x96xf32>
    %462 = vector.extract_strided_slice %453 {offsets = [7, 0, 128], sizes = [1, 8, 96], strides = [1, 1, 1]} : vector<8x8x256xf32> to vector<1x8x96xf32>
    %463 = vector.shape_cast %462 : vector<1x8x96xf32> to vector<8x96xf32>
    %464 = vector.extract_strided_slice %459 {offsets = [0, 0], sizes = [8, 96], strides = [1, 1]} : vector<8x256xf32> to vector<8x96xf32>
    %465 = vector.extract_strided_slice %459 {offsets = [0, 128], sizes = [8, 96], strides = [1, 1]} : vector<8x256xf32> to vector<8x96xf32>
    %466 = vector.extract_strided_slice %461 {offsets = [0, 0], sizes = [8, 64], strides = [1, 1]} : vector<8x96xf32> to vector<8x64xf32>
    %467 = vector.extract_strided_slice %464 {offsets = [0, 0], sizes = [8, 64], strides = [1, 1]} : vector<8x96xf32> to vector<8x64xf32>
    %468 = arith.addf %466, %467 : vector<8x64xf32>
    %469 = arith.negf %468 : vector<8x64xf32>
    %470 = math.exp %469 : vector<8x64xf32>
    %cst_56 = arith.constant 1.000000e+00 : f32
    %471 = vector.broadcast %cst_56 : f32 to vector<8x64xf32>
    %472 = arith.addf %471, %470 : vector<8x64xf32>
    %473 = arith.divf %471, %472 : vector<8x64xf32>
    %474 = vector.extract_strided_slice %463 {offsets = [0, 0], sizes = [8, 64], strides = [1, 1]} : vector<8x96xf32> to vector<8x64xf32>
    %475 = vector.extract_strided_slice %465 {offsets = [0, 0], sizes = [8, 64], strides = [1, 1]} : vector<8x96xf32> to vector<8x64xf32>
    %476 = arith.addf %474, %475 : vector<8x64xf32>
    %477 = arith.negf %476 : vector<8x64xf32>
    %478 = math.exp %477 : vector<8x64xf32>
    %cst_57 = arith.constant 1.000000e+00 : f32
    %479 = vector.broadcast %cst_57 : f32 to vector<8x64xf32>
    %480 = arith.addf %479, %478 : vector<8x64xf32>
    %481 = arith.divf %479, %480 : vector<8x64xf32>
    %482 = vector.extract_strided_slice %461 {offsets = [0, 64], sizes = [8, 32], strides = [1, 1]} : vector<8x96xf32> to vector<8x32xf32>
    %483 = vector.extract_strided_slice %473 {offsets = [0, 0], sizes = [8, 32], strides = [1, 1]} : vector<8x64xf32> to vector<8x32xf32>
    %484 = vector.extract_strided_slice %464 {offsets = [0, 64], sizes = [8, 32], strides = [1, 1]} : vector<8x96xf32> to vector<8x32xf32>
    %485 = arith.mulf %483, %484 : vector<8x32xf32>
    %486 = arith.addf %482, %485 : vector<8x32xf32>
    %487 = math.tanh %486 : vector<8x32xf32>
    %488 = vector.extract_strided_slice %463 {offsets = [0, 64], sizes = [8, 32], strides = [1, 1]} : vector<8x96xf32> to vector<8x32xf32>
    %489 = vector.extract_strided_slice %481 {offsets = [0, 0], sizes = [8, 32], strides = [1, 1]} : vector<8x64xf32> to vector<8x32xf32>
    %490 = vector.extract_strided_slice %465 {offsets = [0, 64], sizes = [8, 32], strides = [1, 1]} : vector<8x96xf32> to vector<8x32xf32>
    %491 = arith.mulf %489, %490 : vector<8x32xf32>
    %492 = arith.addf %488, %491 : vector<8x32xf32>
    %493 = math.tanh %492 : vector<8x32xf32>
    %494 = vector.extract_strided_slice %473 {offsets = [0, 32], sizes = [8, 32], strides = [1, 1]} : vector<8x64xf32> to vector<8x32xf32>
    %495 = vector.extract_strided_slice %481 {offsets = [0, 32], sizes = [8, 32], strides = [1, 1]} : vector<8x64xf32> to vector<8x32xf32>
    %cst_58 = arith.constant 1.000000e+00 : f32
    %496 = vector.broadcast %cst_58 : f32 to vector<8x32xf32>
    %497 = arith.subf %496, %494 : vector<8x32xf32>
    %498 = arith.mulf %497, %487 : vector<8x32xf32>
    %499 = arith.mulf %494, %454 : vector<8x32xf32>
    %500 = arith.addf %498, %499 : vector<8x32xf32>
    %cst_59 = arith.constant 1.000000e+00 : f32
    %501 = vector.broadcast %cst_59 : f32 to vector<8x32xf32>
    %502 = arith.subf %501, %495 : vector<8x32xf32>
    %503 = arith.mulf %502, %493 : vector<8x32xf32>
    %504 = arith.mulf %495, %455 : vector<8x32xf32>
    %505 = arith.addf %503, %504 : vector<8x32xf32>
    %506 = tpu.concatenate %500, %505 in 1 : vector<8x32xf32>, vector<8x32xf32> -> vector<8x64xf32>
    %507 = arith.truncf %506 : vector<8x64xf32> to vector<8x64xbf16>
    %cst_60 = arith.constant dense<0.000000e+00> : vector<8x256xf32>
    %508 = tpu.matmul %507, %443, %cst_60 {dimension_numbers = #tpu.dot_dimension_numbers<[1], [0], [0], [1], [0, 0, 1, 1], [], []>} : vector<8x64xbf16>, vector<64x256xbf16>, vector<8x256xf32> -> vector<8x256xf32>
    %509 = arith.addf %508, %448 : vector<8x256xf32>
    %510 = vector.extract_strided_slice %453 {offsets = [1, 0, 0], sizes = [1, 8, 96], strides = [1, 1, 1]} : vector<8x8x256xf32> to vector<1x8x96xf32>
    %511 = vector.shape_cast %510 : vector<1x8x96xf32> to vector<8x96xf32>
    %512 = vector.extract_strided_slice %453 {offsets = [6, 0, 128], sizes = [1, 8, 96], strides = [1, 1, 1]} : vector<8x8x256xf32> to vector<1x8x96xf32>
    %513 = vector.shape_cast %512 : vector<1x8x96xf32> to vector<8x96xf32>
    %514 = vector.extract_strided_slice %509 {offsets = [0, 0], sizes = [8, 96], strides = [1, 1]} : vector<8x256xf32> to vector<8x96xf32>
    %515 = vector.extract_strided_slice %509 {offsets = [0, 128], sizes = [8, 96], strides = [1, 1]} : vector<8x256xf32> to vector<8x96xf32>
    %516 = vector.extract_strided_slice %511 {offsets = [0, 0], sizes = [8, 64], strides = [1, 1]} : vector<8x96xf32> to vector<8x64xf32>
    %517 = vector.extract_strided_slice %514 {offsets = [0, 0], sizes = [8, 64], strides = [1, 1]} : vector<8x96xf32> to vector<8x64xf32>
    %518 = arith.addf %516, %517 : vector<8x64xf32>
    %519 = arith.negf %518 : vector<8x64xf32>
    %520 = math.exp %519 : vector<8x64xf32>
    %cst_61 = arith.constant 1.000000e+00 : f32
    %521 = vector.broadcast %cst_61 : f32 to vector<8x64xf32>
    %522 = arith.addf %521, %520 : vector<8x64xf32>
    %523 = arith.divf %521, %522 : vector<8x64xf32>
    %524 = vector.extract_strided_slice %513 {offsets = [0, 0], sizes = [8, 64], strides = [1, 1]} : vector<8x96xf32> to vector<8x64xf32>
    %525 = vector.extract_strided_slice %515 {offsets = [0, 0], sizes = [8, 64], strides = [1, 1]} : vector<8x96xf32> to vector<8x64xf32>
    %526 = arith.addf %524, %525 : vector<8x64xf32>
    %527 = arith.negf %526 : vector<8x64xf32>
    %528 = math.exp %527 : vector<8x64xf32>
    %cst_62 = arith.constant 1.000000e+00 : f32
    %529 = vector.broadcast %cst_62 : f32 to vector<8x64xf32>
    %530 = arith.addf %529, %528 : vector<8x64xf32>
    %531 = arith.divf %529, %530 : vector<8x64xf32>
    %532 = vector.extract_strided_slice %511 {offsets = [0, 64], sizes = [8, 32], strides = [1, 1]} : vector<8x96xf32> to vector<8x32xf32>
    %533 = vector.extract_strided_slice %523 {offsets = [0, 0], sizes = [8, 32], strides = [1, 1]} : vector<8x64xf32> to vector<8x32xf32>
    %534 = vector.extract_strided_slice %514 {offsets = [0, 64], sizes = [8, 32], strides = [1, 1]} : vector<8x96xf32> to vector<8x32xf32>
    %535 = arith.mulf %533, %534 : vector<8x32xf32>
    %536 = arith.addf %532, %535 : vector<8x32xf32>
    %537 = math.tanh %536 : vector<8x32xf32>
    %538 = vector.extract_strided_slice %513 {offsets = [0, 64], sizes = [8, 32], strides = [1, 1]} : vector<8x96xf32> to vector<8x32xf32>
    %539 = vector.extract_strided_slice %531 {offsets = [0, 0], sizes = [8, 32], strides = [1, 1]} : vector<8x64xf32> to vector<8x32xf32>
    %540 = vector.extract_strided_slice %515 {offsets = [0, 64], sizes = [8, 32], strides = [1, 1]} : vector<8x96xf32> to vector<8x32xf32>
    %541 = arith.mulf %539, %540 : vector<8x32xf32>
    %542 = arith.addf %538, %541 : vector<8x32xf32>
    %543 = math.tanh %542 : vector<8x32xf32>
    %544 = vector.extract_strided_slice %523 {offsets = [0, 32], sizes = [8, 32], strides = [1, 1]} : vector<8x64xf32> to vector<8x32xf32>
    %545 = vector.extract_strided_slice %531 {offsets = [0, 32], sizes = [8, 32], strides = [1, 1]} : vector<8x64xf32> to vector<8x32xf32>
    %cst_63 = arith.constant 1.000000e+00 : f32
    %546 = vector.broadcast %cst_63 : f32 to vector<8x32xf32>
    %547 = arith.subf %546, %544 : vector<8x32xf32>
    %548 = arith.mulf %547, %537 : vector<8x32xf32>
    %549 = arith.mulf %544, %500 : vector<8x32xf32>
    %550 = arith.addf %548, %549 : vector<8x32xf32>
    %cst_64 = arith.constant 1.000000e+00 : f32
    %551 = vector.broadcast %cst_64 : f32 to vector<8x32xf32>
    %552 = arith.subf %551, %545 : vector<8x32xf32>
    %553 = arith.mulf %552, %543 : vector<8x32xf32>
    %554 = arith.mulf %545, %505 : vector<8x32xf32>
    %555 = arith.addf %553, %554 : vector<8x32xf32>
    %556 = tpu.concatenate %550, %555 in 1 : vector<8x32xf32>, vector<8x32xf32> -> vector<8x64xf32>
    %557 = arith.truncf %556 : vector<8x64xf32> to vector<8x64xbf16>
    %cst_65 = arith.constant dense<0.000000e+00> : vector<8x256xf32>
    %558 = tpu.matmul %557, %443, %cst_65 {dimension_numbers = #tpu.dot_dimension_numbers<[1], [0], [0], [1], [0, 0, 1, 1], [], []>} : vector<8x64xbf16>, vector<64x256xbf16>, vector<8x256xf32> -> vector<8x256xf32>
    %559 = arith.addf %558, %448 : vector<8x256xf32>
    %560 = vector.extract_strided_slice %453 {offsets = [2, 0, 0], sizes = [1, 8, 96], strides = [1, 1, 1]} : vector<8x8x256xf32> to vector<1x8x96xf32>
    %561 = vector.shape_cast %560 : vector<1x8x96xf32> to vector<8x96xf32>
    %562 = vector.extract_strided_slice %453 {offsets = [5, 0, 128], sizes = [1, 8, 96], strides = [1, 1, 1]} : vector<8x8x256xf32> to vector<1x8x96xf32>
    %563 = vector.shape_cast %562 : vector<1x8x96xf32> to vector<8x96xf32>
    %564 = vector.extract_strided_slice %559 {offsets = [0, 0], sizes = [8, 96], strides = [1, 1]} : vector<8x256xf32> to vector<8x96xf32>
    %565 = vector.extract_strided_slice %559 {offsets = [0, 128], sizes = [8, 96], strides = [1, 1]} : vector<8x256xf32> to vector<8x96xf32>
    %566 = vector.extract_strided_slice %561 {offsets = [0, 0], sizes = [8, 64], strides = [1, 1]} : vector<8x96xf32> to vector<8x64xf32>
    %567 = vector.extract_strided_slice %564 {offsets = [0, 0], sizes = [8, 64], strides = [1, 1]} : vector<8x96xf32> to vector<8x64xf32>
    %568 = arith.addf %566, %567 : vector<8x64xf32>
    %569 = arith.negf %568 : vector<8x64xf32>
    %570 = math.exp %569 : vector<8x64xf32>
    %cst_66 = arith.constant 1.000000e+00 : f32
    %571 = vector.broadcast %cst_66 : f32 to vector<8x64xf32>
    %572 = arith.addf %571, %570 : vector<8x64xf32>
    %573 = arith.divf %571, %572 : vector<8x64xf32>
    %574 = vector.extract_strided_slice %563 {offsets = [0, 0], sizes = [8, 64], strides = [1, 1]} : vector<8x96xf32> to vector<8x64xf32>
    %575 = vector.extract_strided_slice %565 {offsets = [0, 0], sizes = [8, 64], strides = [1, 1]} : vector<8x96xf32> to vector<8x64xf32>
    %576 = arith.addf %574, %575 : vector<8x64xf32>
    %577 = arith.negf %576 : vector<8x64xf32>
    %578 = math.exp %577 : vector<8x64xf32>
    %cst_67 = arith.constant 1.000000e+00 : f32
    %579 = vector.broadcast %cst_67 : f32 to vector<8x64xf32>
    %580 = arith.addf %579, %578 : vector<8x64xf32>
    %581 = arith.divf %579, %580 : vector<8x64xf32>
    %582 = vector.extract_strided_slice %561 {offsets = [0, 64], sizes = [8, 32], strides = [1, 1]} : vector<8x96xf32> to vector<8x32xf32>
    %583 = vector.extract_strided_slice %573 {offsets = [0, 0], sizes = [8, 32], strides = [1, 1]} : vector<8x64xf32> to vector<8x32xf32>
    %584 = vector.extract_strided_slice %564 {offsets = [0, 64], sizes = [8, 32], strides = [1, 1]} : vector<8x96xf32> to vector<8x32xf32>
    %585 = arith.mulf %583, %584 : vector<8x32xf32>
    %586 = arith.addf %582, %585 : vector<8x32xf32>
    %587 = math.tanh %586 : vector<8x32xf32>
    %588 = vector.extract_strided_slice %563 {offsets = [0, 64], sizes = [8, 32], strides = [1, 1]} : vector<8x96xf32> to vector<8x32xf32>
    %589 = vector.extract_strided_slice %581 {offsets = [0, 0], sizes = [8, 32], strides = [1, 1]} : vector<8x64xf32> to vector<8x32xf32>
    %590 = vector.extract_strided_slice %565 {offsets = [0, 64], sizes = [8, 32], strides = [1, 1]} : vector<8x96xf32> to vector<8x32xf32>
    %591 = arith.mulf %589, %590 : vector<8x32xf32>
    %592 = arith.addf %588, %591 : vector<8x32xf32>
    %593 = math.tanh %592 : vector<8x32xf32>
    %594 = vector.extract_strided_slice %573 {offsets = [0, 32], sizes = [8, 32], strides = [1, 1]} : vector<8x64xf32> to vector<8x32xf32>
    %595 = vector.extract_strided_slice %581 {offsets = [0, 32], sizes = [8, 32], strides = [1, 1]} : vector<8x64xf32> to vector<8x32xf32>
    %cst_68 = arith.constant 1.000000e+00 : f32
    %596 = vector.broadcast %cst_68 : f32 to vector<8x32xf32>
    %597 = arith.subf %596, %594 : vector<8x32xf32>
    %598 = arith.mulf %597, %587 : vector<8x32xf32>
    %599 = arith.mulf %594, %550 : vector<8x32xf32>
    %600 = arith.addf %598, %599 : vector<8x32xf32>
    %cst_69 = arith.constant 1.000000e+00 : f32
    %601 = vector.broadcast %cst_69 : f32 to vector<8x32xf32>
    %602 = arith.subf %601, %595 : vector<8x32xf32>
    %603 = arith.mulf %602, %593 : vector<8x32xf32>
    %604 = arith.mulf %595, %555 : vector<8x32xf32>
    %605 = arith.addf %603, %604 : vector<8x32xf32>
    %606 = tpu.concatenate %600, %605 in 1 : vector<8x32xf32>, vector<8x32xf32> -> vector<8x64xf32>
    %607 = arith.truncf %606 : vector<8x64xf32> to vector<8x64xbf16>
    %cst_70 = arith.constant dense<0.000000e+00> : vector<8x256xf32>
    %608 = tpu.matmul %607, %443, %cst_70 {dimension_numbers = #tpu.dot_dimension_numbers<[1], [0], [0], [1], [0, 0, 1, 1], [], []>} : vector<8x64xbf16>, vector<64x256xbf16>, vector<8x256xf32> -> vector<8x256xf32>
    %609 = arith.addf %608, %448 : vector<8x256xf32>
    %610 = vector.extract_strided_slice %453 {offsets = [3, 0, 0], sizes = [1, 8, 96], strides = [1, 1, 1]} : vector<8x8x256xf32> to vector<1x8x96xf32>
    %611 = vector.shape_cast %610 : vector<1x8x96xf32> to vector<8x96xf32>
    %612 = vector.extract_strided_slice %453 {offsets = [4, 0, 128], sizes = [1, 8, 96], strides = [1, 1, 1]} : vector<8x8x256xf32> to vector<1x8x96xf32>
    %613 = vector.shape_cast %612 : vector<1x8x96xf32> to vector<8x96xf32>
    %614 = vector.extract_strided_slice %609 {offsets = [0, 0], sizes = [8, 96], strides = [1, 1]} : vector<8x256xf32> to vector<8x96xf32>
    %615 = vector.extract_strided_slice %609 {offsets = [0, 128], sizes = [8, 96], strides = [1, 1]} : vector<8x256xf32> to vector<8x96xf32>
    %616 = vector.extract_strided_slice %611 {offsets = [0, 0], sizes = [8, 64], strides = [1, 1]} : vector<8x96xf32> to vector<8x64xf32>
    %617 = vector.extract_strided_slice %614 {offsets = [0, 0], sizes = [8, 64], strides = [1, 1]} : vector<8x96xf32> to vector<8x64xf32>
    %618 = arith.addf %616, %617 : vector<8x64xf32>
    %619 = arith.negf %618 : vector<8x64xf32>
    %620 = math.exp %619 : vector<8x64xf32>
    %cst_71 = arith.constant 1.000000e+00 : f32
    %621 = vector.broadcast %cst_71 : f32 to vector<8x64xf32>
    %622 = arith.addf %621, %620 : vector<8x64xf32>
    %623 = arith.divf %621, %622 : vector<8x64xf32>
    %624 = vector.extract_strided_slice %613 {offsets = [0, 0], sizes = [8, 64], strides = [1, 1]} : vector<8x96xf32> to vector<8x64xf32>
    %625 = vector.extract_strided_slice %615 {offsets = [0, 0], sizes = [8, 64], strides = [1, 1]} : vector<8x96xf32> to vector<8x64xf32>
    %626 = arith.addf %624, %625 : vector<8x64xf32>
    %627 = arith.negf %626 : vector<8x64xf32>
    %628 = math.exp %627 : vector<8x64xf32>
    %cst_72 = arith.constant 1.000000e+00 : f32
    %629 = vector.broadcast %cst_72 : f32 to vector<8x64xf32>
    %630 = arith.addf %629, %628 : vector<8x64xf32>
    %631 = arith.divf %629, %630 : vector<8x64xf32>
    %632 = vector.extract_strided_slice %611 {offsets = [0, 64], sizes = [8, 32], strides = [1, 1]} : vector<8x96xf32> to vector<8x32xf32>
    %633 = vector.extract_strided_slice %623 {offsets = [0, 0], sizes = [8, 32], strides = [1, 1]} : vector<8x64xf32> to vector<8x32xf32>
    %634 = vector.extract_strided_slice %614 {offsets = [0, 64], sizes = [8, 32], strides = [1, 1]} : vector<8x96xf32> to vector<8x32xf32>
    %635 = arith.mulf %633, %634 : vector<8x32xf32>
    %636 = arith.addf %632, %635 : vector<8x32xf32>
    %637 = math.tanh %636 : vector<8x32xf32>
    %638 = vector.extract_strided_slice %613 {offsets = [0, 64], sizes = [8, 32], strides = [1, 1]} : vector<8x96xf32> to vector<8x32xf32>
    %639 = vector.extract_strided_slice %631 {offsets = [0, 0], sizes = [8, 32], strides = [1, 1]} : vector<8x64xf32> to vector<8x32xf32>
    %640 = vector.extract_strided_slice %615 {offsets = [0, 64], sizes = [8, 32], strides = [1, 1]} : vector<8x96xf32> to vector<8x32xf32>
    %641 = arith.mulf %639, %640 : vector<8x32xf32>
    %642 = arith.addf %638, %641 : vector<8x32xf32>
    %643 = math.tanh %642 : vector<8x32xf32>
    %644 = vector.extract_strided_slice %623 {offsets = [0, 32], sizes = [8, 32], strides = [1, 1]} : vector<8x64xf32> to vector<8x32xf32>
    %645 = vector.extract_strided_slice %631 {offsets = [0, 32], sizes = [8, 32], strides = [1, 1]} : vector<8x64xf32> to vector<8x32xf32>
    %cst_73 = arith.constant 1.000000e+00 : f32
    %646 = vector.broadcast %cst_73 : f32 to vector<8x32xf32>
    %647 = arith.subf %646, %644 : vector<8x32xf32>
    %648 = arith.mulf %647, %637 : vector<8x32xf32>
    %649 = arith.mulf %644, %600 : vector<8x32xf32>
    %650 = arith.addf %648, %649 : vector<8x32xf32>
    %cst_74 = arith.constant 1.000000e+00 : f32
    %651 = vector.broadcast %cst_74 : f32 to vector<8x32xf32>
    %652 = arith.subf %651, %645 : vector<8x32xf32>
    %653 = arith.mulf %652, %643 : vector<8x32xf32>
    %654 = arith.mulf %645, %605 : vector<8x32xf32>
    %655 = arith.addf %653, %654 : vector<8x32xf32>
    %656 = tpu.concatenate %650, %655 in 1 : vector<8x32xf32>, vector<8x32xf32> -> vector<8x64xf32>
    %657 = arith.truncf %656 : vector<8x64xf32> to vector<8x64xbf16>
    %cst_75 = arith.constant dense<0.000000e+00> : vector<8x256xf32>
    %658 = tpu.matmul %657, %443, %cst_75 {dimension_numbers = #tpu.dot_dimension_numbers<[1], [0], [0], [1], [0, 0, 1, 1], [], []>} : vector<8x64xbf16>, vector<64x256xbf16>, vector<8x256xf32> -> vector<8x256xf32>
    %659 = arith.addf %658, %448 : vector<8x256xf32>
    %660 = vector.extract_strided_slice %453 {offsets = [4, 0, 0], sizes = [1, 8, 96], strides = [1, 1, 1]} : vector<8x8x256xf32> to vector<1x8x96xf32>
    %661 = vector.shape_cast %660 : vector<1x8x96xf32> to vector<8x96xf32>
    %662 = vector.extract_strided_slice %453 {offsets = [3, 0, 128], sizes = [1, 8, 96], strides = [1, 1, 1]} : vector<8x8x256xf32> to vector<1x8x96xf32>
    %663 = vector.shape_cast %662 : vector<1x8x96xf32> to vector<8x96xf32>
    %664 = vector.extract_strided_slice %659 {offsets = [0, 0], sizes = [8, 96], strides = [1, 1]} : vector<8x256xf32> to vector<8x96xf32>
    %665 = vector.extract_strided_slice %659 {offsets = [0, 128], sizes = [8, 96], strides = [1, 1]} : vector<8x256xf32> to vector<8x96xf32>
    %666 = vector.extract_strided_slice %661 {offsets = [0, 0], sizes = [8, 64], strides = [1, 1]} : vector<8x96xf32> to vector<8x64xf32>
    %667 = vector.extract_strided_slice %664 {offsets = [0, 0], sizes = [8, 64], strides = [1, 1]} : vector<8x96xf32> to vector<8x64xf32>
    %668 = arith.addf %666, %667 : vector<8x64xf32>
    %669 = arith.negf %668 : vector<8x64xf32>
    %670 = math.exp %669 : vector<8x64xf32>
    %cst_76 = arith.constant 1.000000e+00 : f32
    %671 = vector.broadcast %cst_76 : f32 to vector<8x64xf32>
    %672 = arith.addf %671, %670 : vector<8x64xf32>
    %673 = arith.divf %671, %672 : vector<8x64xf32>
    %674 = vector.extract_strided_slice %663 {offsets = [0, 0], sizes = [8, 64], strides = [1, 1]} : vector<8x96xf32> to vector<8x64xf32>
    %675 = vector.extract_strided_slice %665 {offsets = [0, 0], sizes = [8, 64], strides = [1, 1]} : vector<8x96xf32> to vector<8x64xf32>
    %676 = arith.addf %674, %675 : vector<8x64xf32>
    %677 = arith.negf %676 : vector<8x64xf32>
    %678 = math.exp %677 : vector<8x64xf32>
    %cst_77 = arith.constant 1.000000e+00 : f32
    %679 = vector.broadcast %cst_77 : f32 to vector<8x64xf32>
    %680 = arith.addf %679, %678 : vector<8x64xf32>
    %681 = arith.divf %679, %680 : vector<8x64xf32>
    %682 = vector.extract_strided_slice %661 {offsets = [0, 64], sizes = [8, 32], strides = [1, 1]} : vector<8x96xf32> to vector<8x32xf32>
    %683 = vector.extract_strided_slice %673 {offsets = [0, 0], sizes = [8, 32], strides = [1, 1]} : vector<8x64xf32> to vector<8x32xf32>
    %684 = vector.extract_strided_slice %664 {offsets = [0, 64], sizes = [8, 32], strides = [1, 1]} : vector<8x96xf32> to vector<8x32xf32>
    %685 = arith.mulf %683, %684 : vector<8x32xf32>
    %686 = arith.addf %682, %685 : vector<8x32xf32>
    %687 = math.tanh %686 : vector<8x32xf32>
    %688 = vector.extract_strided_slice %663 {offsets = [0, 64], sizes = [8, 32], strides = [1, 1]} : vector<8x96xf32> to vector<8x32xf32>
    %689 = vector.extract_strided_slice %681 {offsets = [0, 0], sizes = [8, 32], strides = [1, 1]} : vector<8x64xf32> to vector<8x32xf32>
    %690 = vector.extract_strided_slice %665 {offsets = [0, 64], sizes = [8, 32], strides = [1, 1]} : vector<8x96xf32> to vector<8x32xf32>
    %691 = arith.mulf %689, %690 : vector<8x32xf32>
    %692 = arith.addf %688, %691 : vector<8x32xf32>
    %693 = math.tanh %692 : vector<8x32xf32>
    %694 = vector.extract_strided_slice %673 {offsets = [0, 32], sizes = [8, 32], strides = [1, 1]} : vector<8x64xf32> to vector<8x32xf32>
    %695 = vector.extract_strided_slice %681 {offsets = [0, 32], sizes = [8, 32], strides = [1, 1]} : vector<8x64xf32> to vector<8x32xf32>
    %cst_78 = arith.constant 1.000000e+00 : f32
    %696 = vector.broadcast %cst_78 : f32 to vector<8x32xf32>
    %697 = arith.subf %696, %694 : vector<8x32xf32>
    %698 = arith.mulf %697, %687 : vector<8x32xf32>
    %699 = arith.mulf %694, %650 : vector<8x32xf32>
    %700 = arith.addf %698, %699 : vector<8x32xf32>
    %cst_79 = arith.constant 1.000000e+00 : f32
    %701 = vector.broadcast %cst_79 : f32 to vector<8x32xf32>
    %702 = arith.subf %701, %695 : vector<8x32xf32>
    %703 = arith.mulf %702, %693 : vector<8x32xf32>
    %704 = arith.mulf %695, %655 : vector<8x32xf32>
    %705 = arith.addf %703, %704 : vector<8x32xf32>
    %706 = tpu.concatenate %700, %705 in 1 : vector<8x32xf32>, vector<8x32xf32> -> vector<8x64xf32>
    %707 = arith.truncf %706 : vector<8x64xf32> to vector<8x64xbf16>
    %cst_80 = arith.constant dense<0.000000e+00> : vector<8x256xf32>
    %708 = tpu.matmul %707, %443, %cst_80 {dimension_numbers = #tpu.dot_dimension_numbers<[1], [0], [0], [1], [0, 0, 1, 1], [], []>} : vector<8x64xbf16>, vector<64x256xbf16>, vector<8x256xf32> -> vector<8x256xf32>
    %709 = arith.addf %708, %448 : vector<8x256xf32>
    %710 = vector.extract_strided_slice %453 {offsets = [5, 0, 0], sizes = [1, 8, 96], strides = [1, 1, 1]} : vector<8x8x256xf32> to vector<1x8x96xf32>
    %711 = vector.shape_cast %710 : vector<1x8x96xf32> to vector<8x96xf32>
    %712 = vector.extract_strided_slice %453 {offsets = [2, 0, 128], sizes = [1, 8, 96], strides = [1, 1, 1]} : vector<8x8x256xf32> to vector<1x8x96xf32>
    %713 = vector.shape_cast %712 : vector<1x8x96xf32> to vector<8x96xf32>
    %714 = vector.extract_strided_slice %709 {offsets = [0, 0], sizes = [8, 96], strides = [1, 1]} : vector<8x256xf32> to vector<8x96xf32>
    %715 = vector.extract_strided_slice %709 {offsets = [0, 128], sizes = [8, 96], strides = [1, 1]} : vector<8x256xf32> to vector<8x96xf32>
    %716 = vector.extract_strided_slice %711 {offsets = [0, 0], sizes = [8, 64], strides = [1, 1]} : vector<8x96xf32> to vector<8x64xf32>
    %717 = vector.extract_strided_slice %714 {offsets = [0, 0], sizes = [8, 64], strides = [1, 1]} : vector<8x96xf32> to vector<8x64xf32>
    %718 = arith.addf %716, %717 : vector<8x64xf32>
    %719 = arith.negf %718 : vector<8x64xf32>
    %720 = math.exp %719 : vector<8x64xf32>
    %cst_81 = arith.constant 1.000000e+00 : f32
    %721 = vector.broadcast %cst_81 : f32 to vector<8x64xf32>
    %722 = arith.addf %721, %720 : vector<8x64xf32>
    %723 = arith.divf %721, %722 : vector<8x64xf32>
    %724 = vector.extract_strided_slice %713 {offsets = [0, 0], sizes = [8, 64], strides = [1, 1]} : vector<8x96xf32> to vector<8x64xf32>
    %725 = vector.extract_strided_slice %715 {offsets = [0, 0], sizes = [8, 64], strides = [1, 1]} : vector<8x96xf32> to vector<8x64xf32>
    %726 = arith.addf %724, %725 : vector<8x64xf32>
    %727 = arith.negf %726 : vector<8x64xf32>
    %728 = math.exp %727 : vector<8x64xf32>
    %cst_82 = arith.constant 1.000000e+00 : f32
    %729 = vector.broadcast %cst_82 : f32 to vector<8x64xf32>
    %730 = arith.addf %729, %728 : vector<8x64xf32>
    %731 = arith.divf %729, %730 : vector<8x64xf32>
    %732 = vector.extract_strided_slice %711 {offsets = [0, 64], sizes = [8, 32], strides = [1, 1]} : vector<8x96xf32> to vector<8x32xf32>
    %733 = vector.extract_strided_slice %723 {offsets = [0, 0], sizes = [8, 32], strides = [1, 1]} : vector<8x64xf32> to vector<8x32xf32>
    %734 = vector.extract_strided_slice %714 {offsets = [0, 64], sizes = [8, 32], strides = [1, 1]} : vector<8x96xf32> to vector<8x32xf32>
    %735 = arith.mulf %733, %734 : vector<8x32xf32>
    %736 = arith.addf %732, %735 : vector<8x32xf32>
    %737 = math.tanh %736 : vector<8x32xf32>
    %738 = vector.extract_strided_slice %713 {offsets = [0, 64], sizes = [8, 32], strides = [1, 1]} : vector<8x96xf32> to vector<8x32xf32>
    %739 = vector.extract_strided_slice %731 {offsets = [0, 0], sizes = [8, 32], strides = [1, 1]} : vector<8x64xf32> to vector<8x32xf32>
    %740 = vector.extract_strided_slice %715 {offsets = [0, 64], sizes = [8, 32], strides = [1, 1]} : vector<8x96xf32> to vector<8x32xf32>
    %741 = arith.mulf %739, %740 : vector<8x32xf32>
    %742 = arith.addf %738, %741 : vector<8x32xf32>
    %743 = math.tanh %742 : vector<8x32xf32>
    %744 = vector.extract_strided_slice %723 {offsets = [0, 32], sizes = [8, 32], strides = [1, 1]} : vector<8x64xf32> to vector<8x32xf32>
    %745 = vector.extract_strided_slice %731 {offsets = [0, 32], sizes = [8, 32], strides = [1, 1]} : vector<8x64xf32> to vector<8x32xf32>
    %cst_83 = arith.constant 1.000000e+00 : f32
    %746 = vector.broadcast %cst_83 : f32 to vector<8x32xf32>
    %747 = arith.subf %746, %744 : vector<8x32xf32>
    %748 = arith.mulf %747, %737 : vector<8x32xf32>
    %749 = arith.mulf %744, %700 : vector<8x32xf32>
    %750 = arith.addf %748, %749 : vector<8x32xf32>
    %cst_84 = arith.constant 1.000000e+00 : f32
    %751 = vector.broadcast %cst_84 : f32 to vector<8x32xf32>
    %752 = arith.subf %751, %745 : vector<8x32xf32>
    %753 = arith.mulf %752, %743 : vector<8x32xf32>
    %754 = arith.mulf %745, %705 : vector<8x32xf32>
    %755 = arith.addf %753, %754 : vector<8x32xf32>
    %756 = tpu.concatenate %750, %755 in 1 : vector<8x32xf32>, vector<8x32xf32> -> vector<8x64xf32>
    %757 = arith.truncf %756 : vector<8x64xf32> to vector<8x64xbf16>
    %cst_85 = arith.constant dense<0.000000e+00> : vector<8x256xf32>
    %758 = tpu.matmul %757, %443, %cst_85 {dimension_numbers = #tpu.dot_dimension_numbers<[1], [0], [0], [1], [0, 0, 1, 1], [], []>} : vector<8x64xbf16>, vector<64x256xbf16>, vector<8x256xf32> -> vector<8x256xf32>
    %759 = arith.addf %758, %448 : vector<8x256xf32>
    %760 = vector.extract_strided_slice %453 {offsets = [6, 0, 0], sizes = [1, 8, 96], strides = [1, 1, 1]} : vector<8x8x256xf32> to vector<1x8x96xf32>
    %761 = vector.shape_cast %760 : vector<1x8x96xf32> to vector<8x96xf32>
    %762 = vector.extract_strided_slice %453 {offsets = [1, 0, 128], sizes = [1, 8, 96], strides = [1, 1, 1]} : vector<8x8x256xf32> to vector<1x8x96xf32>
    %763 = vector.shape_cast %762 : vector<1x8x96xf32> to vector<8x96xf32>
    %764 = vector.extract_strided_slice %759 {offsets = [0, 0], sizes = [8, 96], strides = [1, 1]} : vector<8x256xf32> to vector<8x96xf32>
    %765 = vector.extract_strided_slice %759 {offsets = [0, 128], sizes = [8, 96], strides = [1, 1]} : vector<8x256xf32> to vector<8x96xf32>
    %766 = vector.extract_strided_slice %761 {offsets = [0, 0], sizes = [8, 64], strides = [1, 1]} : vector<8x96xf32> to vector<8x64xf32>
    %767 = vector.extract_strided_slice %764 {offsets = [0, 0], sizes = [8, 64], strides = [1, 1]} : vector<8x96xf32> to vector<8x64xf32>
    %768 = arith.addf %766, %767 : vector<8x64xf32>
    %769 = arith.negf %768 : vector<8x64xf32>
    %770 = math.exp %769 : vector<8x64xf32>
    %cst_86 = arith.constant 1.000000e+00 : f32
    %771 = vector.broadcast %cst_86 : f32 to vector<8x64xf32>
    %772 = arith.addf %771, %770 : vector<8x64xf32>
    %773 = arith.divf %771, %772 : vector<8x64xf32>
    %774 = vector.extract_strided_slice %763 {offsets = [0, 0], sizes = [8, 64], strides = [1, 1]} : vector<8x96xf32> to vector<8x64xf32>
    %775 = vector.extract_strided_slice %765 {offsets = [0, 0], sizes = [8, 64], strides = [1, 1]} : vector<8x96xf32> to vector<8x64xf32>
    %776 = arith.addf %774, %775 : vector<8x64xf32>
    %777 = arith.negf %776 : vector<8x64xf32>
    %778 = math.exp %777 : vector<8x64xf32>
    %cst_87 = arith.constant 1.000000e+00 : f32
    %779 = vector.broadcast %cst_87 : f32 to vector<8x64xf32>
    %780 = arith.addf %779, %778 : vector<8x64xf32>
    %781 = arith.divf %779, %780 : vector<8x64xf32>
    %782 = vector.extract_strided_slice %761 {offsets = [0, 64], sizes = [8, 32], strides = [1, 1]} : vector<8x96xf32> to vector<8x32xf32>
    %783 = vector.extract_strided_slice %773 {offsets = [0, 0], sizes = [8, 32], strides = [1, 1]} : vector<8x64xf32> to vector<8x32xf32>
    %784 = vector.extract_strided_slice %764 {offsets = [0, 64], sizes = [8, 32], strides = [1, 1]} : vector<8x96xf32> to vector<8x32xf32>
    %785 = arith.mulf %783, %784 : vector<8x32xf32>
    %786 = arith.addf %782, %785 : vector<8x32xf32>
    %787 = math.tanh %786 : vector<8x32xf32>
    %788 = vector.extract_strided_slice %763 {offsets = [0, 64], sizes = [8, 32], strides = [1, 1]} : vector<8x96xf32> to vector<8x32xf32>
    %789 = vector.extract_strided_slice %781 {offsets = [0, 0], sizes = [8, 32], strides = [1, 1]} : vector<8x64xf32> to vector<8x32xf32>
    %790 = vector.extract_strided_slice %765 {offsets = [0, 64], sizes = [8, 32], strides = [1, 1]} : vector<8x96xf32> to vector<8x32xf32>
    %791 = arith.mulf %789, %790 : vector<8x32xf32>
    %792 = arith.addf %788, %791 : vector<8x32xf32>
    %793 = math.tanh %792 : vector<8x32xf32>
    %794 = vector.extract_strided_slice %773 {offsets = [0, 32], sizes = [8, 32], strides = [1, 1]} : vector<8x64xf32> to vector<8x32xf32>
    %795 = vector.extract_strided_slice %781 {offsets = [0, 32], sizes = [8, 32], strides = [1, 1]} : vector<8x64xf32> to vector<8x32xf32>
    %cst_88 = arith.constant 1.000000e+00 : f32
    %796 = vector.broadcast %cst_88 : f32 to vector<8x32xf32>
    %797 = arith.subf %796, %794 : vector<8x32xf32>
    %798 = arith.mulf %797, %787 : vector<8x32xf32>
    %799 = arith.mulf %794, %750 : vector<8x32xf32>
    %800 = arith.addf %798, %799 : vector<8x32xf32>
    %cst_89 = arith.constant 1.000000e+00 : f32
    %801 = vector.broadcast %cst_89 : f32 to vector<8x32xf32>
    %802 = arith.subf %801, %795 : vector<8x32xf32>
    %803 = arith.mulf %802, %793 : vector<8x32xf32>
    %804 = arith.mulf %795, %755 : vector<8x32xf32>
    %805 = arith.addf %803, %804 : vector<8x32xf32>
    %806 = tpu.concatenate %800, %805 in 1 : vector<8x32xf32>, vector<8x32xf32> -> vector<8x64xf32>
    %807 = arith.truncf %806 : vector<8x64xf32> to vector<8x64xbf16>
    %cst_90 = arith.constant dense<0.000000e+00> : vector<8x256xf32>
    %808 = tpu.matmul %807, %443, %cst_90 {dimension_numbers = #tpu.dot_dimension_numbers<[1], [0], [0], [1], [0, 0, 1, 1], [], []>} : vector<8x64xbf16>, vector<64x256xbf16>, vector<8x256xf32> -> vector<8x256xf32>
    %809 = arith.addf %808, %448 : vector<8x256xf32>
    %810 = vector.extract_strided_slice %453 {offsets = [7, 0, 0], sizes = [1, 8, 96], strides = [1, 1, 1]} : vector<8x8x256xf32> to vector<1x8x96xf32>
    %811 = vector.shape_cast %810 : vector<1x8x96xf32> to vector<8x96xf32>
    %812 = vector.extract_strided_slice %453 {offsets = [0, 0, 128], sizes = [1, 8, 96], strides = [1, 1, 1]} : vector<8x8x256xf32> to vector<1x8x96xf32>
    %813 = vector.shape_cast %812 : vector<1x8x96xf32> to vector<8x96xf32>
    %814 = vector.extract_strided_slice %809 {offsets = [0, 0], sizes = [8, 96], strides = [1, 1]} : vector<8x256xf32> to vector<8x96xf32>
    %815 = vector.extract_strided_slice %809 {offsets = [0, 128], sizes = [8, 96], strides = [1, 1]} : vector<8x256xf32> to vector<8x96xf32>
    %816 = vector.extract_strided_slice %811 {offsets = [0, 0], sizes = [8, 64], strides = [1, 1]} : vector<8x96xf32> to vector<8x64xf32>
    %817 = vector.extract_strided_slice %814 {offsets = [0, 0], sizes = [8, 64], strides = [1, 1]} : vector<8x96xf32> to vector<8x64xf32>
    %818 = arith.addf %816, %817 : vector<8x64xf32>
    %819 = arith.negf %818 : vector<8x64xf32>
    %820 = math.exp %819 : vector<8x64xf32>
    %cst_91 = arith.constant 1.000000e+00 : f32
    %821 = vector.broadcast %cst_91 : f32 to vector<8x64xf32>
    %822 = arith.addf %821, %820 : vector<8x64xf32>
    %823 = arith.divf %821, %822 : vector<8x64xf32>
    %824 = vector.extract_strided_slice %813 {offsets = [0, 0], sizes = [8, 64], strides = [1, 1]} : vector<8x96xf32> to vector<8x64xf32>
    %825 = vector.extract_strided_slice %815 {offsets = [0, 0], sizes = [8, 64], strides = [1, 1]} : vector<8x96xf32> to vector<8x64xf32>
    %826 = arith.addf %824, %825 : vector<8x64xf32>
    %827 = arith.negf %826 : vector<8x64xf32>
    %828 = math.exp %827 : vector<8x64xf32>
    %cst_92 = arith.constant 1.000000e+00 : f32
    %829 = vector.broadcast %cst_92 : f32 to vector<8x64xf32>
    %830 = arith.addf %829, %828 : vector<8x64xf32>
    %831 = arith.divf %829, %830 : vector<8x64xf32>
    %832 = vector.extract_strided_slice %811 {offsets = [0, 64], sizes = [8, 32], strides = [1, 1]} : vector<8x96xf32> to vector<8x32xf32>
    %833 = vector.extract_strided_slice %823 {offsets = [0, 0], sizes = [8, 32], strides = [1, 1]} : vector<8x64xf32> to vector<8x32xf32>
    %834 = vector.extract_strided_slice %814 {offsets = [0, 64], sizes = [8, 32], strides = [1, 1]} : vector<8x96xf32> to vector<8x32xf32>
    %835 = arith.mulf %833, %834 : vector<8x32xf32>
    %836 = arith.addf %832, %835 : vector<8x32xf32>
    %837 = math.tanh %836 : vector<8x32xf32>
    %838 = vector.extract_strided_slice %813 {offsets = [0, 64], sizes = [8, 32], strides = [1, 1]} : vector<8x96xf32> to vector<8x32xf32>
    %839 = vector.extract_strided_slice %831 {offsets = [0, 0], sizes = [8, 32], strides = [1, 1]} : vector<8x64xf32> to vector<8x32xf32>
    %840 = vector.extract_strided_slice %815 {offsets = [0, 64], sizes = [8, 32], strides = [1, 1]} : vector<8x96xf32> to vector<8x32xf32>
    %841 = arith.mulf %839, %840 : vector<8x32xf32>
    %842 = arith.addf %838, %841 : vector<8x32xf32>
    %843 = math.tanh %842 : vector<8x32xf32>
    %844 = vector.extract_strided_slice %823 {offsets = [0, 32], sizes = [8, 32], strides = [1, 1]} : vector<8x64xf32> to vector<8x32xf32>
    %845 = vector.extract_strided_slice %831 {offsets = [0, 32], sizes = [8, 32], strides = [1, 1]} : vector<8x64xf32> to vector<8x32xf32>
    %cst_93 = arith.constant 1.000000e+00 : f32
    %846 = vector.broadcast %cst_93 : f32 to vector<8x32xf32>
    %847 = arith.subf %846, %844 : vector<8x32xf32>
    %848 = arith.mulf %847, %837 : vector<8x32xf32>
    %849 = arith.mulf %844, %800 : vector<8x32xf32>
    %850 = arith.addf %848, %849 : vector<8x32xf32>
    %cst_94 = arith.constant 1.000000e+00 : f32
    %851 = vector.broadcast %cst_94 : f32 to vector<8x32xf32>
    %852 = arith.subf %851, %845 : vector<8x32xf32>
    %853 = arith.mulf %852, %843 : vector<8x32xf32>
    %854 = arith.mulf %845, %805 : vector<8x32xf32>
    %855 = arith.addf %853, %854 : vector<8x32xf32>
    %856 = vector.shape_cast %500 : vector<8x32xf32> to vector<1x8x32xf32>
    %857 = vector.shape_cast %550 : vector<8x32xf32> to vector<1x8x32xf32>
    %858 = vector.shape_cast %600 : vector<8x32xf32> to vector<1x8x32xf32>
    %859 = vector.shape_cast %650 : vector<8x32xf32> to vector<1x8x32xf32>
    %860 = vector.shape_cast %700 : vector<8x32xf32> to vector<1x8x32xf32>
    %861 = vector.shape_cast %750 : vector<8x32xf32> to vector<1x8x32xf32>
    %862 = vector.shape_cast %800 : vector<8x32xf32> to vector<1x8x32xf32>
    %863 = vector.shape_cast %850 : vector<8x32xf32> to vector<1x8x32xf32>
    %864 = tpu.concatenate %856, %857, %858, %859, %860, %861, %862, %863 in 0 : vector<1x8x32xf32>, vector<1x8x32xf32>, vector<1x8x32xf32>, vector<1x8x32xf32>, vector<1x8x32xf32>, vector<1x8x32xf32>, vector<1x8x32xf32>, vector<1x8x32xf32> -> vector<8x8x32xf32>
    %865 = vector.shape_cast %855 : vector<8x32xf32> to vector<1x8x32xf32>
    %866 = vector.shape_cast %805 : vector<8x32xf32> to vector<1x8x32xf32>
    %867 = vector.shape_cast %755 : vector<8x32xf32> to vector<1x8x32xf32>
    %868 = vector.shape_cast %705 : vector<8x32xf32> to vector<1x8x32xf32>
    %869 = vector.shape_cast %655 : vector<8x32xf32> to vector<1x8x32xf32>
    %870 = vector.shape_cast %605 : vector<8x32xf32> to vector<1x8x32xf32>
    %871 = vector.shape_cast %555 : vector<8x32xf32> to vector<1x8x32xf32>
    %872 = vector.shape_cast %505 : vector<8x32xf32> to vector<1x8x32xf32>
    %873 = tpu.concatenate %865, %866, %867, %868, %869, %870, %871, %872 in 0 : vector<1x8x32xf32>, vector<1x8x32xf32>, vector<1x8x32xf32>, vector<1x8x32xf32>, vector<1x8x32xf32>, vector<1x8x32xf32>, vector<1x8x32xf32>, vector<1x8x32xf32> -> vector<8x8x32xf32>
    %874 = tpu.concatenate %864, %873 in 2 : vector<8x8x32xf32>, vector<8x8x32xf32> -> vector<8x8x64xf32>
    %875 = math.tanh %874 : vector<8x8x64xf32>
    %c0_95 = arith.constant 0 : index
    %c0_96 = arith.constant 0 : index
    %876 = vector.load %arg6[%c0_95, %c0_96] : memref<1x64xf32, #tpu.memory_space<vmem>>, vector<1x64xf32>
    %877 = vector.shape_cast %876 : vector<1x64xf32> to vector<1x1x64xf32>
    %878 = vector.broadcast %877 : vector<1x1x64xf32> to vector<8x8x64xf32>
    %879 = arith.mulf %875, %878 : vector<8x8x64xf32>
    %cst_97 = arith.constant dense<0.000000e+00> : vector<8x8xf32>
    %880 = vector.multi_reduction <add>, %879, %cst_97 [2] : vector<8x8x64xf32> to vector<8x8xf32>
    %881 = tpu.transpose %880, [1, 0] : vector<8x8xf32> -> vector<8x8xf32>
    %cst_98 = arith.constant dense<0xFF800000> : vector<8xf32>
    %882 = vector.multi_reduction <maximumf>, %881, %cst_98 [1] : vector<8x8xf32> to vector<8xf32>
    %883 = vector.shape_cast %882 : vector<8xf32> to vector<8x1xf32>
    %884 = vector.broadcast %883 : vector<8x1xf32> to vector<8x8xf32>
    %885 = arith.subf %881, %884 : vector<8x8xf32>
    %886 = math.exp %885 : vector<8x8xf32>
    %cst_99 = arith.constant dense<0.000000e+00> : vector<8xf32>
    %887 = vector.multi_reduction <add>, %886, %cst_99 [1] : vector<8x8xf32> to vector<8xf32>
    %888 = vector.shape_cast %887 : vector<8xf32> to vector<8x1xf32>
    %889 = tpu.reciprocal %888 {approx = true} : vector<8x1xf32> -> vector<8x1xf32>
    %890 = vector.broadcast %889 : vector<8x1xf32> to vector<8x8xf32>
    %891 = arith.mulf %886, %890 : vector<8x8xf32>
    %892 = tpu.transpose %891, [1, 0] : vector<8x8xf32> -> vector<8x8xf32>
    %893 = vector.shape_cast %892 : vector<8x8xf32> to vector<8x8x1xf32>
    %894 = vector.broadcast %893 : vector<8x8x1xf32> to vector<8x8x64xf32>
    %895 = arith.mulf %874, %894 : vector<8x8x64xf32>
    %cst_100 = arith.constant 0.000000e+00 : f32
    %896 = vector.broadcast %cst_100 : f32 to vector<8x8x16xf32>
    %897 = arith.maximumf %0, %896 : vector<8x8x16xf32>
    %cst_101 = arith.constant dense<0xFF800000> : vector<8x16xf32>
    %898 = vector.multi_reduction <maximumf>, %897, %cst_101 [0] : vector<8x8x16xf32> to vector<8x16xf32>
    %cst_102 = arith.constant 0.000000e+00 : f32
    %899 = vector.broadcast %cst_102 : f32 to vector<8x8x64xf32>
    %900 = arith.maximumf %895, %899 : vector<8x8x64xf32>
    %cst_103 = arith.constant dense<0xFF800000> : vector<8x64xf32>
    %901 = vector.multi_reduction <maximumf>, %900, %cst_103 [0] : vector<8x8x64xf32> to vector<8x64xf32>
    %c0_104 = arith.constant 0 : index
    %c0_105 = arith.constant 0 : index
    %902 = vector.load %arg7[%c0_104, %c0_105] : memref<80x16xf32, #tpu.memory_space<vmem>>, vector<80x16xf32>
    %903 = arith.truncf %898 : vector<8x16xf32> to vector<8x16xbf16>
    %904 = vector.extract_strided_slice %902 {offsets = [0, 0], sizes = [16, 16], strides = [1, 1]} : vector<80x16xf32> to vector<16x16xf32>
    %905 = arith.truncf %904 : vector<16x16xf32> to vector<16x16xbf16>
    %cst_106 = arith.constant dense<0.000000e+00> : vector<8x16xf32>
    %906 = tpu.matmul %903, %905, %cst_106 {dimension_numbers = #tpu.dot_dimension_numbers<[1], [0], [0], [1], [0, 0, 1, 1], [], []>} : vector<8x16xbf16>, vector<16x16xbf16>, vector<8x16xf32> -> vector<8x16xf32>
    %907 = arith.truncf %901 : vector<8x64xf32> to vector<8x64xbf16>
    %908 = vector.extract_strided_slice %902 {offsets = [16, 0], sizes = [64, 16], strides = [1, 1]} : vector<80x16xf32> to vector<64x16xf32>
    %909 = arith.truncf %908 : vector<64x16xf32> to vector<64x16xbf16>
    %cst_107 = arith.constant dense<0.000000e+00> : vector<8x16xf32>
    %910 = tpu.matmul %907, %909, %cst_107 {dimension_numbers = #tpu.dot_dimension_numbers<[1], [0], [0], [1], [0, 0, 1, 1], [], []>} : vector<8x64xbf16>, vector<64x16xbf16>, vector<8x16xf32> -> vector<8x16xf32>
    %911 = arith.addf %906, %910 : vector<8x16xf32>
    %c0_108 = arith.constant 0 : index
    %c0_109 = arith.constant 0 : index
    %912 = vector.load %arg8[%c0_108, %c0_109] : memref<1x16xf32, #tpu.memory_space<vmem>>, vector<1x16xf32>
    %913 = vector.broadcast %912 : vector<1x16xf32> to vector<8x16xf32>
    %914 = arith.addf %911, %913 : vector<8x16xf32>
    %915 = arith.truncf %914 : vector<8x16xf32> to vector<8x16xbf16>
    %c0_110 = arith.constant 0 : index
    %c0_111 = arith.constant 0 : index
    %916 = vector.load %arg9[%c0_110, %c0_111] : memref<16x128xf32, #tpu.memory_space<vmem>>, vector<16x128xf32>
    %917 = arith.truncf %916 : vector<16x128xf32> to vector<16x128xbf16>
    %cst_112 = arith.constant dense<0.000000e+00> : vector<8x128xf32>
    %918 = tpu.matmul %915, %917, %cst_112 {dimension_numbers = #tpu.dot_dimension_numbers<[1], [0], [0], [1], [0, 0, 1, 1], [], []>} : vector<8x16xbf16>, vector<16x128xbf16>, vector<8x128xf32> -> vector<8x128xf32>
    %c0_113 = arith.constant 0 : index
    %c0_114 = arith.constant 0 : index
    %919 = vector.load %arg10[%c0_113, %c0_114] : memref<1x128xf32, #tpu.memory_space<vmem>>, vector<1x128xf32>
    %920 = vector.broadcast %919 : vector<1x128xf32> to vector<8x128xf32>
    %921 = arith.addf %918, %920 : vector<8x128xf32>
    %c0_115 = arith.constant 0 : index
    %c0_116 = arith.constant 0 : index
    %922 = vector.load %arg11[%c0_115, %c0_116] : memref<8x128xf32, #tpu.memory_space<vmem>>, vector<8x128xf32>
    tpu.vector_store %arg11[%c0_115, %c0_116], %921 {strides = array<i32>} : memref<8x128xf32, #tpu.memory_space<vmem>>, vector<8x128xf32>,
    return
  }
  func.func @transform_0(%arg0: i32) -> (i32, i32, i32) {
    %c0_i32 = arith.constant 0 : i32
    %c0_i32_0 = arith.constant 0 : i32
    %c0_i32_1 = arith.constant 0 : i32
    return %c0_i32, %arg0, %c0_i32_0 : i32, i32, i32
  }
  func.func @transform_1(%arg0: i32) -> (i32, i32) {
    %c0_i32 = arith.constant 0 : i32
    %c0_i32_0 = arith.constant 0 : i32
    %c0_i32_1 = arith.constant 0 : i32
    return %c0_i32, %c0_i32_0 : i32, i32
  }
  func.func @transform_2(%arg0: i32) -> (i32, i32) {
    %c0_i32 = arith.constant 0 : i32
    %c0_i32_0 = arith.constant 0 : i32
    %c0_i32_1 = arith.constant 0 : i32
    return %c0_i32, %c0_i32_0 : i32, i32
  }
  func.func @transform_3(%arg0: i32) -> (i32, i32) {
    %c0_i32 = arith.constant 0 : i32
    %c0_i32_0 = arith.constant 0 : i32
    %c0_i32_1 = arith.constant 0 : i32
    return %c0_i32, %c0_i32_0 : i32, i32
  }
  func.func @transform_4(%arg0: i32) -> (i32, i32) {
    %c0_i32 = arith.constant 0 : i32
    %c0_i32_0 = arith.constant 0 : i32
    %c0_i32_1 = arith.constant 0 : i32
    return %c0_i32, %c0_i32_0 : i32, i32
  }
  func.func @transform_5(%arg0: i32) -> (i32, i32) {
    %c0_i32 = arith.constant 0 : i32
    %c0_i32_0 = arith.constant 0 : i32
    %c0_i32_1 = arith.constant 0 : i32
    return %c0_i32, %c0_i32_0 : i32, i32
  }
  func.func @transform_6(%arg0: i32) -> (i32, i32) {
    %c0_i32 = arith.constant 0 : i32
    %c0_i32_0 = arith.constant 0 : i32
    %c0_i32_1 = arith.constant 0 : i32
    return %c0_i32, %c0_i32_0 : i32, i32
  }
  func.func @transform_7(%arg0: i32) -> (i32, i32) {
    %c0_i32 = arith.constant 0 : i32
    %c0_i32_0 = arith.constant 0 : i32
    %c0_i32_1 = arith.constant 0 : i32
    return %c0_i32, %c0_i32_0 : i32, i32
  }
  func.func @transform_8(%arg0: i32) -> (i32, i32) {
    %c0_i32 = arith.constant 0 : i32
    %c0_i32_0 = arith.constant 0 : i32
    %c0_i32_1 = arith.constant 0 : i32
    return %c0_i32, %c0_i32_0 : i32, i32
  }
  func.func @transform_9(%arg0: i32) -> (i32, i32) {
    %c0_i32 = arith.constant 0 : i32
    %c0_i32_0 = arith.constant 0 : i32
    %c0_i32_1 = arith.constant 0 : i32
    return %c0_i32, %c0_i32_0 : i32, i32
  }
  func.func @transform_10(%arg0: i32) -> (i32, i32) {
    %c0_i32 = arith.constant 0 : i32
    %c0_i32_0 = arith.constant 0 : i32
    return %arg0, %c0_i32 : i32, i32
  }
}

</mosaic_0001>

<bundles_post_ra>
// kernel: textrcnn_attn_forward.1
= control target key start
LH: loop header
LB: loop body
LE: loop exit
PB: predicated region body
PF: predicated region fallthrough
CT: control target
= control target key end

     0   :  { %15 = vsyncpa [#allocation4], 0  ;;  %s4565_s0 = inlined_call_operand.vmem [shape: f32[8,16,16], index: 0, kind: input, shape index: {}]   ;;  %s4566_s1 = inlined_call_operand.vmem [shape: f32[80,256], index: 1, kind: input, shape index: {}]   ;;  %s4567_s2 = inlined_call_operand.vmem [shape: f32[2,256], index: 2, kind: input, shape index: {}]   ;;  %s4568_s3 = inlined_call_operand.vmem [shape: f32[128,256], index: 3, kind: input, shape index: {}]   ;;  %s4569_s4 = inlined_call_operand.vmem [shape: f32[2,256], index: 4, kind: input, shape index: {}]   ;;  %s4570_s5 = inlined_call_operand.vmem [shape: f32[1,64], index: 5, kind: input, shape index: {}]   ;;  %s4571_s6 = inlined_call_operand.vmem [shape: f32[80,16], index: 6, kind: input, shape index: {}]   ;;  %s4572_s7 = inlined_call_operand.vmem [shape: f32[1,16], index: 7, kind: input, shape index: {}]   ;;  %s4573_s8 = inlined_call_operand.vmem [shape: f32[16,128], index: 8, kind: input, shape index: {}]   ;;  %s4574_s9 = inlined_call_operand.vmem [shape: f32[1,128], index: 9, kind: input, shape index: {}]   ;;  %s4575_s10 = inlined_call_operand.hbm [shape: f32[16,128], index: 10, kind: output, shape index: {}]  }
   0x1   :  { %17 = vsyncpa [#allocation4 + $0x1], 0  ;;  %s3428_s13 = smov 0   ;;  %s3430_s14 = smov 0  }
   0x2   :  { %s3432_s15 = smov 0   ;;  %s3434_s16 = smov 0  }
   0x3 LB: > { %s4576_s17 = sadd.s32 4294967295, %s3364_s16   ;;  %s2942_s18 = sadd.s32 4294967294, %s3364_s16   ;;  %s3364_s16 = sphi %s3434_s16, %s4590_s16   ;;  %s3360_s15 = sphi %s3432_s15, %s4589_s15   ;;  %s3356_s14 = sphi %s3430_s14, %s4588_s14   ;;  %s3352_s13 = sphi %s3428_s13, %s4587_s13  }
   0x4   : > { %s3451_s19 = sadd.s32 1, %s3364_s16   ;;  %s30_s20 = sadd.s32 1, %s3360_s15 }
   0x5   : > { %s27_s21 = ssub.s32 %s3364_s16, %s3451_s19  ;;  %p37_p0 = scmp.ne.s32.totalorder %s3360_s15, %s3356_s14 }
   0x6   : > { %p28_p1 = scmp.eq.s32.totalorder %s27_s21, 0  ;;  %p38_p2 = scmp.eq.s32.totalorder %s3364_s16, 0 }
   0x7   : > { %p256_p3 = scmp.eq.s32.totalorder %s4576_s17, 1  ;;  %p261_p4 = scmp.ne.s32.totalorder %s3356_s14, %s3352_s13 }
   0x8   : > { %s3464_s22 = scalar_select %p28_p1, %s3360_s15, %s30_s20  }
   0x9   : > { %p39_p5 = por %p38_p2, %p37_p0  ;;  %p3466_p6 = por %p256_p3, %p37_p0 }
   0xa   : > { %p262_p7 = scmp.eq.s32.totalorder %s2942_s18, 1  ;;  %p2944_p9 = scmp.ge.s32.totalorder %s3364_s16, 2 }
   0xc   : > { %p3470_p8 = por %p262_p7, %p261_p4  ;;  %305 = sbr.rel (%p2944_p9) target bundleno = 25 (0x19), region = 52 }
  0x11   : > { %308 = sbr.rel (!%p39_p5) target bundleno = 25 (0x19), region = 56  ;;  %s310_s25 = sand.u32 (%p39_p5), 1, %s3360_s15  }
  0x12   : > { %s2946_s26 = sshll.u32 (%p39_p5), %s3364_s16, 3  ;;  %s2945_s27 = sshll.u32 (%p39_p5), %s310_s25, 6 }
  0x13   : > { %s314_s30 = scalar_lea.vmem (%p39_p5), %s4565_s0, %s2946_s26  ;;  %s312_s11 = scalar_lea.vmem (%p39_p5), [#allocation2], %s2945_s27 }
  0x14   : > { %v357_v0 = vld [vmem:[%s314_s30] sm:$0xff] (%p39_p5)  ;;  %v359_v1 = vld [vmem:[%s314_s30 + $0x10] sm:$0xff] (%p39_p5) }
  0x15   : > { %v361_v2 = vld [vmem:[%s314_s30 + $0x20] sm:$0xff] (%p39_p5)  ;;  %358 = vst [vmem:[%s312_s11] sm:$0xff] (%p39_p5), %v357_v0  ;;  %360 = vst [vmem:[%s312_s11 + $0x8] sm:$0xff] (%p39_p5), %v359_v1  ;;  %v363_v3 = vld [vmem:[%s314_s30 + $0x30] sm:$0xff] (%p39_p5) }
  0x16   : > { %362 = vst [vmem:[%s312_s11 + $0x10] sm:$0xff] %v361_v2  ;;  %v365_v4 = vld [vmem:[%s314_s30 + $0x40] sm:$0xff]  ;;  %v367_v5 = vld [vmem:[%s314_s30 + $0x50] sm:$0xff]  ;;  %364 = vst [vmem:[%s312_s11 + $0x18] sm:$0xff] %v363_v3 }
  0x17   : > { %366 = vst [vmem:[%s312_s11 + $0x20] sm:$0xff] %v365_v4  ;;  %368 = vst [vmem:[%s312_s11 + $0x28] sm:$0xff] %v367_v5  ;;  %v369_v6 = vld [vmem:[%s314_s30 + $0x60] sm:$0xff]  ;;  %v371_v7 = vld [vmem:[%s314_s30 + $0x70] sm:$0xff] }
  0x18   : > { %370 = vst [vmem:[%s312_s11 + $0x30] sm:$0xff] %v369_v6  ;;  %372 = vst [vmem:[%s312_s11 + $0x38] sm:$0xff] %v371_v7 }
  0x19 PF: > { %p2947_p10 = scmp.ge.s32.totalorder %s3364_s16, 1  ;;  %p377_p11 = scmp.lt.s32.totalorder %s3364_s16, 3 }
  0x1b   : > { %p378_p12 = pnand %p2947_p10, %p377_p11 }
  0x1c   : > { %s3494_s27 = sand.u32 (!%p378_p12), 1, %s3356_s14   ;;  %s4577_s21 = smov (!%p378_p12), 64  }
  0x1d   : > { %381 = sbr.rel (%p378_p12) target bundleno = 12020 (0x2ef4), region = 94  ;;  %s2948_s20 = sshll.u32 (!%p378_p12), %s3494_s27, 6 }
  0x1e   : > { %s3521_s11 = scalar_lea.vmem (!%p378_p12), [#allocation2], %s2948_s20  ;;  %s4579_s25 = smov (!%p378_p12), 96  }
  0x1f   : > { %s4583_s17 = smov (!%p378_p12), 96   ;;  %s4584_s29 = smov (!%p378_p12), 64  }
  0x20   : > { %s2949_s26 = sshll.u32 (!%p378_p12), %s3494_s27, 3  ;;  %s2864_s20 = scalar_lea.sflag (!%p378_p12), [#allocation4], %s3494_s27 }
  0x21   : > { %s420_s30 = scalar_lea.vmem (!%p378_p12), [#allocation3], %s2949_s26  ;;  %s3372_s26 = smov (!%p378_p12), [#allocation3]  }
  0x22   : > { %v431_v8 = vld [vmem:[%s4566_s1 + $0x8] sm:$0xff]  ;;  %v433_v9 = vld [vmem:[%s4566_s1 + $0x18] sm:$0xff]  ;;  %v430_v13 = vld [vmem:[%s4566_s1] sm:$0xff]  ;;  %v3366_v15 = vmov 0   ;;  %vm502_vm0 = vcmask 130048   ;;  %v3367_v6 = vmov 0.0|0.0  }
  0x23   : > { %v447_v10 = vld [vmem:[%s4566_s1 + $0x88] sm:$0xff]  ;;  %v451_v11 = vpack.c.bf16 %v433_v9, %v431_v8  ;;  %v449_v12 = vld [vmem:[%s4566_s1 + $0x98] sm:$0xff]  ;;  %v432_v14 = vld [vmem:[%s4566_s1 + $0x10] sm:$0xff]  ;;  %547 = vmatprep.mubr.bf16.mxu0 %v3366_v15  ;;  %625 = vmatprep.mubr.bf16.mxu1 %v3366_v15  ;;  %v462_v8 = vlaneseq  ;;  %vm690_vm1 = vcmask 261120   ;;  %vm589_vm2 = vcmask 523264   ;;  %s2877_s12 = sshll.u32 %s420_s30, 4  ;;  %s4524_s12 = int_to_ptr.vmem [resolvable:$true] %s2877_s12 }
  0x24   : > { %v3508_v16 = vpack.c.bf16 %v449_v12, %v447_v10  ;;  %v450_v17 = vpack.c.bf16 %v432_v14, %v430_v13  ;;  %v446_v18 = vld [vmem:[%s4566_s1 + $0x80] sm:$0xff]  ;;  %v448_v19 = vld [vmem:[%s4566_s1 + $0x90] sm:$0xff]  ;;  %v443_v20 = vld [vmem:[%s4566_s1 + $0x68] sm:$0xff]  ;;  %vm2496_vm3 = vcmask 1041409   ;;  %vm2498_vm4 = vcmask 1042434   ;;  %s3308_s28 = sshll.u32 %s3372_s26, 4  ;;  %s3309_s28 = int_to_ptr.vmem [resolvable:$false] %s3308_s28 }
  0x25   : > { %529 = vmatprep.subr.bf16.mxu0 %v451_v11  ;;  %v3519_v21 = vpack.c.bf16 %v448_v19, %v446_v18  ;;  %v422_v22 = vld [vmem:[%s3521_s11] sm:$0xff]  ;;  %v423_v23 = vld [vmem:[%s3521_s11 + $0x8] sm:$0xff]  ;;  %v445_v24 = vld [vmem:[%s4566_s1 + $0x78] sm:$0xff]  ;;  %v3645_v9 = vshrl.u32 %v462_v8, 7  ;;  %vm2500_vm5 = vcmask 1043459   ;;  %vm2502_vm6 = vcmask 1044484   ;;  %p3311_p2 = scmp.lt.s32.totalorder %s4524_s12, %s3309_s28 }
  0x26   : > { %601 = vmatprep.subr.bf16.mxu1 %v3508_v16  ;;  %530 = vmatpush1.bf16.msra.mxu0 %v450_v17  ;;  %v480_v25 = vpack.c.bf16 %v423_v23, %v422_v22  ;;  %v2651_v26 = vmax.f32 %v422_v22, 0.0  ;;  %v2652_v27 = vmax.f32 %v423_v23, 0.0  ;;  %v3529_v28 = vpack.c.bf16 %v445_v24, %v443_v20  ;;  %v442_v29 = vld [vmem:[%s4566_s1 + $0x60] sm:$0xff]  ;;  %v444_v30 = vld [vmem:[%s4566_s1 + $0x70] sm:$0xff]  ;;  %v439_v31 = vld [vmem:[%s4566_s1 + $0x48] sm:$0xff] }
  0x27   : > { %602 = vmatpush1.bf16.msra.mxu1 %v3519_v21  ;;  %v3541_v32 = vpack.c.bf16 %v444_v30, %v442_v29  ;;  %v441_v33 = vld [vmem:[%s4566_s1 + $0x58] sm:$0xff]  ;;  %v438_v34 = vld [vmem:[%s4566_s1 + $0x40] sm:$0xff]  ;;  %v440_v35 = vld [vmem:[%s4566_s1 + $0x50] sm:$0xff]  ;;  %806 = vmatprep.subr.bf16.mxu0 %v3508_v16  ;;  %v3648_v10 = vsub.s32 2, %v3645_v9  ;;  %v3651_v11 = vsub.s32 0, %v3645_v9  ;;  %v3660_v20 = vsub.s32 1, %v3645_v9 }
  0x28   : > { %603 = vmatprep.subr.bf16.mxu1 %v3529_v28  ;;  %v3554_v36 = vpack.c.bf16 %v441_v33, %v439_v31  ;;  %v424_v37 = vld [vmem:[%s3521_s11 + $0x10] sm:$0xff]  ;;  %v425_v38 = vld [vmem:[%s3521_s11 + $0x18] sm:$0xff]  ;;  %v435_v39 = vld [vmem:[%s4566_s1 + $0x28] sm:$0xff]  ;;  %v3566_v43 = vsel %vm502_vm0, %v2651_v26, -inf  ;;  %v3569_v44 = vsel %vm502_vm0, %v2652_v27, -inf  ;;  %v3575_v46 = vpack.c.bf16 %v440_v35, %v438_v34 }
  0x29   : > { %2950 = vmatmul.mubr.msk.bf16.vlgmr.msra.gmra.mxu0 %vm502_vm0, %v480_v25  ;;  %v2653_v40 = vmax.f32 %v424_v37, 0.0  ;;  %v2654_v41 = vmax.f32 %v425_v38, 0.0  ;;  %v437_v42 = vld [vmem:[%s4566_s1 + $0x38] sm:$0xff]  ;;  %v426_v45 = vld [vmem:[%s3521_s11 + $0x20] sm:$0xff]  ;;  %v427_v49 = vld [vmem:[%s3521_s11 + $0x28] sm:$0xff]  ;;  %v481_v59 = vpack.c.bf16 %v425_v38, %v424_v37  ;;  %v3669_v29 = vsub.s32 3, %v3645_v9 }
  0x2a   : > { %557 = vmatprep.mubr.bf16.mxu0 %v3366_v15  ;;  %807 = vmatpush1.bf16.msra.mxu0 %v3519_v21  ;;  %v3580_v48 = vpack.c.bf16 %v437_v42, %v435_v39  ;;  %v2655_v50 = vmax.f32 %v426_v45, 0.0  ;;  %v428_v51 = vld [vmem:[%s3521_s11 + $0x30] sm:$0xff]  ;;  %v429_v52 = vld [vmem:[%s3521_s11 + $0x38] sm:$0xff]  ;;  %v434_v54 = vld [vmem:[%s4566_s1 + $0x20] sm:$0xff]  ;;  %v2656_v56 = vmax.f32 %v427_v49, 0.0  ;;  %v482_v5 = vpack.c.bf16 %v427_v49, %v426_v45 }
  0x2b   : > { %604 = vmatpush1.bf16.msra.mxu1 %v3541_v32  ;;  %v3578_v47 = vsel %vm502_vm0, %v2653_v40, -inf  ;;  %808 = vmatprep.subr.bf16.mxu0 %v3529_v28  ;;  %v3588_v53 = vsel %vm502_vm0, %v2654_v41, -inf  ;;  %v436_v55 = vld [vmem:[%s4566_s1 + $0x30] sm:$0xff]  ;;  %v2657_v57 = vmax.f32 %v428_v51, 0.0  ;;  %v2658_v58 = vmax.f32 %v429_v52, 0.0 }
  0x2c   : > { %605 = vmatprep.subr.bf16.mxu1 %v3554_v36  ;;  %v3597_v60 = vsel %vm502_vm0, %v2655_v50, -inf  ;;  %v3602_v62 = vsel %vm502_vm0, %v2656_v56, -inf  ;;  %v3612_v1 = vpack.c.bf16 %v436_v55, %v434_v54  ;;  %v483_v7 = vpack.c.bf16 %v429_v52, %v428_v51  ;;  %v460_v12 = vld [vmem:[%s4567_s2] sm:$0xf] }
  0x2d   : > { %v2664_v61 = vmax.f32 %v3566_v43, %v3597_v60  ;;  %v3605_v63 = vsel %vm502_vm0, %v2657_v57, -inf  ;;  %v3608_v0 = vsel %vm502_vm0, %v2658_v58, -inf  ;;  %v2666_v2 = vmax.f32 %v3569_v44, %v3602_v62  ;;  %v2701_v44 = vld [vmem:[%s4571_s6 + $0x20] sm:$0xff]  ;;  %v2702_v43 = vld [vmem:[%s4571_s6 + $0x28] sm:$0xff] }
  0x2e   : > { %809 = vmatpush1.bf16.msra.mxu0 %v3541_v32  ;;  %v2670_v4 = vmax.f32 %v3588_v53, %v3608_v0  ;;  %v491_v13 = vrot.slane %v460_v12, %v3648_v10  ;;  %v487_v14 = vrot.slane %v460_v12, %v3651_v11  ;;  %v465_v27 = vrot.slane %v460_v12, %v3660_v20  ;;  %v2700_v0 = vld [vmem:[%s4571_s6 + $0x18] sm:$0xff] }
  0x2f   : > { %606 = vmatpush1.bf16.msra.mxu1 %v3575_v46  ;;  %810 = vmatprep.subr.bf16.mxu0 %v3554_v36  ;;  %v469_v37 = vrot.slane %v460_v12, %v3669_v29  ;;  %vm2504_vm7 = vcmask 1045509   ;;  %vm2506_vm8 = vcmask 1046534   ;;  %vm2508_vm9 = vcmask 1047559  }
  0x30   : > { %607 = vmatprep.subr.bf16.mxu1 %v3580_v48  ;;  %v501_v18 = vrot.slane %v491_v13, %v3651_v11  ;;  %v497_v22 = vrot.slane %v487_v14, %v3651_v11  ;;  %v3676_v35 = vrot.slane %v465_v27, %v3660_v20  ;;  %vm2543_vm10 = vcmask 64512  }
  0x31   : > { %2951 = vmatmul.mubr.msk.bf16.gmra.mxu0 %vm502_vm0, %v481_v59  ;;  %v3685_v49 = vrot.slane %v469_v37, %v3660_v20  ;;  %v2638_v62 = vsub.s32 7, %v3645_v9  ;;  %vm3371_vm11 = vmmov 0  }
  0x32   : > { %567 = vmatprep.mubr.bf16.mxu0 %v3366_v15  ;;  %811 = vmatpush1.bf16.msra.mxu0 %v3575_v46 }
  0x33   : > { %608 = vmatpush1.bf16.msra.mxu1 %v3612_v1  ;;  %812 = vmatprep.subr.bf16.mxu0 %v3580_v48 }
  0x34   : > { %704 = vmatprep.subr.bf16.mxu1 %v3508_v16 }
  0x36   : > { %626 = vmatmul.mubr.bf16.vlgmr.msra.gmra.mxu1 %v3367_v6  ;;  %813 = vmatpush1.bf16.msra.mxu0 %v3612_v1 }
  0x37   : > { %705 = vmatpush1.bf16.msra.mxu1 %v3519_v21  ;;  %728 = vmatprep.mubr.bf16.mxu1 %v3366_v15 }
  0x38   : > { %706 = vmatprep.subr.bf16.mxu1 %v3529_v28  ;;  %1010 = vmatprep.subr.bf16.mxu0 %v3508_v16 }
  0x39   : > { %2952 = vmatmul.mubr.msk.bf16.gmra.mxu0 %vm502_vm0, %v482_v5 }
  0x3a   : > { %577 = vmatprep.mubr.bf16.mxu0 %v3366_v15 }
  0x3b   : > { %707 = vmatpush1.bf16.msra.mxu1 %v3541_v32 }
  0x3c   : > { %708 = vmatprep.subr.bf16.mxu1 %v3554_v36 }
  0x3f   : > { %709 = vmatpush1.bf16.msra.mxu1 %v3575_v46 }
  0x40   : > { %710 = vmatprep.subr.bf16.mxu1 %v3580_v48 }
  0x41   : > { %2953 = vmatmul.mubr.msk.bf16.gmra.mxu0 %vm502_vm0, %v483_v7 }
  0x42   : > { %830 = vmatprep.mubr.bf16.mxu0 %v3366_v15 }
  0x43   : > { %711 = vmatpush1.bf16.msra.mxu1 %v3612_v1 }
  0x44   : > { %908 = vmatprep.subr.bf16.mxu1 %v3508_v16 }
  0xe9   : > { %v549_v17 = vpop.f32.mrf.mxu0 }
  0xeb   : > { %v551_v19 = vpop.f32.mrf.mxu0 }
  0xec   : > { %v3663_v23 = vadd.f32 %v551_v19, %v501_v18 }
  0xed   : > { %v553_v24 = vpop.f32.mrf.mxu0 }
  0xee   : > { %v3665_v25 = vadd.f32 %v553_v24, %v497_v22 }
  0xef   : > { %v555_v26 = vpop.f32.mrf.mxu0 }
  0xf0   : > { %v3671_v30 = vadd.f32 %v555_v26, %v501_v18 }
  0xf1   : > { %v559_v31 = vpop.f32.mrf.mxu0 }
  0xf2   : > { %v3673_v33 = vadd.f32 %v559_v31, %v497_v22 }
  0xf3   : > { %v561_v34 = vpop.f32.mrf.mxu0 }
  0xf4   : > { %v3679_v38 = vadd.f32 %v561_v34, %v501_v18  ;;  %v550_v34 = vadd.f32 %v549_v17, %v497_v22 }
  0xf5   : > { %v563_v39 = vpop.f32.mrf.mxu0 }
  0xf6   : > { %v3681_v40 = vadd.f32 %v563_v39, %v497_v22  ;;  %v627_v41 = vpop.f32.mrf.mxu1 }
  0xf7   : > { %v628_v42 = vadd.f32 %v627_v41, %v3676_v35  ;;  %v565_v45 = vpop.f32.mrf.mxu0 }
  0xf8   : > { %v3687_v50 = vadd.f32 %v565_v45, %v501_v18  ;;  %v629_v51 = vpop.f32.mrf.mxu1 }
  0xf9   : > { %649 = vrot.lane.b32.xlu0 %v628_v42, %s4577_s21  ;;  %v569_v52 = vpop.f32.mrf.mxu0  ;;  %v630_v56 = vadd.f32 %v629_v51, %v3685_v49  ;;  %v634_v39 = vadd.f32 %v628_v42, %v550_v34 }
  0xfa   : > { %v3690_v54 = vadd.f32 %v569_v52, %v497_v22  ;;  %v631_v55 = vpop.f32.mrf.mxu1 }
  0xfb   : > { %v571_v57 = vpop.f32.mrf.mxu0  ;;  %v2954_v45 = vmul.f32 -1.442695, %v634_v39 }
  0xfc   : > { %v3693_v58 = vadd.f32 %v571_v57, %v501_v18  ;;  %v632_v59 = vpop.f32.mrf.mxu1 }
  0xfd   : > { %660 = vrot.lane.b32.xlu0 %v630_v56, %s4577_s21  ;;  %v573_v5 = vpop.f32.mrf.mxu0  ;;  %3092 = vpow2.f32 %v2954_v45 }
  0xfe   : > { %v3696_v7 = vadd.f32 %v573_v5, %v497_v22 }
  0xff   : > { %v575_v12 = vpop.f32.mrf.mxu0 }
 0x100   : > { %v3698_v13 = vadd.f32 %v575_v12, %v501_v18 }
 0x101   : > { %v579_v14 = vpop.f32.mrf.mxu0 }
 0x102   : > { %v3700_v19 = vadd.f32 %v579_v14, %v497_v22 }
 0x103   : > { %v581_v24 = vpop.f32.mrf.mxu0 }
 0x104   : > { %v3702_v26 = vadd.f32 %v581_v24, %v501_v18 }
 0x105   : > { %v583_v27 = vpop.f32.mrf.mxu0 }
 0x106   : > { %v3704_v31 = vadd.f32 %v583_v27, %v497_v22 }
 0x107   : > { %v585_v37 = vpop.f32.mrf.mxu0 }
 0x108   : > { %v586_v41 = vadd.f32 %v585_v37, %v501_v18 }
 0x10a   : > { %v641_v51 = vadd.f32 %v630_v56, %v586_v41  ;;  %v3093_v55 = vpop.eup %3092 }
 0x10b   : > { %v638_v57 = vadd.f32 1.0, %v3093_v55 }
 0x10c   : > { %v2955_v52 = vmul.f32 -1.442695, %v641_v51 }
 0x10e   : > { %3094 = vpow2.f32 %v2955_v52 }
 0x10f   : > { %3096 = vrcp.f32 %v638_v57 }
 0x11b   : > { %v3095_v59 = vpop.eup %3094 }
 0x11c   : > { %v645_v5 = vadd.f32 1.0, %v3095_v59  ;;  %v3097_v12 = vpop.eup %3096 }
 0x11d   : > { %v670_v51 = vsub.f32 1.0, %v3097_v12  ;;  %v676_v55 = vmul.f32 0.0, %v3097_v12 }
 0x11e   : > { %3098 = vrcp.f32 %v645_v5 }
 0x12b   : > { %v3099_v17 = vpop.eup %3098 }
 0x16b   : > { %v650_v14 = vpop.permute.xlu0 %649 }
 0x16c   : > { %v652_v24 = vmul.f32 %v3097_v12, %v650_v14 }
 0x16e   : > { %654 = vrot.lane.b32.xlu1 %v652_v24, %s4577_s21  ;;  %v684_v24 = vmul.f32 0.0, %v3099_v17 }
 0x16f   : > { %v661_v22 = vpop.permute.xlu0 %660 }
 0x170   : > { %v663_v42 = vmul.f32 %v3099_v17, %v661_v22 }
 0x172   : > { %665 = vrot.lane.b32.xlu1 %v663_v42, %s4577_s21 }
 0x1e0   : > { %v655_v18 = vpop.permute.xlu1 %654 }
 0x1e1   : > { %v657_v56 = vadd.f32 %v655_v18, %v550_v34  ;;  %v678_v34 = vsub.f32 1.0, %v3099_v17 }
 0x1e3   : > { %3100 = vtanh.f32 %v657_v56 }
 0x1e4   : > { %v666_v27 = vpop.permute.xlu1 %665 }
 0x1e5   : > { %v668_v37 = vadd.f32 %v666_v27, %v586_v41 }
 0x1e7   : > { %3102 = vtanh.f32 %v668_v37 }
 0x1f0   : > { %v3101_v39 = vpop.eup %3100 }
 0x1f1   : > { %672 = vrot.lane.b32.xlu0 %v3101_v39, %s4579_s25 }
 0x1f4   : > { %v3103_v45 = vpop.eup %3102 }
 0x1f5   : > { %680 = vrot.lane.b32.xlu1 %v3103_v45, %s4579_s25 }
 0x263   : > { %v673_v52 = vpop.permute.xlu0 %672 }
 0x264   : > { %v675_v57 = vmul.f32 %v673_v52, %v670_v51 }
 0x266   : > { %v677_v59 = vadd.f32 %v676_v55, %v675_v57 }
 0x267   : > { %v681_v5 = vpop.permute.xlu1 %680 }
 0x268   : > { %687 = vrot.lane.b32.xlu0 %v677_v59, %s4579_s25  ;;  %v683_v14 = vmul.f32 %v681_v5, %v678_v34 }
 0x26a   : > { %v3711_v41 = vadd.f32 %v684_v24, %v683_v14 }
 0x2da   : > { %v3713_v22 = vpop.permute.xlu0 %687 }
 0x2db   : > { %v691_v42 = vsel %vm690_vm1, %v3713_v22, %v3711_v41 }
 0x2dc   : > { %v692_v18 = vpack.c.bf16 %v691_v42, %v691_v42 }
 0x2de   : > { %2956 = vmatmul.mubr.msk.bf16.vlgmr.msra.gmra.mxu1 %vm589_vm2, %v692_v18 }
 0x2df   : > { %909 = vmatpush1.bf16.msra.mxu1 %v3519_v21  ;;  %932 = vmatprep.mubr.bf16.mxu1 %v3366_v15 }
 0x2e0   : > { %910 = vmatprep.subr.bf16.mxu1 %v3529_v28 }
 0x2e3   : > { %911 = vmatpush1.bf16.msra.mxu1 %v3541_v32 }
 0x2e4   : > { %912 = vmatprep.subr.bf16.mxu1 %v3554_v36 }
 0x2e7   : > { %913 = vmatpush1.bf16.msra.mxu1 %v3575_v46 }
 0x2e8   : > { %914 = vmatprep.subr.bf16.mxu1 %v3580_v48 }
 0x2eb   : > { %915 = vmatpush1.bf16.msra.mxu1 %v3612_v1 }
 0x2ec   : > { %1112 = vmatprep.subr.bf16.mxu1 %v3508_v16 }
 0x39e   : > { %v730_v12 = vpop.f32.mrf.mxu1 }
 0x39f   : > { %v731_v17 = vadd.f32 %v730_v12, %v3676_v35 }
 0x3a0   : > { %v732_v56 = vpop.f32.mrf.mxu1 }
 0x3a1   : > { %v733_v27 = vadd.f32 %v732_v56, %v3685_v49  ;;  %752 = vrot.lane.b32.xlu1 %v731_v17, %s4577_s21  ;;  %v737_v45 = vadd.f32 %v731_v17, %v3665_v25 }
 0x3a2   : > { %v734_v37 = vpop.f32.mrf.mxu1 }
 0x3a3   : > { %763 = vrot.lane.b32.xlu0 %v733_v27, %s4577_s21  ;;  %v744_v51 = vadd.f32 %v733_v27, %v3702_v26  ;;  %v2957_v52 = vmul.f32 -1.442695, %v737_v45 }
 0x3a4   : > { %v735_v39 = vpop.f32.mrf.mxu1 }
 0x3a5   : > { %v2958_v55 = vmul.f32 -1.442695, %v744_v51  ;;  %3104 = vpow2.f32 %v2957_v52 }
 0x3a7   : > { %3106 = vpow2.f32 %v2958_v55 }
 0x3b2   : > { %v3105_v57 = vpop.eup %3104 }
 0x3b3   : > { %v741_v34 = vadd.f32 1.0, %v3105_v57 }
 0x3b4   : > { %v3107_v5 = vpop.eup %3106 }
 0x3b5   : > { %v748_v14 = vadd.f32 1.0, %v3107_v5  ;;  %3108 = vrcp.f32 %v741_v34 }
 0x3b7   : > { %3110 = vrcp.f32 %v748_v14 }
 0x3c2   : > { %v3109_v24 = vpop.eup %3108 }
 0x3c3   : > { %v773_v55 = vsub.f32 1.0, %v3109_v24  ;;  %v779_v5 = vmul.f32 %v3109_v24, %v677_v59 }
 0x3c4   : > { %v3111_v12 = vpop.eup %3110 }
 0x413   : > { %v753_v42 = vpop.permute.xlu1 %752 }
 0x414   : > { %v755_v18 = vmul.f32 %v3109_v24, %v753_v42 }
 0x415   : > { %v764_v56 = vpop.permute.xlu0 %763 }
 0x416   : > { %v766_v37 = vmul.f32 %v3111_v12, %v764_v56  ;;  %757 = vrot.lane.b32.xlu1 %v755_v18, %s4577_s21  ;;  %v787_v56 = vmul.f32 %v3111_v12, %v3711_v41 }
 0x418   : > { %768 = vrot.lane.b32.xlu0 %v766_v37, %s4577_s21 }
 0x488   : > { %v758_v17 = vpop.permute.xlu1 %757 }
 0x489   : > { %v760_v27 = vadd.f32 %v758_v17, %v3665_v25  ;;  %v781_v25 = vsub.f32 1.0, %v3111_v12 }
 0x48a   : > { %v769_v39 = vpop.permute.xlu0 %768 }
 0x48b   : > { %3112 = vtanh.f32 %v760_v27  ;;  %v771_v45 = vadd.f32 %v769_v39, %v3702_v26 }
 0x48d   : > { %3114 = vtanh.f32 %v771_v45 }
 0x498   : > { %v3113_v51 = vpop.eup %3112 }
 0x499   : > { %775 = vrot.lane.b32.xlu1 %v3113_v51, %s4579_s25 }
 0x49a   : > { %v3115_v52 = vpop.eup %3114 }
 0x49b   : > { %783 = vrot.lane.b32.xlu0 %v3115_v52, %s4579_s25 }
 0x50b   : > { %v776_v57 = vpop.permute.xlu1 %775 }
 0x50c   : > { %v778_v34 = vmul.f32 %v776_v57, %v773_v55 }
 0x50d   : > { %v784_v42 = vpop.permute.xlu0 %783 }
 0x50e   : > { %v780_v14 = vadd.f32 %v779_v5, %v778_v34  ;;  %v786_v18 = vmul.f32 %v784_v42, %v781_v25 }
 0x510   : > { %790 = vrot.lane.b32.xlu1 %v780_v14, %s4579_s25  ;;  %v3742_v26 = vadd.f32 %v787_v56, %v786_v18 }
 0x582   : > { %v3744_v37 = vpop.permute.xlu1 %790 }
 0x583   : > { %v793_v17 = vsel %vm690_vm1, %v3744_v37, %v3742_v26 }
 0x584   : > { %v794_v27 = vpack.c.bf16 %v793_v17, %v793_v17 }
 0x586   : > { %2959 = vmatmul.mubr.msk.bf16.vlgmr.msra.gmra.mxu0 %vm589_vm2, %v794_v27 }
 0x587   : > { %1011 = vmatpush1.bf16.msra.mxu0 %v3519_v21  ;;  %1034 = vmatprep.mubr.bf16.mxu0 %v3366_v15 }
 0x588   : > { %1012 = vmatprep.subr.bf16.mxu0 %v3529_v28 }
 0x58b   : > { %1013 = vmatpush1.bf16.msra.mxu0 %v3541_v32 }
 0x58c   : > { %1014 = vmatprep.subr.bf16.mxu0 %v3554_v36 }
 0x58f   : > { %1015 = vmatpush1.bf16.msra.mxu0 %v3575_v46 }
 0x590   : > { %1016 = vmatprep.subr.bf16.mxu0 %v3580_v48 }
 0x593   : > { %1017 = vmatpush1.bf16.msra.mxu0 %v3612_v1 }
 0x594   : > { %1214 = vmatprep.subr.bf16.mxu0 %v3508_v16 }
 0x646   : > { %v832_v59 = vpop.f32.mrf.mxu0 }
 0x647   : > { %v833_v24 = vadd.f32 %v832_v59, %v3676_v35 }
 0x648   : > { %v834_v12 = vpop.f32.mrf.mxu0 }
 0x649   : > { %v835_v39 = vadd.f32 %v834_v12, %v3685_v49  ;;  %854 = vrot.lane.b32.xlu0 %v833_v24, %s4577_s21  ;;  %v839_v52 = vadd.f32 %v833_v24, %v3673_v33 }
 0x64a   : > { %v836_v45 = vpop.f32.mrf.mxu0 }
 0x64b   : > { %865 = vrot.lane.b32.xlu1 %v835_v39, %s4577_s21  ;;  %v846_v55 = vadd.f32 %v835_v39, %v3698_v13  ;;  %v2960_v57 = vmul.f32 -1.442695, %v839_v52 }
 0x64c   : > { %v837_v51 = vpop.f32.mrf.mxu0 }
 0x64d   : > { %v2961_v5 = vmul.f32 -1.442695, %v846_v55  ;;  %3116 = vpow2.f32 %v2960_v57 }
 0x64f   : > { %3118 = vpow2.f32 %v2961_v5 }
 0x65a   : > { %v3117_v34 = vpop.eup %3116 }
 0x65b   : > { %v843_v25 = vadd.f32 1.0, %v3117_v34 }
 0x65c   : > { %v3119_v42 = vpop.eup %3118 }
 0x65d   : > { %v850_v18 = vadd.f32 1.0, %v3119_v42  ;;  %3120 = vrcp.f32 %v843_v25 }
 0x65f   : > { %3122 = vrcp.f32 %v850_v18 }
 0x66a   : > { %v3121_v56 = vpop.eup %3120 }
 0x66b   : > { %v875_v5 = vsub.f32 1.0, %v3121_v56  ;;  %v881_v42 = vmul.f32 %v3121_v56, %v780_v14 }
 0x66c   : > { %v3123_v59 = vpop.eup %3122 }
 0x6bb   : > { %v855_v17 = vpop.permute.xlu0 %854 }
 0x6bc   : > { %v857_v27 = vmul.f32 %v3121_v56, %v855_v17 }
 0x6bd   : > { %v866_v12 = vpop.permute.xlu1 %865 }
 0x6be   : > { %v868_v45 = vmul.f32 %v3123_v59, %v866_v12  ;;  %859 = vrot.lane.b32.xlu0 %v857_v27, %s4577_s21  ;;  %v889_v12 = vmul.f32 %v3123_v59, %v3742_v26 }
 0x6c0   : > { %870 = vrot.lane.b32.xlu1 %v868_v45, %s4577_s21 }
 0x730   : > { %v860_v24 = vpop.permute.xlu0 %859 }
 0x731   : > { %v862_v39 = vadd.f32 %v860_v24, %v3673_v33  ;;  %v883_v33 = vsub.f32 1.0, %v3123_v59 }
 0x732   : > { %v871_v51 = vpop.permute.xlu1 %870 }
 0x733   : > { %3124 = vtanh.f32 %v862_v39  ;;  %v873_v52 = vadd.f32 %v871_v51, %v3698_v13 }
 0x735   : > { %3126 = vtanh.f32 %v873_v52 }
 0x740   : > { %v3125_v55 = vpop.eup %3124 }
 0x741   : > { %877 = vrot.lane.b32.xlu0 %v3125_v55, %s4579_s25 }
 0x742   : > { %v3127_v57 = vpop.eup %3126 }
 0x743   : > { %885 = vrot.lane.b32.xlu1 %v3127_v57, %s4579_s25 }
 0x7b3   : > { %v878_v34 = vpop.permute.xlu0 %877 }
 0x7b4   : > { %v880_v25 = vmul.f32 %v878_v34, %v875_v5 }
 0x7b5   : > { %v886_v17 = vpop.permute.xlu1 %885 }
 0x7b6   : > { %v882_v18 = vadd.f32 %v881_v42, %v880_v25  ;;  %v888_v27 = vmul.f32 %v886_v17, %v883_v33 }
 0x7b8   : > { %892 = vrot.lane.b32.xlu0 %v882_v18, %s4579_s25  ;;  %v3773_v13 = vadd.f32 %v889_v12, %v888_v27 }
 0x82a   : > { %v3775_v45 = vpop.permute.xlu0 %892 }
 0x82b   : > { %v895_v24 = vsel %vm690_vm1, %v3775_v45, %v3773_v13 }
 0x82c   : > { %v896_v39 = vpack.c.bf16 %v895_v24, %v895_v24 }
 0x82e   : > { %2962 = vmatmul.mubr.msk.bf16.vlgmr.msra.gmra.mxu1 %vm589_vm2, %v896_v39 }
 0x82f   : > { %1113 = vmatpush1.bf16.msra.mxu1 %v3519_v21  ;;  %1136 = vmatprep.mubr.bf16.mxu1 %v3366_v15 }
 0x830   : > { %1114 = vmatprep.subr.bf16.mxu1 %v3529_v28 }
 0x833   : > { %1115 = vmatpush1.bf16.msra.mxu1 %v3541_v32 }
 0x834   : > { %1116 = vmatprep.subr.bf16.mxu1 %v3554_v36 }
 0x837   : > { %1117 = vmatpush1.bf16.msra.mxu1 %v3575_v46 }
 0x838   : > { %1118 = vmatprep.subr.bf16.mxu1 %v3580_v48 }
 0x83b   : > { %1119 = vmatpush1.bf16.msra.mxu1 %v3612_v1 }
 0x83c   : > { %1316 = vmatprep.subr.bf16.mxu1 %v3508_v16 }
 0x8ee   : > { %v934_v14 = vpop.f32.mrf.mxu1 }
 0x8ef   : > { %v935_v56 = vadd.f32 %v934_v14, %v3676_v35 }
 0x8f0   : > { %v936_v59 = vpop.f32.mrf.mxu1 }
 0x8f1   : > { %v937_v51 = vadd.f32 %v936_v59, %v3685_v49  ;;  %956 = vrot.lane.b32.xlu1 %v935_v56, %s4577_s21  ;;  %v941_v57 = vadd.f32 %v935_v56, %v3681_v40 }
 0x8f2   : > { %v938_v52 = vpop.f32.mrf.mxu1 }
 0x8f3   : > { %967 = vrot.lane.b32.xlu0 %v937_v51, %s4577_s21  ;;  %v948_v5 = vadd.f32 %v937_v51, %v3693_v58  ;;  %v2963_v34 = vmul.f32 -1.442695, %v941_v57 }
 0x8f4   : > { %v939_v55 = vpop.f32.mrf.mxu1 }
 0x8f5   : > { %v2964_v42 = vmul.f32 -1.442695, %v948_v5  ;;  %3128 = vpow2.f32 %v2963_v34 }
 0x8f7   : > { %3130 = vpow2.f32 %v2964_v42 }
 0x902   : > { %v3129_v16 = vpop.eup %3128 }
 0x903   : > { %v945_v17 = vadd.f32 1.0, %v3129_v16 }
 0x904   : > { %v3131_v25 = vpop.eup %3130 }
 0x905   : > { %v952_v33 = vadd.f32 1.0, %v3131_v25  ;;  %3132 = vrcp.f32 %v945_v17 }
 0x907   : > { %3134 = vrcp.f32 %v952_v33 }
 0x912   : > { %v3133_v27 = vpop.eup %3132 }
 0x913   : > { %v977_v34 = vsub.f32 1.0, %v3133_v27  ;;  %v983_v16 = vmul.f32 %v3133_v27, %v882_v18 }
 0x914   : > { %v3135_v39 = vpop.eup %3134 }
 0x963   : > { %v957_v12 = vpop.permute.xlu1 %956 }
 0x964   : > { %v959_v24 = vmul.f32 %v3133_v27, %v957_v12 }
 0x965   : > { %v968_v14 = vpop.permute.xlu0 %967 }
 0x966   : > { %v970_v59 = vmul.f32 %v3135_v39, %v968_v14  ;;  %961 = vrot.lane.b32.xlu1 %v959_v24, %s4577_s21  ;;  %v991_v24 = vmul.f32 %v3135_v39, %v3773_v13 }
 0x968   : > { %972 = vrot.lane.b32.xlu0 %v970_v59, %s4577_s21 }
 0x9d8   : > { %v962_v56 = vpop.permute.xlu1 %961 }
 0x9d9   : > { %v964_v51 = vadd.f32 %v962_v56, %v3681_v40  ;;  %v985_v40 = vsub.f32 1.0, %v3135_v39 }
 0x9da   : > { %v973_v52 = vpop.permute.xlu0 %972 }
 0x9db   : > { %3136 = vtanh.f32 %v964_v51  ;;  %v975_v55 = vadd.f32 %v973_v52, %v3693_v58 }
 0x9dd   : > { %3138 = vtanh.f32 %v975_v55 }
 0x9e8   : > { %v3137_v57 = vpop.eup %3136 }
 0x9e9   : > { %979 = vrot.lane.b32.xlu1 %v3137_v57, %s4579_s25 }
 0x9ea   : > { %v3139_v5 = vpop.eup %3138 }
 0x9eb   : > { %987 = vrot.lane.b32.xlu0 %v3139_v5, %s4579_s25 }
 0xa5b   : > { %v980_v42 = vpop.permute.xlu1 %979 }
 0xa5c   : > { %v982_v25 = vmul.f32 %v980_v42, %v977_v34 }
 0xa5d   : > { %v988_v33 = vpop.permute.xlu0 %987 }
 0xa5e   : > { %v984_v17 = vadd.f32 %v983_v16, %v982_v25  ;;  %v990_v12 = vmul.f32 %v988_v33, %v985_v40 }
 0xa60   : > { %994 = vrot.lane.b32.xlu1 %v984_v17, %s4579_s25  ;;  %v3804_v58 = vadd.f32 %v991_v24, %v990_v12 }
 0xad2   : > { %v3806_v14 = vpop.permute.xlu1 %994 }
 0xad3   : > { %v997_v59 = vsel %vm690_vm1, %v3806_v14, %v3804_v58 }
 0xad4   : > { %v998_v56 = vpack.c.bf16 %v997_v59, %v997_v59 }
 0xad6   : > { %2965 = vmatmul.mubr.msk.bf16.vlgmr.msra.gmra.mxu0 %vm589_vm2, %v998_v56 }
 0xad7   : > { %1215 = vmatpush1.bf16.msra.mxu0 %v3519_v21  ;;  %1238 = vmatprep.mubr.bf16.mxu0 %v3366_v15 }
 0xad8   : > { %1216 = vmatprep.subr.bf16.mxu0 %v3529_v28 }
 0xadb   : > { %1217 = vmatpush1.bf16.msra.mxu0 %v3541_v32 }
 0xadc   : > { %1218 = vmatprep.subr.bf16.mxu0 %v3554_v36 }
 0xadf   : > { %1219 = vmatpush1.bf16.msra.mxu0 %v3575_v46 }
 0xae0   : > { %1220 = vmatprep.subr.bf16.mxu0 %v3580_v48 }
 0xae3   : > { %1221 = vmatpush1.bf16.msra.mxu0 %v3612_v1 }
 0xb96   : > { %v1036_v18 = vpop.f32.mrf.mxu0 }
 0xb97   : > { %v1037_v27 = vadd.f32 %v1036_v18, %v3676_v35 }
 0xb98   : > { %v1038_v39 = vpop.f32.mrf.mxu0 }
 0xb99   : > { %v1039_v51 = vadd.f32 %v1038_v39, %v3685_v49  ;;  %1058 = vrot.lane.b32.xlu0 %v1037_v27, %s4577_s21  ;;  %v1043_v57 = vadd.f32 %v1037_v27, %v3690_v54 }
 0xb9a   : > { %v1040_v52 = vpop.f32.mrf.mxu0 }
 0xb9b   : > { %1069 = vrot.lane.b32.xlu1 %v1039_v51, %s4577_s21  ;;  %v1050_v5 = vadd.f32 %v1039_v51, %v3687_v50  ;;  %v2966_v34 = vmul.f32 -1.442695, %v1043_v57 }
 0xb9c   : > { %v1041_v55 = vpop.f32.mrf.mxu0 }
 0xb9d   : > { %v2967_v42 = vmul.f32 -1.442695, %v1050_v5  ;;  %3140 = vpow2.f32 %v2966_v34 }
 0xb9f   : > { %3142 = vpow2.f32 %v2967_v42 }
 0xbaa   : > { %v3141_v16 = vpop.eup %3140 }
 0xbab   : > { %v1047_v33 = vadd.f32 1.0, %v3141_v16 }
 0xbac   : > { %v3143_v25 = vpop.eup %3142 }
 0xbad   : > { %v1054_v40 = vadd.f32 1.0, %v3143_v25  ;;  %3144 = vrcp.f32 %v1047_v33 }
 0xbaf   : > { %3146 = vrcp.f32 %v1054_v40 }
 0xbba   : > { %v3145_v12 = vpop.eup %3144 }
 0xbbb   : > { %v1079_v34 = vsub.f32 1.0, %v3145_v12  ;;  %v1085_v16 = vmul.f32 %v3145_v12, %v984_v17 }
 0xbbc   : > { %v3147_v56 = vpop.eup %3146 }
 0xc0b   : > { %v1059_v24 = vpop.permute.xlu0 %1058 }
 0xc0c   : > { %v1061_v59 = vmul.f32 %v3145_v12, %v1059_v24 }
 0xc0d   : > { %v1070_v18 = vpop.permute.xlu1 %1069 }
 0xc0e   : > { %v1072_v39 = vmul.f32 %v3147_v56, %v1070_v18  ;;  %1063 = vrot.lane.b32.xlu0 %v1061_v59, %s4577_s21  ;;  %v1093_v59 = vmul.f32 %v3147_v56, %v3804_v58 }
 0xc10   : > { %1074 = vrot.lane.b32.xlu1 %v1072_v39, %s4577_s21 }
 0xc80   : > { %v1064_v27 = vpop.permute.xlu0 %1063 }
 0xc81   : > { %v1066_v51 = vadd.f32 %v1064_v27, %v3690_v54  ;;  %v1087_v54 = vsub.f32 1.0, %v3147_v56 }
 0xc82   : > { %v1075_v52 = vpop.permute.xlu1 %1074 }
 0xc83   : > { %3148 = vtanh.f32 %v1066_v51  ;;  %v1077_v55 = vadd.f32 %v1075_v52, %v3687_v50 }
 0xc85   : > { %3150 = vtanh.f32 %v1077_v55 }
 0xc90   : > { %v3149_v57 = vpop.eup %3148 }
 0xc91   : > { %1081 = vrot.lane.b32.xlu0 %v3149_v57, %s4579_s25 }
 0xc92   : > { %v3151_v5 = vpop.eup %3150 }
 0xc93   : > { %1089 = vrot.lane.b32.xlu1 %v3151_v5, %s4579_s25 }
 0xd03   : > { %v1082_v42 = vpop.permute.xlu0 %1081 }
 0xd04   : > { %v1084_v25 = vmul.f32 %v1082_v42, %v1079_v34 }
 0xd05   : > { %v1090_v40 = vpop.permute.xlu1 %1089 }
 0xd06   : > { %v1086_v33 = vadd.f32 %v1085_v16, %v1084_v25  ;;  %v1092_v24 = vmul.f32 %v1090_v40, %v1087_v54 }
 0xd08   : > { %1096 = vrot.lane.b32.xlu0 %v1086_v33, %s4579_s25  ;;  %v3834_v50 = vadd.f32 %v1093_v59, %v1092_v24 }
 0xd7a   : > { %v3836_v18 = vpop.permute.xlu0 %1096 }
 0xd7b   : > { %v1099_v39 = vsel %vm690_vm1, %v3836_v18, %v3834_v50 }
 0xd7c   : > { %v1100_v27 = vpack.c.bf16 %v1099_v39, %v1099_v39 }
 0xd7e   : > { %2968 = vmatmul.mubr.msk.bf16.vlgmr.msra.gmra.mxu1 %vm589_vm2, %v1100_v27 }
 0xd7f   : > { %1317 = vmatpush1.bf16.msra.mxu1 %v3519_v21  ;;  %1340 = vmatprep.mubr.bf16.mxu1 %v3366_v15 }
 0xd80   : > { %1318 = vmatprep.subr.bf16.mxu1 %v3529_v28 }
 0xd83   : > { %1319 = vmatpush1.bf16.msra.mxu1 %v3541_v32 }
 0xd84   : > { %1320 = vmatprep.subr.bf16.mxu1 %v3554_v36 }
 0xd87   : > { %1321 = vmatpush1.bf16.msra.mxu1 %v3575_v46 }
 0xd88   : > { %1322 = vmatprep.subr.bf16.mxu1 %v3580_v48 }
 0xd8b   : > { %1323 = vmatpush1.bf16.msra.mxu1 %v3612_v1 }
 0xe3e   : > { %v1138_v17 = vpop.f32.mrf.mxu1 }
 0xe3f   : > { %v1139_v12 = vadd.f32 %v1138_v17, %v3676_v35 }
 0xe40   : > { %v1140_v56 = vpop.f32.mrf.mxu1 }
 0xe41   : > { %v1141_v21 = vadd.f32 %v1140_v56, %v3685_v49  ;;  %1160 = vrot.lane.b32.xlu1 %v1139_v12, %s4577_s21  ;;  %v1145_v32 = vadd.f32 %v1139_v12, %v3696_v7 }
 0xe42   : > { %v1142_v51 = vpop.f32.mrf.mxu1 }
 0xe43   : > { %1171 = vrot.lane.b32.xlu0 %v1141_v21, %s4577_s21  ;;  %v1152_v36 = vadd.f32 %v1141_v21, %v3679_v38  ;;  %v2969_v46 = vmul.f32 -1.442695, %v1145_v32 }
 0xe44   : > { %v1143_v28 = vpop.f32.mrf.mxu1 }
 0xe45   : > { %v2970_v48 = vmul.f32 -1.442695, %v1152_v36  ;;  %3152 = vpow2.f32 %v2969_v46 }
 0xe47   : > { %3154 = vpow2.f32 %v2970_v48 }
 0xe52   : > { %v3153_v1 = vpop.eup %3152 }
 0xe53   : > { %v1149_v55 = vadd.f32 1.0, %v3153_v1 }
 0xe54   : > { %v3155_v52 = vpop.eup %3154 }
 0xe55   : > { %v1156_v57 = vadd.f32 1.0, %v3155_v52  ;;  %3156 = vrcp.f32 %v1149_v55 }
 0xe57   : > { %3158 = vrcp.f32 %v1156_v57 }
 0xe62   : > { %v3157_v5 = vpop.eup %3156 }
 0xe63   : > { %v1181_v12 = vsub.f32 1.0, %v3157_v5  ;;  %v1187_v21 = vmul.f32 %v3157_v5, %v1086_v33 }
 0xe64   : > { %v3159_v16 = vpop.eup %3158 }
 0xe65   : > { %v1195_v46 = vmul.f32 %v3159_v16, %v3834_v50 }
 0xeb3   : > { %v1161_v34 = vpop.permute.xlu1 %1160 }
 0xeb4   : > { %v1163_v42 = vmul.f32 %v3157_v5, %v1161_v34 }
 0xeb5   : > { %v1172_v25 = vpop.permute.xlu0 %1171 }
 0xeb6   : > { %v1174_v40 = vmul.f32 %v3159_v16, %v1172_v25  ;;  %1165 = vrot.lane.b32.xlu1 %v1163_v42, %s4577_s21 }
 0xeb8   : > { %1176 = vrot.lane.b32.xlu0 %v1174_v40, %s4577_s21 }
 0xf28   : > { %v1166_v54 = vpop.permute.xlu1 %1165 }
 0xf29   : > { %v1168_v24 = vadd.f32 %v1166_v54, %v3696_v7  ;;  %v1189_v7 = vsub.f32 1.0, %v3159_v16 }
 0xf2a   : > { %v1177_v59 = vpop.permute.xlu0 %1176 }
 0xf2b   : > { %3160 = vtanh.f32 %v1168_v24  ;;  %v1179_v39 = vadd.f32 %v1177_v59, %v3679_v38 }
 0xf2d   : > { %3162 = vtanh.f32 %v1179_v39 }
 0xf38   : > { %v3161_v27 = vpop.eup %3160 }
 0xf39   : > { %1183 = vrot.lane.b32.xlu1 %v3161_v27, %s4579_s25 }
 0xf3a   : > { %v3163_v17 = vpop.eup %3162 }
 0xf3b   : > { %1191 = vrot.lane.b32.xlu0 %v3163_v17, %s4579_s25 }
 0xfab   : > { %v1184_v56 = vpop.permute.xlu1 %1183 }
 0xfac   : > { %v1186_v51 = vmul.f32 %v1184_v56, %v1181_v12 }
 0xfad   : > { %v1192_v32 = vpop.permute.xlu0 %1191 }
 0xfae   : > { %v1188_v28 = vadd.f32 %v1187_v21, %v1186_v51  ;;  %v1194_v36 = vmul.f32 %v1192_v32, %v1189_v7 }
 0xfb0   : > { %1198 = vrot.lane.b32.xlu1 %v1188_v28, %s4579_s25  ;;  %v3864_v38 = vadd.f32 %v1195_v46, %v1194_v36 }
0x1022   : > { %v3866_v48 = vpop.permute.xlu1 %1198 }
0x1023   : > { %v1201_v1 = vsel %vm690_vm1, %v3866_v48, %v3864_v38 }
0x1024   : > { %v1202_v52 = vpack.c.bf16 %v1201_v1, %v1201_v1 }
0x1026   : > { %2971 = vmatmul.mubr.msk.bf16.vlgmr.msra.gmra.mxu0 %vm589_vm2, %v1202_v52 }
0x1027   : > { %1547 = vmatprep.mubr.bf16.mxu0 %v3366_v15 }
0x10e6   : > { %v1240_v33 = vpop.f32.mrf.mxu0 }
0x10e7   : > { %v1241_v55 = vadd.f32 %v1240_v33, %v3676_v35 }
0x10e8   : > { %v1242_v57 = vpop.f32.mrf.mxu0 }
0x10e9   : > { %v1243_v5 = vadd.f32 %v1242_v57, %v3685_v49  ;;  %1262 = vrot.lane.b32.xlu0 %v1241_v55, %s4577_s21  ;;  %v1247_v16 = vadd.f32 %v1241_v55, %v3700_v19 }
0x10ea   : > { %v1244_v34 = vpop.f32.mrf.mxu0 }
0x10eb   : > { %1273 = vrot.lane.b32.xlu1 %v1243_v5, %s4577_s21  ;;  %v1254_v25 = vadd.f32 %v1243_v5, %v3671_v30  ;;  %v2972_v40 = vmul.f32 -1.442695, %v1247_v16 }
0x10ec   : > { %v1245_v42 = vpop.f32.mrf.mxu0 }
0x10ed   : > { %v2973_v54 = vmul.f32 -1.442695, %v1254_v25  ;;  %3164 = vpow2.f32 %v2972_v40 }
0x10ef   : > { %3166 = vpow2.f32 %v2973_v54 }
0x10fa   : > { %v3165_v24 = vpop.eup %3164 }
0x10fb   : > { %v1251_v39 = vadd.f32 1.0, %v3165_v24 }
0x10fc   : > { %v3167_v59 = vpop.eup %3166 }
0x10fd   : > { %v1258_v27 = vadd.f32 1.0, %v3167_v59  ;;  %3168 = vrcp.f32 %v1251_v39 }
0x10ff   : > { %3170 = vrcp.f32 %v1258_v27 }
0x110a   : > { %v3169_v17 = vpop.eup %3168 }
0x110b   : > { %v1283_v55 = vsub.f32 1.0, %v3169_v17  ;;  %v1289_v5 = vmul.f32 %v3169_v17, %v1188_v28 }
0x110c   : > { %v3171_v21 = vpop.eup %3170 }
0x110d   : > { %v1291_v16 = vsub.f32 1.0, %v3171_v21 }
0x115b   : > { %v1263_v12 = vpop.permute.xlu0 %1262 }
0x115c   : > { %v1265_v56 = vmul.f32 %v3169_v17, %v1263_v12 }
0x115d   : > { %v1274_v51 = vpop.permute.xlu1 %1273 }
0x115e   : > { %v1276_v32 = vmul.f32 %v3171_v21, %v1274_v51  ;;  %1267 = vrot.lane.b32.xlu0 %v1265_v56, %s4577_s21 }
0x1160   : > { %1278 = vrot.lane.b32.xlu1 %v1276_v32, %s4577_s21 }
0x11d0   : > { %v1268_v7 = vpop.permute.xlu0 %1267 }
0x11d1   : > { %v1270_v36 = vadd.f32 %v1268_v7, %v3700_v19 }
0x11d2   : > { %v1279_v46 = vpop.permute.xlu1 %1278 }
0x11d3   : > { %3172 = vtanh.f32 %v1270_v36  ;;  %v1281_v1 = vadd.f32 %v1279_v46, %v3671_v30  ;;  %v1297_v30 = vmul.f32 %v3171_v21, %v3864_v38 }
0x11d5   : > { %3174 = vtanh.f32 %v1281_v1 }
0x11e0   : > { %v3173_v52 = vpop.eup %3172 }
0x11e1   : > { %1285 = vrot.lane.b32.xlu0 %v3173_v52, %s4579_s25 }
0x11e2   : > { %v3175_v33 = vpop.eup %3174 }
0x11e3   : > { %1293 = vrot.lane.b32.xlu1 %v3175_v33, %s4579_s25 }
0x1253   : > { %v1286_v57 = vpop.permute.xlu0 %1285 }
0x1254   : > { %v1288_v34 = vmul.f32 %v1286_v57, %v1283_v55 }
0x1255   : > { %v1294_v19 = vpop.permute.xlu1 %1293 }
0x1256   : > { %v3885_v42 = vadd.f32 %v1289_v5, %v1288_v34  ;;  %v1296_v25 = vmul.f32 %v1294_v19, %v1291_v16  ;;  %v1442_v34 = vld [vmem:[%s4568_s3 + $0xe8] sm:$0xff]  ;;  %v1444_v19 = vld [vmem:[%s4568_s3 + $0xf8] sm:$0xff]  ;;  %v1441_v16 = vld [vmem:[%s4568_s3 + $0xe0] sm:$0xff] }
0x1258   : > { %1300 = vrot.lane.b32.xlu0 %v3885_v42, %s4579_s25  ;;  %v3890_v40 = vadd.f32 %v1297_v30, %v1296_v25  ;;  %v3922_v25 = vpack.c.bf16 %v1444_v19, %v1442_v34  ;;  %v1443_v30 = vld [vmem:[%s4568_s3 + $0xf0] sm:$0xff]  ;;  %v1424_v19 = vld [vmem:[%s4568_s3 + $0x58] sm:$0xff]  ;;  %s4586_s25 = sadd.s32 4294967295, %s3364_s16  }
0x125a   : > { %1596 = vmatprep.subr.bf16.mxu1 %v3922_v25 }
0x12ca   : > { %v3892_v54 = vpop.permute.xlu0 %1300 }
0x12cb   : > { %v1303_v24 = vsel %vm690_vm1, %v3892_v54, %v3890_v40 }
0x12cc   : > { %v1304_v28 = vpack.c.bf16 %v1303_v24, %v1303_v24  ;;  %v1438_v24 = vld [vmem:[%s4568_s3 + $0xc8] sm:$0xff] }
0x12ce   : > { %2974 = vmatmul.mubr.msk.bf16.vlgmr.msra.gmra.mxu1 %vm589_vm2, %v1304_v28  ;;  %v1440_v28 = vld [vmem:[%s4568_s3 + $0xd8] sm:$0xff] }
0x12cf   : > { %1620 = vmatprep.mubr.bf16.mxu1 %v3366_v15 }
0x138e   : > { %v1342_v59 = vpop.f32.mrf.mxu1 }
0x138f   : > { %v1343_v39 = vadd.f32 %v1342_v59, %v3676_v35  ;;  %v3933_v59 = vpack.c.bf16 %v1443_v30, %v1441_v16  ;;  %v1421_v16 = vld [vmem:[%s4568_s3 + $0x40] sm:$0xff]  ;;  %v1423_v30 = vld [vmem:[%s4568_s3 + $0x50] sm:$0xff] }
0x1390   : > { %v1344_v27 = vpop.f32.mrf.mxu1 }
0x1391   : > { %v1345_v17 = vadd.f32 %v1344_v27, %v3685_v49  ;;  %1364 = vrot.lane.b32.xlu1 %v1343_v39, %s4577_s21  ;;  %v1349_v21 = vadd.f32 %v1343_v39, %v3704_v31  ;;  %v3935_v39 = vpack.c.bf16 %v1440_v28, %v1438_v24  ;;  %v1437_v27 = vld [vmem:[%s4568_s3 + $0xc0] sm:$0xff]  ;;  %1597 = vmatpush1.bf16.msra.mxu1 %v3933_v59 }
0x1392   : > { %v1346_v12 = vpop.f32.mrf.mxu1 }
0x1393   : > { %1375 = vrot.lane.b32.xlu0 %v1345_v17, %s4577_s21  ;;  %v1356_v51 = vadd.f32 %v1345_v17, %v3663_v23  ;;  %v2975_v32 = vmul.f32 -1.442695, %v1349_v21  ;;  %v1439_v17 = vld [vmem:[%s4568_s3 + $0xd0] sm:$0xff]  ;;  %v1434_v12 = vld [vmem:[%s4568_s3 + $0xa8] sm:$0xff]  ;;  %1598 = vmatprep.subr.bf16.mxu1 %v3935_v39 }
0x1394   : > { %v1347_v56 = vpop.f32.mrf.mxu1  ;;  %v3951_v21 = vpack.c.bf16 %v1439_v17, %v1437_v27  ;;  %v1429_v17 = vld [vmem:[%s4568_s3 + $0x80] sm:$0xff] }
0x1395   : > { %v2976_v7 = vmul.f32 -1.442695, %v1356_v51  ;;  %3176 = vpow2.f32 %v2975_v32  ;;  %v1436_v56 = vld [vmem:[%s4568_s3 + $0xb8] sm:$0xff]  ;;  %v1433_v51 = vld [vmem:[%s4568_s3 + $0xa0] sm:$0xff]  ;;  %v1435_v32 = vld [vmem:[%s4568_s3 + $0xb0] sm:$0xff] }
0x1396   : > { %1599 = vmatpush1.bf16.msra.mxu1 %v3951_v21  ;;  %v3993_v24 = vpack.c.bf16 %v1435_v32, %v1433_v51 }
0x1397   : > { %3178 = vpow2.f32 %v2976_v7  ;;  %v1430_v7 = vld [vmem:[%s4568_s3 + $0x88] sm:$0xff] }
0x13a2   : > { %v3177_v36 = vpop.eup %3176 }
0x13a3   : > { %v1353_v35 = vadd.f32 1.0, %v3177_v36  ;;  %v3963_v36 = vpack.c.bf16 %v1436_v56, %v1434_v12  ;;  %v1431_v12 = vld [vmem:[%s4568_s3 + $0x90] sm:$0xff]  ;;  %v1449_v56 = vpack.c.bf16 %v1423_v30, %v1421_v16 }
0x13a4   : > { %v3179_v46 = vpop.eup %3178  ;;  %v4005_v51 = vpack.c.bf16 %v1431_v12, %v1429_v17  ;;  %v1415_v16 = vld [vmem:[%s4568_s3 + $0x10] sm:$0xff]  ;;  %v4052_v12 = vld [vmem:[%s4569_s4] sm:$0xf] }
0x13a5   : > { %v1360_v1 = vadd.f32 1.0, %v3179_v46  ;;  %3180 = vrcp.f32 %v1353_v35  ;;  %v1432_v46 = vld [vmem:[%s4568_s3 + $0x98] sm:$0xff]  ;;  %v1426_v35 = vld [vmem:[%s4568_s3 + $0x68] sm:$0xff]  ;;  %1600 = vmatprep.subr.bf16.mxu1 %v3963_v36 }
0x13a6   : > { %v3996_v27 = vpack.c.bf16 %v1432_v46, %v1430_v7  ;;  %1601 = vmatpush1.bf16.msra.mxu1 %v3993_v24  ;;  %v1418_v46 = vld [vmem:[%s4568_s3 + $0x28] sm:$0xff] }
0x13a7   : > { %3182 = vrcp.f32 %v1360_v1  ;;  %v1428_v1 = vld [vmem:[%s4568_s3 + $0x78] sm:$0xff] }
0x13a8   : > { %1602 = vmatprep.subr.bf16.mxu1 %v3996_v27 }
0x13aa   : > { %1603 = vmatpush1.bf16.msra.mxu1 %v4005_v51 }
0x13ab   : > { %1698 = vmatprep.subr.bf16.mxu1 %v3922_v25 }
0x13ad   : > { %1621 = vmatmul.mubr.bf16.vlgmr.msra.gmra.mxu1 %v3367_v6 }
0x13ae   : > { %1699 = vmatpush1.bf16.msra.mxu1 %v3933_v59  ;;  %1722 = vmatprep.mubr.bf16.mxu1 %v3366_v15 }
0x13af   : > { %1700 = vmatprep.subr.bf16.mxu1 %v3935_v39 }
0x13b2   : > { %v3905_v49 = vpop.eup %3180  ;;  %1701 = vmatpush1.bf16.msra.mxu1 %v3951_v21 }
0x13b3   : > { %1702 = vmatprep.subr.bf16.mxu1 %v3963_v36 }
0x13b4   : > { %v3908_v55 = vpop.eup %3182 }
0x13b6   : > { %1703 = vmatpush1.bf16.msra.mxu1 %v3993_v24 }
0x13b7   : > { %1704 = vmatprep.subr.bf16.mxu1 %v3996_v27 }
0x13ba   : > { %1705 = vmatpush1.bf16.msra.mxu1 %v4005_v51 }
0x13bb   : > { %1902 = vmatprep.subr.bf16.mxu1 %v3922_v25 }
0x1403   : > { %v1365_v52 = vpop.permute.xlu1 %1364 }
0x1404   : > { %v1367_v33 = vmul.f32 %v3905_v49, %v1365_v52  ;;  %v1452_v52 = vpack.c.bf16 %v1428_v1, %v1426_v35  ;;  %v1420_v35 = vld [vmem:[%s4568_s3 + $0x38] sm:$0xff] }
0x1405   : > { %v1376_v57 = vpop.permute.xlu0 %1375 }
0x1406   : > { %v1378_v5 = vmul.f32 %v3908_v55, %v1376_v57  ;;  %1369 = vrot.lane.b32.xlu1 %v1367_v33, %s4577_s21  ;;  %v1425_v33 = vld [vmem:[%s4568_s3 + $0x60] sm:$0xff]  ;;  %v1427_v57 = vld [vmem:[%s4568_s3 + $0x70] sm:$0xff]  ;;  %1523 = vmatprep.subr.bf16.mxu0 %v1452_v52  ;;  %v1448_v52 = vpack.c.bf16 %v1420_v35, %v1418_v46 }
0x1407   : > { %v1451_v34 = vpack.c.bf16 %v1427_v57, %v1425_v33  ;;  %v1417_v33 = vld [vmem:[%s4568_s3 + $0x20] sm:$0xff] }
0x1408   : > { %1380 = vrot.lane.b32.xlu0 %v1378_v5, %s4577_s21  ;;  %v1422_v5 = vld [vmem:[%s4568_s3 + $0x48] sm:$0xff] }
0x1409   : > { %v1450_v28 = vpack.c.bf16 %v1424_v19, %v1422_v5  ;;  %1524 = vmatpush1.bf16.msra.mxu0 %v1451_v34  ;;  %v1414_v5 = vld [vmem:[%s4568_s3 + $0x8] sm:$0xff]  ;;  %v1413_v19 = vld [vmem:[%s4568_s3] sm:$0xff] }
0x140a   : > { %v1445_v30 = vpack.c.bf16 %v1415_v16, %v1413_v19 }
0x140b   : > { %1525 = vmatprep.subr.bf16.mxu0 %v1450_v28 }
0x140d   : > { %1526 = vmatpush1.bf16.msra.mxu0 %v1449_v56  ;;  %v1466_v56 = vrot.slane %v4052_v12, %v3660_v20 }
0x140e   : > { %1527 = vmatprep.subr.bf16.mxu0 %v1448_v52 }
0x1478   : > { %v1370_v32 = vpop.permute.xlu1 %1369 }
0x1479   : > { %v1372_v6 = vadd.f32 %v1370_v32, %v3704_v31  ;;  %v1419_v31 = vld [vmem:[%s4568_s3 + $0x30] sm:$0xff]  ;;  %v4057_v32 = vrot.slane %v1466_v56, %v3660_v20 }
0x147a   : > { %v1381_v7 = vpop.permute.xlu0 %1380  ;;  %v1447_v57 = vpack.c.bf16 %v1419_v31, %v1417_v33  ;;  %v1385_v33 = vsub.f32 1.0, %v3905_v49 }
0x147b   : > { %3184 = vtanh.f32 %v1372_v6  ;;  %v1383_v1 = vadd.f32 %v1381_v7, %v3663_v23  ;;  %v1416_v23 = vld [vmem:[%s4568_s3 + $0x18] sm:$0xff]  ;;  %v1622_v6 = vpop.f32.mrf.mxu1 }
0x147c   : > { %1528 = vmatpush1.bf16.msra.mxu0 %v1447_v57  ;;  %v1446_v34 = vpack.c.bf16 %v1416_v23, %v1414_v5  ;;  %v1623_v7 = vadd.f32 %v1622_v6, %v4057_v32  ;;  %v1391_v57 = vmul.f32 %v3905_v49, %v3885_v42  ;;  %v1393_v23 = vsub.f32 1.0, %v3908_v55 }
0x147d   : > { %3186 = vtanh.f32 %v1383_v1  ;;  %v1624_v46 = vpop.f32.mrf.mxu1  ;;  %v1470_v1 = vrot.slane %v4052_v12, %v3669_v29  ;;  %v1406_v42 = vsel %vm690_vm1, %v3744_v37, %v3890_v40 }
0x147e   : > { %1529 = vmatprep.subr.bf16.mxu0 %v1446_v34 }
0x147f   : > { %v1626_v35 = vpop.f32.mrf.mxu1  ;;  %v4068_v34 = vrot.slane %v1470_v1, %v3660_v20 }
0x1480   : > { %1530 = vmatpush1.bf16.msra.mxu0 %v1445_v30  ;;  %v1399_v30 = vmul.f32 %v3908_v55, %v3890_v40  ;;  %v1407_v55 = vsel %vm690_vm1, %v3775_v45, %v3864_v38  ;;  %v1410_v45 = vsel %vm690_vm1, %v3866_v48, %v3773_v13  ;;  %v1411_v40 = vsel %vm690_vm1, %v3892_v54, %v3742_v26 }
0x1481   : > { %1800 = vmatprep.subr.bf16.mxu0 %v3922_v25  ;;  %v1627_v52 = vpop.f32.mrf.mxu1  ;;  %v4074_v56 = vadd.f32 %v1624_v46, %v4068_v34 }
0x1488   : > { %v3185_v28 = vpop.eup %3184 }
0x1489   : > { %1387 = vrot.lane.b32.xlu1 %v3185_v28, %s4583_s17 }
0x148a   : > { %v3187_v17 = vpop.eup %3186 }
0x148b   : > { %1395 = vrot.lane.b32.xlu0 %v3187_v17, %s4583_s17 }
0x148f   : > { %1644 = vrot.lane.b32.xlu0 %v1623_v7, %s4584_s29 }
0x14fb   : > { %v1388_v31 = vpop.permute.xlu1 %1387 }
0x14fc   : > { %v1390_v5 = vmul.f32 %v1388_v31, %v1385_v33 }
0x14fd   : > { %v1396_v19 = vpop.permute.xlu0 %1395 }
0x14fe   : > { %v1392_v16 = vadd.f32 %v1391_v57, %v1390_v5  ;;  %v1398_v28 = vmul.f32 %v1396_v19, %v1393_v23 }
0x1500   : > { %v1400_v17 = vadd.f32 %v1399_v30, %v1398_v28  ;;  %1402 = vrot.lane.b32.xlu1 %v1392_v16, %s4583_s17 }
0x1502   : > { %v1405_v49 = vsel %vm690_vm1, %v3713_v22, %v1400_v17  ;;  %v1408_v22 = vsel %vm690_vm1, %v3806_v14, %v3834_v50  ;;  %v1409_v14 = vsel %vm690_vm1, %v3836_v18, %v3804_v58  ;;  %v1488_v58 = vrot.slane %v4052_v12, %v3651_v11 }
0x1503   : > { %v1481_v6 = vpack.c.bf16 %v1406_v42, %v1405_v49  ;;  %v1482_v37 = vpack.c.bf16 %v1408_v22, %v1407_v55  ;;  %v1483_v50 = vpack.c.bf16 %v1410_v45, %v1409_v14  ;;  %v1492_v55 = vrot.slane %v4052_v12, %v3648_v10 }
0x1504   : > { %1655 = vrot.lane.b32.xlu1 %v4074_v56, %s4584_s29  ;;  %v4119_v18 = vrot.slane %v1488_v58, %v3651_v11 }
0x1505   : > { %2977 = vmatmul.mubr.msk.bf16.vlgmr.msra.gmra.mxu0 %vm589_vm2, %v1481_v6  ;;  %v4152_v45 = vrot.slane %v1492_v55, %v3651_v11 }
0x1506   : > { %1557 = vmatprep.mubr.bf16.mxu0 %v3366_v15  ;;  %1801 = vmatpush1.bf16.msra.mxu0 %v3933_v59 }
0x1507   : > { %1802 = vmatprep.subr.bf16.mxu0 %v3935_v39 }
0x150a   : > { %1803 = vmatpush1.bf16.msra.mxu0 %v3951_v21 }
0x150b   : > { %1804 = vmatprep.subr.bf16.mxu0 %v3963_v36 }
0x150d   : > { %2978 = vmatmul.mubr.msk.bf16.gmra.mxu0 %vm589_vm2, %v1482_v37 }
0x150e   : > { %1567 = vmatprep.mubr.bf16.mxu0 %v3366_v15  ;;  %1805 = vmatpush1.bf16.msra.mxu0 %v3993_v24 }
0x150f   : > { %1806 = vmatprep.subr.bf16.mxu0 %v3996_v27 }
0x1512   : > { %1807 = vmatpush1.bf16.msra.mxu0 %v4005_v51 }
0x1513   : > { %2004 = vmatprep.subr.bf16.mxu0 %v3922_v25 }
0x1515   : > { %2979 = vmatmul.mubr.msk.bf16.gmra.mxu0 %vm589_vm2, %v1483_v50 }
0x1516   : > { %1577 = vmatprep.mubr.bf16.mxu0 %v3366_v15 }
0x1572   : > { %v1403_v38 = vpop.permute.xlu1 %1402 }
0x1573   : > { %v1412_v13 = vsel %vm690_vm1, %v1403_v38, %v3711_v41  ;;  %v1645_v41 = vpop.permute.xlu0 %1644 }
0x1574   : > { %v1484_v48 = vpack.c.bf16 %v1412_v13, %v1411_v40 }
0x1576   : > { %2980 = vmatmul.mubr.msk.bf16.gmra.mxu0 %vm589_vm2, %v1484_v48  ;;  %v1656_v12 = vpop.permute.xlu1 %1655 }
0x1577   : > { %1824 = vmatprep.mubr.bf16.mxu0 %v3366_v15 }
0x15c5   : > { %v1549_v46 = vpop.f32.mrf.mxu0 }
0x15c6   : > { %v1550_v35 = vadd.f32 %v1549_v46, %v4119_v18 }
0x15c7   : > { %v4123_v57 = vpop.f32.mrf.mxu0 }
0x15c8   : > { %v1629_v1 = vadd.f32 %v1623_v7, %v1550_v35 }
0x15c9   : > { %v4125_v5 = vpop.f32.mrf.mxu0 }
0x15ca   : > { %v2981_v52 = vmul.f32 -1.442695, %v1629_v1 }
0x15cb   : > { %v4127_v23 = vpop.f32.mrf.mxu0 }
0x15cc   : > { %3188 = vpow2.f32 %v2981_v52 }
0x15cd   : > { %v4129_v19 = vpop.f32.mrf.mxu0 }
0x15cf   : > { %v4131_v16 = vpop.f32.mrf.mxu0 }
0x15d1   : > { %v4133_v7 = vpop.f32.mrf.mxu0 }
0x15d3   : > { %v4135_v30 = vpop.f32.mrf.mxu0 }
0x15d5   : > { %v4137_v28 = vpop.f32.mrf.mxu0 }
0x15d7   : > { %v4139_v17 = vpop.f32.mrf.mxu0 }
0x15d9   : > { %v3189_v26 = vpop.eup %3188  ;;  %v4141_v42 = vpop.f32.mrf.mxu0 }
0x15da   : > { %v1633_v54 = vadd.f32 1.0, %v3189_v26 }
0x15db   : > { %v4143_v49 = vpop.f32.mrf.mxu0 }
0x15dc   : > { %3190 = vrcp.f32 %v1633_v54 }
0x15e9   : > { %v3191_v33 = vpop.eup %3190 }
0x15ea   : > { %v1647_v31 = vmul.f32 %v3191_v33, %v1645_v41  ;;  %v1671_v55 = vmul.f32 0.0, %v3191_v33 }
0x15ec   : > { %1649 = vrot.lane.b32.xlu0 %v1647_v31, %s4584_s29 }
0x1636   : > { %v4145_v6 = vpop.f32.mrf.mxu0 }
0x1638   : > { %v1581_v22 = vpop.f32.mrf.mxu0 }
0x163a   : > { %v4149_v37 = vpop.f32.mrf.mxu0 }
0x163c   : > { %v1585_v14 = vpop.f32.mrf.mxu0 }
0x163d   : > { %v1586_v50 = vadd.f32 %v1585_v14, %v4152_v45 }
0x163f   : > { %v1636_v38 = vadd.f32 %v4074_v56, %v1586_v50  ;;  %v1665_v56 = vsub.f32 1.0, %v3191_v33 }
0x1641   : > { %v2982_v40 = vmul.f32 -1.442695, %v1636_v38 }
0x1643   : > { %3192 = vpow2.f32 %v2982_v40 }
0x1650   : > { %v3193_v13 = vpop.eup %3192 }
0x1651   : > { %v1640_v48 = vadd.f32 1.0, %v3193_v13 }
0x1653   : > { %3194 = vrcp.f32 %v1640_v48 }
0x165e   : > { %v1650_v58 = vpop.permute.xlu0 %1649 }
0x165f   : > { %v1652_v46 = vadd.f32 %v1650_v58, %v1550_v35 }
0x1660   : > { %v3195_v1 = vpop.eup %3194 }
0x1661   : > { %3196 = vtanh.f32 %v1652_v46  ;;  %v1658_v52 = vmul.f32 %v3195_v1, %v1656_v12  ;;  %v1673_v35 = vsub.f32 1.0, %v3195_v1  ;;  %v1679_v48 = vmul.f32 0.0, %v3195_v1 }
0x1663   : > { %1660 = vrot.lane.b32.xlu1 %v1658_v52, %s4584_s29 }
0x166e   : > { %v3197_v26 = vpop.eup %3196 }
0x166f   : > { %1667 = vrot.lane.b32.xlu0 %v3197_v26, %s4583_s17 }
0x16d5   : > { %v1661_v54 = vpop.permute.xlu1 %1660 }
0x16d6   : > { %v1663_v41 = vadd.f32 %v1661_v54, %v1586_v50 }
0x16d8   : > { %3198 = vtanh.f32 %v1663_v41 }
0x16e1   : > { %v1668_v31 = vpop.permute.xlu0 %1667 }
0x16e2   : > { %v1670_v14 = vmul.f32 %v1668_v31, %v1665_v56  ;;  %v1554_v31 = vadd.f32 %v4125_v5, %v4119_v18 }
0x16e4   : > { %v4158_v38 = vadd.f32 %v1671_v55, %v1670_v14  ;;  %v1582_v55 = vadd.f32 %v1581_v22, %v4152_v45 }
0x16e5   : > { %v3199_v40 = vpop.eup %3198 }
0x16e6   : > { %1682 = vrot.lane.b32.xlu0 %v4158_v38, %s4583_s17  ;;  %1675 = vrot.lane.b32.xlu1 %v3199_v40, %s4583_s17 }
0x1758   : > { %v1676_v13 = vpop.permute.xlu1 %1675  ;;  %v4165_v50 = vpop.permute.xlu0 %1682 }
0x1759   : > { %v1678_v58 = vmul.f32 %v1676_v13, %v1673_v35 }
0x175b   : > { %v4163_v46 = vadd.f32 %v1679_v48, %v1678_v58 }
0x175d   : > { %v1685_v33 = vsel %vm690_vm1, %v4165_v50, %v4163_v46 }
0x175e   : > { %v1686_v12 = vpack.c.bf16 %v1685_v33, %v1685_v33 }
0x1760   : > { %2983 = vmatmul.mubr.msk.bf16.vlgmr.msra.gmra.mxu1 %vm589_vm2, %v1686_v12 }
0x1761   : > { %1903 = vmatpush1.bf16.msra.mxu1 %v3933_v59  ;;  %1926 = vmatprep.mubr.bf16.mxu1 %v3366_v15 }
0x1762   : > { %1904 = vmatprep.subr.bf16.mxu1 %v3935_v39 }
0x1765   : > { %1905 = vmatpush1.bf16.msra.mxu1 %v3951_v21 }
0x1766   : > { %1906 = vmatprep.subr.bf16.mxu1 %v3963_v36 }
0x1769   : > { %1907 = vmatpush1.bf16.msra.mxu1 %v3993_v24 }
0x176a   : > { %1908 = vmatprep.subr.bf16.mxu1 %v3996_v27 }
0x176d   : > { %1909 = vmatpush1.bf16.msra.mxu1 %v4005_v51 }
0x176e   : > { %2106 = vmatprep.subr.bf16.mxu1 %v3922_v25 }
0x1820   : > { %v1724_v1 = vpop.f32.mrf.mxu1 }
0x1821   : > { %v1725_v52 = vadd.f32 %v1724_v1, %v4057_v32 }
0x1822   : > { %v1726_v26 = vpop.f32.mrf.mxu1 }
0x1823   : > { %v1727_v54 = vadd.f32 %v1726_v26, %v4068_v34  ;;  %1746 = vrot.lane.b32.xlu1 %v1725_v52, %s4584_s29  ;;  %v1731_v14 = vadd.f32 %v1725_v52, %v1554_v31 }
0x1824   : > { %v1728_v41 = vpop.f32.mrf.mxu1 }
0x1825   : > { %1757 = vrot.lane.b32.xlu0 %v1727_v54, %s4584_s29  ;;  %v1738_v40 = vadd.f32 %v1727_v54, %v1582_v55  ;;  %v2984_v35 = vmul.f32 -1.442695, %v1731_v14 }
0x1826   : > { %v1729_v56 = vpop.f32.mrf.mxu1 }
0x1827   : > { %v2985_v13 = vmul.f32 -1.442695, %v1738_v40  ;;  %3200 = vpow2.f32 %v2984_v35 }
0x1829   : > { %3202 = vpow2.f32 %v2985_v13 }
0x1834   : > { %v3201_v48 = vpop.eup %3200 }
0x1835   : > { %v1735_v33 = vadd.f32 1.0, %v3201_v48 }
0x1836   : > { %v3203_v58 = vpop.eup %3202 }
0x1837   : > { %v1742_v12 = vadd.f32 1.0, %v3203_v58  ;;  %3204 = vrcp.f32 %v1735_v33 }
0x1839   : > { %3206 = vrcp.f32 %v1742_v12 }
0x1844   : > { %v3205_v1 = vpop.eup %3204 }
0x1845   : > { %v1767_v13 = vsub.f32 1.0, %v3205_v1 }
0x1846   : > { %v3207_v56 = vpop.eup %3206 }
0x1895   : > { %v1747_v26 = vpop.permute.xlu1 %1746 }
0x1896   : > { %v1749_v41 = vmul.f32 %v3205_v1, %v1747_v26 }
0x1897   : > { %v1758_v3 = vpop.permute.xlu0 %1757 }
0x1898   : > { %v1760_v5 = vmul.f32 %v3207_v56, %v1758_v3  ;;  %1751 = vrot.lane.b32.xlu1 %v1749_v41, %s4584_s29  ;;  %v1773_v3 = vmul.f32 %v3205_v1, %v4158_v38 }
0x189a   : > { %1762 = vrot.lane.b32.xlu0 %v1760_v5, %s4584_s29 }
0x190a   : > { %v1752_v22 = vpop.permute.xlu1 %1751 }
0x190b   : > { %v1754_v52 = vadd.f32 %v1752_v22, %v1554_v31  ;;  %v1775_v31 = vsub.f32 1.0, %v3207_v56 }
0x190c   : > { %v1763_v54 = vpop.permute.xlu0 %1762 }
0x190d   : > { %3208 = vtanh.f32 %v1754_v52  ;;  %v1765_v14 = vadd.f32 %v1763_v54, %v1582_v55  ;;  %v1781_v55 = vmul.f32 %v3207_v56, %v4163_v46 }
0x190f   : > { %3210 = vtanh.f32 %v1765_v14 }
0x191a   : > { %v3209_v40 = vpop.eup %3208 }
0x191b   : > { %1769 = vrot.lane.b32.xlu1 %v3209_v40, %s4583_s17 }
0x191c   : > { %v3211_v35 = vpop.eup %3210 }
0x191d   : > { %1777 = vrot.lane.b32.xlu0 %v3211_v35, %s4583_s17  ;;  %v1560_v35 = vadd.f32 %v4129_v19, %v4119_v18 }
0x198d   : > { %v1770_v48 = vpop.permute.xlu1 %1769 }
0x198e   : > { %v1772_v58 = vmul.f32 %v1770_v48, %v1767_v13  ;;  %v1576_v13 = vadd.f32 %v4143_v49, %v4152_v45 }
0x198f   : > { %v1778_v12 = vpop.permute.xlu0 %1777 }
0x1990   : > { %v1774_v33 = vadd.f32 %v1773_v3, %v1772_v58  ;;  %v1780_v26 = vmul.f32 %v1778_v12, %v1775_v31 }
0x1992   : > { %1784 = vrot.lane.b32.xlu1 %v1774_v33, %s4583_s17  ;;  %v4194_v41 = vadd.f32 %v1781_v55, %v1780_v26 }
0x1a04   : > { %v4196_v5 = vpop.permute.xlu1 %1784 }
0x1a05   : > { %v1787_v22 = vsel %vm690_vm1, %v4196_v5, %v4194_v41 }
0x1a06   : > { %v1788_v52 = vpack.c.bf16 %v1787_v22, %v1787_v22 }
0x1a08   : > { %2986 = vmatmul.mubr.msk.bf16.vlgmr.msra.gmra.mxu0 %vm589_vm2, %v1788_v52 }
0x1a09   : > { %2005 = vmatpush1.bf16.msra.mxu0 %v3933_v59  ;;  %2028 = vmatprep.mubr.bf16.mxu0 %v3366_v15 }
0x1a0a   : > { %2006 = vmatprep.subr.bf16.mxu0 %v3935_v39 }
0x1a0d   : > { %2007 = vmatpush1.bf16.msra.mxu0 %v3951_v21 }
0x1a0e   : > { %2008 = vmatprep.subr.bf16.mxu0 %v3963_v36 }
0x1a11   : > { %2009 = vmatpush1.bf16.msra.mxu0 %v3993_v24 }
0x1a12   : > { %2010 = vmatprep.subr.bf16.mxu0 %v3996_v27 }
0x1a15   : > { %2011 = vmatpush1.bf16.msra.mxu0 %v4005_v51 }
0x1a16   : > { %2208 = vmatprep.subr.bf16.mxu0 %v3922_v25 }
0x1ac8   : > { %v1826_v38 = vpop.f32.mrf.mxu0 }
0x1ac9   : > { %v1827_v1 = vadd.f32 %v1826_v38, %v4057_v32 }
0x1aca   : > { %v1828_v56 = vpop.f32.mrf.mxu0 }
0x1acb   : > { %v1829_v54 = vadd.f32 %v1828_v56, %v4068_v34  ;;  %1848 = vrot.lane.b32.xlu0 %v1827_v1, %s4584_s29  ;;  %v1833_v48 = vadd.f32 %v1827_v1, %v1560_v35 }
0x1acc   : > { %v1830_v14 = vpop.f32.mrf.mxu0 }
0x1acd   : > { %1859 = vrot.lane.b32.xlu1 %v1829_v54, %s4584_s29  ;;  %v1840_v3 = vadd.f32 %v1829_v54, %v1576_v13  ;;  %v2987_v58 = vmul.f32 -1.442695, %v1833_v48 }
0x1ace   : > { %v1831_v40 = vpop.f32.mrf.mxu0 }
0x1acf   : > { %v2988_v12 = vmul.f32 -1.442695, %v1840_v3  ;;  %3212 = vpow2.f32 %v2987_v58 }
0x1ad1   : > { %3214 = vpow2.f32 %v2988_v12 }
0x1adc   : > { %v3213_v31 = vpop.eup %3212 }
0x1add   : > { %v1837_v55 = vadd.f32 1.0, %v3213_v31 }
0x1ade   : > { %v3215_v26 = vpop.eup %3214 }
0x1adf   : > { %v1844_v22 = vadd.f32 1.0, %v3215_v26  ;;  %3216 = vrcp.f32 %v1837_v55 }
0x1ae1   : > { %3218 = vrcp.f32 %v1844_v22 }
0x1aec   : > { %v3217_v52 = vpop.eup %3216 }
0x1aed   : > { %v1869_v12 = vsub.f32 1.0, %v3217_v52  ;;  %v1875_v26 = vmul.f32 %v3217_v52, %v1774_v33 }
0x1aee   : > { %v3219_v14 = vpop.eup %3218 }
0x1b3d   : > { %v1849_v38 = vpop.permute.xlu0 %1848 }
0x1b3e   : > { %v1851_v56 = vmul.f32 %v3217_v52, %v1849_v38 }
0x1b3f   : > { %v1860_v19 = vpop.permute.xlu1 %1859 }
0x1b40   : > { %v1862_v40 = vmul.f32 %v3219_v14, %v1860_v19  ;;  %1853 = vrot.lane.b32.xlu0 %v1851_v56, %s4584_s29  ;;  %v1877_v56 = vsub.f32 1.0, %v3219_v14  ;;  %v1883_v19 = vmul.f32 %v3219_v14, %v4194_v41 }
0x1b42   : > { %1864 = vrot.lane.b32.xlu1 %v1862_v40, %s4584_s29 }
0x1bb2   : > { %v1854_v49 = vpop.permute.xlu0 %1853 }
0x1bb3   : > { %v1856_v1 = vadd.f32 %v1854_v49, %v1560_v35 }
0x1bb4   : > { %v1865_v54 = vpop.permute.xlu1 %1864 }
0x1bb5   : > { %3220 = vtanh.f32 %v1856_v1  ;;  %v1867_v48 = vadd.f32 %v1865_v54, %v1576_v13 }
0x1bb7   : > { %3222 = vtanh.f32 %v1867_v48 }
0x1bc2   : > { %v3221_v3 = vpop.eup %3220 }
0x1bc3   : > { %1871 = vrot.lane.b32.xlu0 %v3221_v3, %s4583_s17 }
0x1bc4   : > { %v3223_v58 = vpop.eup %3222 }
0x1bc5   : > { %1879 = vrot.lane.b32.xlu1 %v3223_v58, %s4583_s17  ;;  %v1564_v58 = vadd.f32 %v4133_v7, %v4119_v18 }
0x1c35   : > { %v1872_v31 = vpop.permute.xlu0 %1871 }
0x1c36   : > { %v1874_v55 = vmul.f32 %v1872_v31, %v1869_v12  ;;  %v1572_v12 = vadd.f32 %v4139_v17, %v4152_v45 }
0x1c37   : > { %v1880_v38 = vpop.permute.xlu1 %1879 }
0x1c38   : > { %v1876_v22 = vadd.f32 %v1875_v26, %v1874_v55  ;;  %v1882_v35 = vmul.f32 %v1880_v38, %v1877_v56 }
0x1c3a   : > { %1886 = vrot.lane.b32.xlu0 %v1876_v22, %s4583_s17  ;;  %v4225_v13 = vadd.f32 %v1883_v19, %v1882_v35 }
0x1cac   : > { %v4227_v40 = vpop.permute.xlu0 %1886 }
0x1cad   : > { %v1889_v49 = vsel %vm690_vm1, %v4227_v40, %v4225_v13 }
0x1cae   : > { %v1890_v1 = vpack.c.bf16 %v1889_v49, %v1889_v49 }
0x1cb0   : > { %2989 = vmatmul.mubr.msk.bf16.vlgmr.msra.gmra.mxu1 %vm589_vm2, %v1890_v1 }
0x1cb1   : > { %2107 = vmatpush1.bf16.msra.mxu1 %v3933_v59  ;;  %2130 = vmatprep.mubr.bf16.mxu1 %v3366_v15 }
0x1cb2   : > { %2108 = vmatprep.subr.bf16.mxu1 %v3935_v39 }
0x1cb5   : > { %2109 = vmatpush1.bf16.msra.mxu1 %v3951_v21 }
0x1cb6   : > { %2110 = vmatprep.subr.bf16.mxu1 %v3963_v36 }
0x1cb9   : > { %2111 = vmatpush1.bf16.msra.mxu1 %v3993_v24 }
0x1cba   : > { %2112 = vmatprep.subr.bf16.mxu1 %v3996_v27 }
0x1cbd   : > { %2113 = vmatpush1.bf16.msra.mxu1 %v4005_v51 }
0x1cbe   : > { %2310 = vmatprep.subr.bf16.mxu1 %v3922_v25 }
0x1d70   : > { %v1928_v33 = vpop.f32.mrf.mxu1 }
0x1d71   : > { %v1929_v52 = vadd.f32 %v1928_v33, %v4057_v32 }
0x1d72   : > { %v1930_v14 = vpop.f32.mrf.mxu1 }
0x1d73   : > { %v1931_v54 = vadd.f32 %v1930_v14, %v4068_v34  ;;  %1950 = vrot.lane.b32.xlu1 %v1929_v52, %s4584_s29  ;;  %v1935_v31 = vadd.f32 %v1929_v52, %v1564_v58 }
0x1d74   : > { %v1932_v48 = vpop.f32.mrf.mxu1 }
0x1d75   : > { %1961 = vrot.lane.b32.xlu0 %v1931_v54, %s4584_s29  ;;  %v1942_v25 = vadd.f32 %v1931_v54, %v1572_v12  ;;  %v2990_v26 = vmul.f32 -1.442695, %v1935_v31 }
0x1d76   : > { %v1933_v3 = vpop.f32.mrf.mxu1 }
0x1d77   : > { %v2991_v55 = vmul.f32 -1.442695, %v1942_v25  ;;  %3224 = vpow2.f32 %v2990_v26 }
0x1d79   : > { %3226 = vpow2.f32 %v2991_v55 }
0x1d84   : > { %v3225_v38 = vpop.eup %3224 }
0x1d85   : > { %v1939_v35 = vadd.f32 1.0, %v3225_v38 }
0x1d86   : > { %v3227_v56 = vpop.eup %3226 }
0x1d87   : > { %v1946_v19 = vadd.f32 1.0, %v3227_v56  ;;  %3228 = vrcp.f32 %v1939_v35 }
0x1d89   : > { %3230 = vrcp.f32 %v1946_v19 }
0x1d94   : > { %v3229_v49 = vpop.eup %3228 }
0x1d95   : > { %v1971_v26 = vsub.f32 1.0, %v3229_v49  ;;  %v1977_v38 = vmul.f32 %v3229_v49, %v1876_v22 }
0x1d96   : > { %v3231_v14 = vpop.eup %3230 }
0x1de5   : > { %v1951_v1 = vpop.permute.xlu1 %1950 }
0x1de6   : > { %v1953_v33 = vmul.f32 %v3229_v49, %v1951_v1  ;;  %v1979_v1 = vsub.f32 1.0, %v3231_v14 }
0x1de7   : > { %v1962_v7 = vpop.permute.xlu0 %1961 }
0x1de8   : > { %v1964_v48 = vmul.f32 %v3231_v14, %v1962_v7  ;;  %1955 = vrot.lane.b32.xlu1 %v1953_v33, %s4584_s29  ;;  %v1985_v33 = vmul.f32 %v3231_v14, %v4225_v13 }
0x1dea   : > { %1966 = vrot.lane.b32.xlu0 %v1964_v48, %s4584_s29 }
0x1e5a   : > { %v1956_v17 = vpop.permute.xlu1 %1955 }
0x1e5b   : > { %v1958_v52 = vadd.f32 %v1956_v17, %v1564_v58 }
0x1e5c   : > { %v1967_v54 = vpop.permute.xlu0 %1966 }
0x1e5d   : > { %3232 = vtanh.f32 %v1958_v52  ;;  %v1969_v3 = vadd.f32 %v1967_v54, %v1572_v12 }
0x1e5f   : > { %3234 = vtanh.f32 %v1969_v3 }
0x1e6a   : > { %v3233_v31 = vpop.eup %3232 }
0x1e6b   : > { %1973 = vrot.lane.b32.xlu1 %v3233_v31, %s4583_s17  ;;  %v1570_v31 = vadd.f32 %v4137_v28, %v4119_v18 }
0x1e6c   : > { %v3235_v25 = vpop.eup %3234 }
0x1e6d   : > { %1981 = vrot.lane.b32.xlu0 %v3235_v25, %s4583_s17  ;;  %v1566_v25 = vadd.f32 %v4135_v30, %v4152_v45 }
0x1edd   : > { %v1974_v55 = vpop.permute.xlu1 %1973 }
0x1ede   : > { %v1976_v56 = vmul.f32 %v1974_v55, %v1971_v26 }
0x1edf   : > { %v1982_v19 = vpop.permute.xlu0 %1981 }
0x1ee0   : > { %v1978_v35 = vadd.f32 %v1977_v38, %v1976_v56  ;;  %v1984_v58 = vmul.f32 %v1982_v19, %v1979_v1 }
0x1ee2   : > { %1988 = vrot.lane.b32.xlu1 %v1978_v35, %s4583_s17  ;;  %v4256_v12 = vadd.f32 %v1985_v33, %v1984_v58 }
0x1f54   : > { %v4258_v7 = vpop.permute.xlu1 %1988 }
0x1f55   : > { %v1991_v48 = vsel %vm690_vm1, %v4258_v7, %v4256_v12 }
0x1f56   : > { %v1992_v17 = vpack.c.bf16 %v1991_v48, %v1991_v48 }
0x1f58   : > { %2992 = vmatmul.mubr.msk.bf16.vlgmr.msra.gmra.mxu0 %vm589_vm2, %v1992_v17 }
0x1f59   : > { %2209 = vmatpush1.bf16.msra.mxu0 %v3933_v59  ;;  %2232 = vmatprep.mubr.bf16.mxu0 %v3366_v15 }
0x1f5a   : > { %2210 = vmatprep.subr.bf16.mxu0 %v3935_v39 }
0x1f5d   : > { %2211 = vmatpush1.bf16.msra.mxu0 %v3951_v21 }
0x1f5e   : > { %2212 = vmatprep.subr.bf16.mxu0 %v3963_v36 }
0x1f61   : > { %2213 = vmatpush1.bf16.msra.mxu0 %v3993_v24 }
0x1f62   : > { %2214 = vmatprep.subr.bf16.mxu0 %v3996_v27 }
0x1f65   : > { %2215 = vmatpush1.bf16.msra.mxu0 %v4005_v51 }
0x2018   : > { %v2030_v22 = vpop.f32.mrf.mxu0 }
0x2019   : > { %v2031_v49 = vadd.f32 %v2030_v22, %v4057_v32 }
0x201a   : > { %v2032_v14 = vpop.f32.mrf.mxu0 }
0x201b   : > { %v2033_v52 = vadd.f32 %v2032_v14, %v4068_v34  ;;  %2052 = vrot.lane.b32.xlu0 %v2031_v49, %s4584_s29  ;;  %v2037_v26 = vadd.f32 %v2031_v49, %v1570_v31 }
0x201c   : > { %v2034_v54 = vpop.f32.mrf.mxu0 }
0x201d   : > { %2063 = vrot.lane.b32.xlu1 %v2033_v52, %s4584_s29  ;;  %v2044_v55 = vadd.f32 %v2033_v52, %v1566_v25  ;;  %v2993_v38 = vmul.f32 -1.442695, %v2037_v26 }
0x201e   : > { %v2035_v3 = vpop.f32.mrf.mxu0 }
0x201f   : > { %v2994_v56 = vmul.f32 -1.442695, %v2044_v55  ;;  %3236 = vpow2.f32 %v2993_v38 }
0x2021   : > { %3238 = vpow2.f32 %v2994_v56 }
0x202c   : > { %v3237_v19 = vpop.eup %3236 }
0x202d   : > { %v2041_v58 = vadd.f32 1.0, %v3237_v19 }
0x202e   : > { %v3239_v1 = vpop.eup %3238 }
0x202f   : > { %v2048_v33 = vadd.f32 1.0, %v3239_v1  ;;  %3240 = vrcp.f32 %v2041_v58 }
0x2031   : > { %3242 = vrcp.f32 %v2048_v33 }
0x203c   : > { %v3241_v48 = vpop.eup %3240 }
0x203d   : > { %v2073_v38 = vsub.f32 1.0, %v3241_v48  ;;  %v2079_v19 = vmul.f32 %v3241_v48, %v1978_v35 }
0x203e   : > { %v3243_v14 = vpop.eup %3242 }
0x208d   : > { %v2053_v17 = vpop.permute.xlu0 %2052 }
0x208e   : > { %v2055_v22 = vmul.f32 %v3241_v48, %v2053_v17  ;;  %v2081_v17 = vsub.f32 1.0, %v3243_v14 }
0x208f   : > { %v2064_v28 = vpop.permute.xlu1 %2063 }
0x2090   : > { %v2066_v54 = vmul.f32 %v3243_v14, %v2064_v28  ;;  %2057 = vrot.lane.b32.xlu0 %v2055_v22, %s4584_s29  ;;  %v2087_v22 = vmul.f32 %v3243_v14, %v4256_v12 }
0x2092   : > { %2068 = vrot.lane.b32.xlu1 %v2066_v54, %s4584_s29 }
0x2102   : > { %v2058_v30 = vpop.permute.xlu0 %2057 }
0x2103   : > { %v2060_v49 = vadd.f32 %v2058_v30, %v1570_v31 }
0x2104   : > { %v2069_v52 = vpop.permute.xlu1 %2068 }
0x2105   : > { %3244 = vtanh.f32 %v2060_v49  ;;  %v2071_v3 = vadd.f32 %v2069_v52, %v1566_v25 }
0x2107   : > { %3246 = vtanh.f32 %v2071_v3 }
0x2112   : > { %v3245_v26 = vpop.eup %3244 }
0x2113   : > { %2075 = vrot.lane.b32.xlu0 %v3245_v26, %s4583_s17 }
0x2114   : > { %v3247_v55 = vpop.eup %3246 }
0x2115   : > { %2083 = vrot.lane.b32.xlu1 %v3247_v55, %s4583_s17 }
0x2185   : > { %v2076_v56 = vpop.permute.xlu0 %2075 }
0x2186   : > { %v2078_v1 = vmul.f32 %v2076_v56, %v2073_v38 }
0x2187   : > { %v2084_v33 = vpop.permute.xlu1 %2083 }
0x2188   : > { %v2080_v58 = vadd.f32 %v2079_v19, %v2078_v1  ;;  %v2086_v31 = vmul.f32 %v2084_v33, %v2081_v17 }
0x218a   : > { %2090 = vrot.lane.b32.xlu0 %v2080_v58, %s4583_s17  ;;  %v4286_v25 = vadd.f32 %v2087_v22, %v2086_v31 }
0x21fc   : > { %v4288_v28 = vpop.permute.xlu0 %2090 }
0x21fd   : > { %v2093_v54 = vsel %vm690_vm1, %v4288_v28, %v4286_v25 }
0x21fe   : > { %v2094_v30 = vpack.c.bf16 %v2093_v54, %v2093_v54 }
0x2200   : > { %2995 = vmatmul.mubr.msk.bf16.vlgmr.msra.gmra.mxu1 %vm589_vm2, %v2094_v30 }
0x2201   : > { %2311 = vmatpush1.bf16.msra.mxu1 %v3933_v59  ;;  %2334 = vmatprep.mubr.bf16.mxu1 %v3366_v15 }
0x2202   : > { %2312 = vmatprep.subr.bf16.mxu1 %v3935_v39 }
0x2205   : > { %2313 = vmatpush1.bf16.msra.mxu1 %v3951_v21  ;;  %v1574_v21 = vadd.f32 %v4141_v42, %v4119_v18 }
0x2206   : > { %2314 = vmatprep.subr.bf16.mxu1 %v3963_v36  ;;  %v1562_v36 = vadd.f32 %v4131_v16, %v4152_v45 }
0x2209   : > { %2315 = vmatpush1.bf16.msra.mxu1 %v3993_v24 }
0x220a   : > { %2316 = vmatprep.subr.bf16.mxu1 %v3996_v27 }
0x220d   : > { %2317 = vmatpush1.bf16.msra.mxu1 %v4005_v51 }
0x22c0   : > { %v2132_v35 = vpop.f32.mrf.mxu1 }
0x22c1   : > { %v2133_v48 = vadd.f32 %v2132_v35, %v4057_v32 }
0x22c2   : > { %v2134_v14 = vpop.f32.mrf.mxu1 }
0x22c3   : > { %v2135_v59 = vadd.f32 %v2134_v14, %v4068_v34  ;;  %2154 = vrot.lane.b32.xlu1 %v2133_v48, %s4584_s29  ;;  %v2139_v24 = vadd.f32 %v2133_v48, %v1574_v21 }
0x22c4   : > { %v2136_v15 = vpop.f32.mrf.mxu1 }
0x22c5   : > { %2165 = vrot.lane.b32.xlu0 %v2135_v59, %s4584_s29  ;;  %v2146_v27 = vadd.f32 %v2135_v59, %v1562_v36  ;;  %v2996_v51 = vmul.f32 -1.442695, %v2139_v24 }
0x22c6   : > { %v2137_v39 = vpop.f32.mrf.mxu1 }
0x22c7   : > { %v2997_v49 = vmul.f32 -1.442695, %v2146_v27  ;;  %3248 = vpow2.f32 %v2996_v51 }
0x22c9   : > { %3250 = vpow2.f32 %v2997_v49 }
0x22d4   : > { %v3249_v52 = vpop.eup %3248 }
0x22d5   : > { %v2143_v26 = vadd.f32 1.0, %v3249_v52 }
0x22d6   : > { %v3251_v3 = vpop.eup %3250 }
0x22d7   : > { %v2150_v55 = vadd.f32 1.0, %v3251_v3  ;;  %3252 = vrcp.f32 %v2143_v26 }
0x22d9   : > { %3254 = vrcp.f32 %v2150_v55 }
0x22e4   : > { %v3253_v38 = vpop.eup %3252 }
0x22e5   : > { %v2175_v35 = vsub.f32 1.0, %v3253_v38  ;;  %v2181_v14 = vmul.f32 %v3253_v38, %v2080_v58 }
0x22e6   : > { %v3255_v1 = vpop.eup %3254 }
0x22e7   : > { %v2183_v24 = vsub.f32 1.0, %v3255_v1  ;;  %v2189_v27 = vmul.f32 %v3255_v1, %v4286_v25 }
0x2335   : > { %v2155_v56 = vpop.permute.xlu1 %2154 }
0x2336   : > { %v2157_v19 = vmul.f32 %v3253_v38, %v2155_v56 }
0x2337   : > { %v2166_v42 = vpop.permute.xlu0 %2165 }
0x2338   : > { %v2168_v33 = vmul.f32 %v3255_v1, %v2166_v42  ;;  %2159 = vrot.lane.b32.xlu1 %v2157_v19, %s4584_s29  ;;  %v1580_v19 = vadd.f32 %v4145_v6, %v4119_v18  ;;  %v1556_v1 = vadd.f32 %v4127_v23, %v4152_v45 }
0x233a   : > { %2170 = vrot.lane.b32.xlu0 %v2168_v33, %s4584_s29 }
0x23aa   : > { %v2160_v16 = vpop.permute.xlu1 %2159 }
0x23ab   : > { %v2162_v17 = vadd.f32 %v2160_v16, %v1574_v21 }
0x23ac   : > { %v2171_v31 = vpop.permute.xlu0 %2170 }
0x23ad   : > { %3256 = vtanh.f32 %v2162_v17  ;;  %v2173_v22 = vadd.f32 %v2171_v31, %v1562_v36 }
0x23af   : > { %3258 = vtanh.f32 %v2173_v22 }
0x23ba   : > { %v3257_v54 = vpop.eup %3256 }
0x23bb   : > { %2177 = vrot.lane.b32.xlu1 %v3257_v54, %s4583_s17 }
0x23bc   : > { %v3259_v30 = vpop.eup %3258 }
0x23bd   : > { %2185 = vrot.lane.b32.xlu0 %v3259_v30, %s4583_s17 }
0x242d   : > { %v2178_v48 = vpop.permute.xlu1 %2177 }
0x242e   : > { %v2180_v59 = vmul.f32 %v2178_v48, %v2175_v35 }
0x242f   : > { %v2186_v39 = vpop.permute.xlu0 %2185 }
0x2430   : > { %v2182_v15 = vadd.f32 %v2181_v14, %v2180_v59  ;;  %v2188_v21 = vmul.f32 %v2186_v39, %v2183_v24 }
0x2432   : > { %2192 = vrot.lane.b32.xlu1 %v2182_v15, %s4583_s17  ;;  %v4316_v36 = vadd.f32 %v2189_v27, %v2188_v21 }
0x24a4   : > { %v4318_v51 = vpop.permute.xlu1 %2192 }
0x24a5   : > { %v2195_v49 = vsel %vm690_vm1, %v4318_v51, %v4316_v36 }
0x24a6   : > { %v2196_v52 = vpack.c.bf16 %v2195_v49, %v2195_v49 }
0x24a8   : > { %2998 = vmatmul.mubr.msk.bf16.vlgmr.msra.gmra.mxu0 %vm589_vm2, %v2196_v52 }
0x2568   : > { %v2234_v58 = vpop.f32.mrf.mxu0 }
0x2569   : > { %v2235_v3 = vadd.f32 %v2234_v58, %v4057_v32 }
0x256a   : > { %v2236_v26 = vpop.f32.mrf.mxu0 }
0x256b   : > { %v2237_v55 = vadd.f32 %v2236_v26, %v4068_v34  ;;  %2256 = vrot.lane.b32.xlu0 %v2235_v3, %s4584_s29  ;;  %v2241_v42 = vadd.f32 %v2235_v3, %v1580_v19 }
0x256c   : > { %v2238_v38 = vpop.f32.mrf.mxu0 }
0x256d   : > { %2267 = vrot.lane.b32.xlu1 %v2237_v55, %s4584_s29  ;;  %v2248_v33 = vadd.f32 %v2237_v55, %v1556_v1  ;;  %v2999_v16 = vmul.f32 -1.442695, %v2241_v42 }
0x256e   : > { %v2239_v56 = vpop.f32.mrf.mxu0 }
0x256f   : > { %v3000_v17 = vmul.f32 -1.442695, %v2248_v33  ;;  %3260 = vpow2.f32 %v2999_v16 }
0x2571   : > { %3262 = vpow2.f32 %v3000_v17 }
0x257c   : > { %v3261_v31 = vpop.eup %3260 }
0x257d   : > { %v2245_v54 = vadd.f32 1.0, %v3261_v31 }
0x257e   : > { %v3263_v22 = vpop.eup %3262 }
0x257f   : > { %v2252_v30 = vadd.f32 1.0, %v3263_v22  ;;  %3264 = vrcp.f32 %v2245_v54 }
0x2581   : > { %3266 = vrcp.f32 %v2252_v30 }
0x258c   : > { %v3265_v35 = vpop.eup %3264 }
0x258d   : > { %v2277_v58 = vsub.f32 1.0, %v3265_v35  ;;  %v2283_v26 = vmul.f32 %v3265_v35, %v2182_v15 }
0x258e   : > { %v3267_v59 = vpop.eup %3266 }
0x25dd   : > { %v2257_v48 = vpop.permute.xlu0 %2256 }
0x25de   : > { %v2259_v14 = vmul.f32 %v3265_v35, %v2257_v48 }
0x25df   : > { %v2268_v6 = vpop.permute.xlu1 %2267 }
0x25e0   : > { %v2270_v39 = vmul.f32 %v3267_v59, %v2268_v6  ;;  %2261 = vrot.lane.b32.xlu0 %v2259_v14, %s4584_s29  ;;  %v1584_v14 = vadd.f32 %v4149_v37, %v4119_v18 }
0x25e2   : > { %2272 = vrot.lane.b32.xlu1 %v2270_v39, %s4584_s29 }
0x2652   : > { %v2262_v23 = vpop.permute.xlu0 %2261 }
0x2653   : > { %v2264_v24 = vadd.f32 %v2262_v23, %v1580_v19  ;;  %v2285_v19 = vsub.f32 1.0, %v3267_v59 }
0x2654   : > { %v2273_v21 = vpop.permute.xlu1 %2272 }
0x2655   : > { %3268 = vtanh.f32 %v2264_v24  ;;  %v2275_v27 = vadd.f32 %v2273_v21, %v1556_v1  ;;  %v2291_v1 = vmul.f32 %v3267_v59, %v4316_v36  ;;  %v1552_v59 = vadd.f32 %v4123_v57, %v4152_v45 }
0x2657   : > { %3270 = vtanh.f32 %v2275_v27 }
0x2662   : > { %v3269_v49 = vpop.eup %3268 }
0x2663   : > { %2279 = vrot.lane.b32.xlu0 %v3269_v49, %s4583_s17 }
0x2664   : > { %v3271_v52 = vpop.eup %3270 }
0x2665   : > { %2287 = vrot.lane.b32.xlu1 %v3271_v52, %s4583_s17 }
0x26d5   : > { %v2280_v3 = vpop.permute.xlu0 %2279 }
0x26d6   : > { %v2282_v55 = vmul.f32 %v2280_v3, %v2277_v58 }
0x26d7   : > { %v2288_v56 = vpop.permute.xlu1 %2287 }
0x26d8   : > { %v4336_v38 = vadd.f32 %v2283_v26, %v2282_v55  ;;  %v2290_v42 = vmul.f32 %v2288_v56, %v2285_v19 }
0x26da   : > { %2294 = vrot.lane.b32.xlu0 %v4336_v38, %s4583_s17  ;;  %v4341_v33 = vadd.f32 %v2291_v1, %v2290_v42  ;;  %v4364_v42 = vsel %vm690_vm1, %v4227_v40, %v4316_v36  ;;  %v4370_v1 = vsel %vm690_vm1, %v4258_v7, %v4286_v25 }
0x274c   : > { %v4343_v16 = vpop.permute.xlu0 %2294 }
0x274d   : > { %v2297_v17 = vsel %vm690_vm1, %v4343_v16, %v4341_v33 }
0x274e   : > { %v2298_v15 = vpack.c.bf16 %v2297_v17, %v2297_v17 }
0x2750   : > { %3001 = vmatmul.mubr.msk.bf16.vlgmr.msra.gmra.mxu1 %vm589_vm2, %v2298_v15  ;;  %v3004_v15 = vld [vmem:[%s4570_s5] ss:$0 sm:$0xff] }
0x2810   : > { %v2336_v31 = vpop.f32.mrf.mxu1 }
0x2811   : > { %v2337_v22 = vadd.f32 %v2336_v31, %v4057_v32 }
0x2812   : > { %v2338_v54 = vpop.f32.mrf.mxu1 }
0x2813   : > { %v2339_v30 = vadd.f32 %v2338_v54, %v4068_v34  ;;  %2358 = vrot.lane.b32.xlu1 %v2337_v22, %s4584_s29  ;;  %v2343_v6 = vadd.f32 %v2337_v22, %v1584_v14 }
0x2814   : > { %v2340_v35 = vpop.f32.mrf.mxu1 }
0x2815   : > { %2369 = vrot.lane.b32.xlu0 %v2339_v30, %s4584_s29  ;;  %v2350_v39 = vadd.f32 %v2339_v30, %v1552_v59  ;;  %v3002_v23 = vmul.f32 -1.442695, %v2343_v6 }
0x2816   : > { %v2341_v48 = vpop.f32.mrf.mxu1 }
0x2817   : > { %v3003_v24 = vmul.f32 -1.442695, %v2350_v39  ;;  %3272 = vpow2.f32 %v3002_v23  ;;  %v4383_v23 = vsel %vm690_vm1, %v4318_v51, %v4225_v13  ;;  %v4401_v51 = vsel %vm690_vm1, %v4288_v28, %v4256_v12 }
0x2819   : > { %3274 = vpow2.f32 %v3003_v24 }
0x2824   : > { %v3273_v32 = vpop.eup %3272 }
0x2825   : > { %v2347_v21 = vadd.f32 1.0, %v3273_v32  ;;  %v4395_v32 = vsel %vm690_vm1, %v4196_v5, %v4341_v33  ;;  %v4408_v5 = vsel %vm690_vm1, %v4343_v16, %v4194_v41 }
0x2826   : > { %v3275_v34 = vpop.eup %3274 }
0x2827   : > { %v2354_v27 = vadd.f32 1.0, %v3275_v34  ;;  %3276 = vrcp.f32 %v2347_v21 }
0x2829   : > { %3278 = vrcp.f32 %v2354_v27 }
0x2834   : > { %v3277_v49 = vpop.eup %3276 }
0x2835   : > { %v2379_v30 = vsub.f32 1.0, %v3277_v49  ;;  %v2385_v7 = vmul.f32 %v3277_v49, %v4336_v38 }
0x2836   : > { %v3279_v3 = vpop.eup %3278 }
0x2837   : > { %v2387_v48 = vsub.f32 1.0, %v3279_v3  ;;  %v2393_v6 = vmul.f32 %v3279_v3, %v4341_v33 }
0x2885   : > { %v2359_v52 = vpop.permute.xlu1 %2358 }
0x2886   : > { %v2361_v58 = vmul.f32 %v3277_v49, %v2359_v52 }
0x2887   : > { %v2370_v18 = vpop.permute.xlu0 %2369 }
0x2888   : > { %v2372_v37 = vmul.f32 %v3279_v3, %v2370_v18  ;;  %2363 = vrot.lane.b32.xlu1 %v2361_v58, %s4584_s29 }
0x288a   : > { %2374 = vrot.lane.b32.xlu0 %v2372_v37, %s4584_s29  ;;  %s3011_s29 = sshll.u32 %s4586_s25, 7  ;;  %s3310_s25 = scalar_lea.vmem %s3309_s28, 256 }
0x288b   : > { %s4522_s21 = scalar_lea.hbm %s4575_s10, %s3011_s29 }
0x28fa   : > { %v2364_v57 = vpop.permute.xlu1 %2363 }
0x28fb   : > { %v2366_v45 = vadd.f32 %v2364_v57, %v1584_v14 }
0x28fc   : > { %v2375_v26 = vpop.permute.xlu0 %2374 }
0x28fd   : > { %3280 = vtanh.f32 %v2366_v45  ;;  %v2377_v55 = vadd.f32 %v2375_v26, %v1552_v59 }
0x28ff   : > { %3282 = vtanh.f32 %v2377_v55 }
0x2900   : > { %3284 = vtanh.f32 %v4364_v42 }
0x2901   : > { %3286 = vtanh.f32 %v4370_v1 }
0x2902   : > { %3288 = vtanh.f32 %v4383_v23 }
0x290a   : > { %v3281_v56 = vpop.eup %3280 }
0x290b   : > { %2381 = vrot.lane.b32.xlu1 %v3281_v56, %s4583_s17 }
0x290c   : > { %v3283_v19 = vpop.eup %3282 }
0x290d   : > { %2389 = vrot.lane.b32.xlu0 %v3283_v19, %s4583_s17  ;;  %v3285_v17 = vpop.eup %3284  ;;  %v2463_v19 = vand.u32 127, %v462_v8 }
0x290e   : > { %v2424_v31 = vmul.f32 %v3285_v17, %v3004_v15  ;;  %v3287_v22 = vpop.eup %3286 }
0x290f   : > { %v2425_v40 = vmul.f32 %v3287_v22, %v3004_v15  ;;  %v3289_v34 = vpop.eup %3288  ;;  %v2466_v22 = vsub.s32 %v2463_v19, %v3645_v9  ;;  %v2705_v19 = vld [vmem:[%s4571_s6 + $0x40] sm:$0xff] }
0x2910   : > { %v2436_v54 = vsel %vm589_vm2, %v2424_v31, 0.0  ;;  %v2427_v27 = vmul.f32 %v3289_v34, %v3004_v15 }
0x2911   : > { %v2439_v36 = vsel %vm589_vm2, %v2425_v40, 0.0 }
0x2912   : > { %v2445_v33 = vsel %vm589_vm2, %v2427_v27, 0.0 }
0x292c   : > { %2437 = vadd.xlane.f32.xlu0 %v2436_v54 }
0x2930   : > { %2440 = vadd.xlane.f32.xlu0 %v2439_v36 }
0x297d   : > { %v2382_v35 = vpop.permute.xlu1 %2381 }
0x297e   : > { %v2384_v25 = vmul.f32 %v2382_v35, %v2379_v30 }
0x297f   : > { %v2390_v14 = vpop.permute.xlu0 %2389 }
0x2980   : > { %v2386_v59 = vadd.f32 %v2385_v7, %v2384_v25  ;;  %v2392_v39 = vmul.f32 %v2390_v14, %v2387_v48 }
0x2982   : > { %v2394_v24 = vadd.f32 %v2393_v6, %v2392_v39  ;;  %2396 = vrot.lane.b32.xlu1 %v2386_v59, %s4583_s17  ;;  %s3304_s17 = scalar_lea.vmem %s4524_s12, 128 }
0x2983   : > { %p3305_p13 = scmp.ne.s32.totalorder %s4524_s12, %s3304_s17  ;;  %p3312_p3 = scmp.lt.s32.totalorder %s3310_s25, %s3304_s17 }
0x2984   : > { %v4389_v38 = vsel %vm690_vm1, %v4165_v50, %v2394_v24 }
0x2985   : > { %3290 = vtanh.f32 %v4389_v38  ;;  %p3306_p0 = pnand %p3305_p13, %p3466_p6  ;;  %p3313_p4 = por %p3312_p3, %p3311_p2 }
0x2986   : > { %3292 = vtanh.f32 %v4395_v32 }
0x2987   : > { %3294 = vtanh.f32 %v4401_v51  ;;  %p3307_p1 = pneg %p3306_p0 }
0x2988   : > { %3296 = vtanh.f32 %v4408_v5 }
0x2989   : > { %p3314_p5 = pnand %p3313_p4, %p3307_p1 }
0x2992   : > { %v3291_v13 = vpop.eup %3290 }
0x2993   : > { %v2422_v21 = vmul.f32 %v3291_v13, %v3004_v15  ;;  %v3293_v49 = vpop.eup %3292 }
0x2994   : > { %v2423_v12 = vmul.f32 %v3293_v49, %v3004_v15  ;;  %v3295_v28 = vpop.eup %3294 }
0x2995   : > { %v2430_v50 = vsel %vm589_vm2, %v2422_v21, 0.0  ;;  %v2426_v58 = vmul.f32 %v3295_v28, %v3004_v15  ;;  %v3297_v3 = vpop.eup %3296 }
0x2996   : > { %2431 = vadd.xlane.f32.xlu0 %v2430_v50  ;;  %v2433_v52 = vsel %vm589_vm2, %v2423_v12, 0.0  ;;  %v2428_v37 = vmul.f32 %v3297_v3, %v3004_v15 }
0x2997   : > { %v2442_v18 = vsel %vm589_vm2, %v2426_v58, 0.0 }
0x2998   : > { %v2448_v41 = vsel %vm589_vm2, %v2428_v37, 0.0 }
0x299a   : > { %2446 = vadd.xlane.f32.xlu0 %v2445_v33 }
0x29a6   : > { %2434 = vadd.xlane.f32.xlu1 %v2433_v52 }
0x29aa   : > { %2443 = vadd.xlane.f32.xlu1 %v2442_v18 }
0x29ae   : > { %2449 = vadd.xlane.f32.xlu1 %v2448_v41 }
0x29b5   : > { %v2438_v56 = vpop.xlane.xlu0 %2437 }
0x29b6   : > { %v2475_v35 = vrot.slane %v2438_v56, %v2466_v22 }
0x29b9   : > { %v2441_v17 = vpop.xlane.xlu0 %2440 }
0x29f4   : > { %v2397_v16 = vpop.permute.xlu1 %2396 }
0x29f5   : > { %v4417_v57 = vsel %vm690_vm1, %v2397_v16, %v4163_v46 }
0x29f6   : > { %3298 = vtanh.f32 %v4417_v57 }
0x2a03   : > { %v3299_v45 = vpop.eup %3298 }
0x2a04   : > { %v2429_v26 = vmul.f32 %v3299_v45, %v3004_v15  ;;  %v2479_v15 = vrot.slane %v2441_v17, %v2466_v22  ;;  %v2706_v17 = vld [vmem:[%s4571_s6 + $0x48] sm:$0xff] }
0x2a06   : > { %v2451_v55 = vsel %vm589_vm2, %v2429_v26, 0.0  ;;  %v2631_v26 = vsub.s32 6, %v3645_v9 }
0x2a07   : > { %2452 = vadd.xlane.f32.xlu0 %v2451_v55 }
0x2a1f   : > { %v2432_v54 = vpop.xlane.xlu0 %2431 }
0x2a20   : > { %v2467_v36 = vrot.slane %v2432_v54, %v2466_v22  ;;  %v2704_v54 = vld [vmem:[%s4571_s6 + $0x38] sm:$0xff] }
0x2a23   : > { %v2447_v8 = vpop.xlane.xlu0 %2446 }
0x2a24   : > { %v2487_v39 = vrot.slane %v2447_v8, %v2466_v22 }
0x2a2f   : > { %v2435_v31 = vpop.xlane.xlu1 %2434 }
0x2a30   : > { %v2471_v40 = vrot.slane %v2435_v31, %v2466_v22  ;;  %v3370_v31 = vmov 0.0  }
0x2a31   : > { %3023 = vmatprep.subr.bf16.mxu0 %v3370_v31  ;;  %3035 = vmatprep.subr.bf16.mxu1 %v3370_v31 }
0x2a32   : > { %v2497_v46 = vsel %vm2496_vm3, %v2471_v40, %v2467_v36  ;;  %v2697_v36 = vld [vmem:[%s4571_s6] sm:$0xff]  ;;  %3037 = vmatprep.mubr.msk.bf16.mxu1 %vm3371_vm11, %v3370_v31  ;;  %3031 = vmatprep.mubr.msk.bf16.mxu0 %vm3371_vm11, %v3370_v31 }
0x2a33   : > { %v2444_v30 = vpop.xlane.xlu1 %2443  ;;  %v2499_v7 = vsel %vm2498_vm4, %v2475_v35, %v2497_v46  ;;  %v2671_v46 = vmax.f32 %v2664_v61, %v2666_v2 }
0x2a34   : > { %v2483_v25 = vrot.slane %v2444_v30, %v2466_v22  ;;  %v2501_v48 = vsel %vm2500_vm5, %v2479_v15, %v2499_v7  ;;  %v4585_v30 = vmax.f32 %v3578_v47, %v3605_v63  ;;  %v2624_v15 = vsub.s32 5, %v3645_v9  ;;  %v2699_v63 = vld [vmem:[%s4571_s6 + $0x10] sm:$0xff] }
0x2a35   : > { %v2711_v47 = vpack.c.bf16 %v2702_v43, %v2701_v44  ;;  %v2710_v2 = vpack.c.bf16 %v2700_v0, %v2699_v63 }
0x2a36   : > { %v2503_v59 = vsel %vm2502_vm6, %v2483_v25, %v2501_v48  ;;  %v2672_v35 = vmax.f32 %v4585_v30, %v2670_v4 }
0x2a37   : > { %v2450_v14 = vpop.xlane.xlu1 %2449  ;;  %v2505_v13 = vsel %vm2504_vm7, %v2487_v39, %v2503_v59 }
0x2a38   : > { %v2491_v6 = vrot.slane %v2450_v14, %v2466_v22  ;;  %v2673_v53 = vmax.f32 %v2671_v46, %v2672_v35  ;;  %v3007_v35 = vld [vmem:[%s4572_s7] ss:$0 sm:$0xff] }
0x2a3a   : > { %v2507_v21 = vsel %vm2506_vm8, %v2491_v6, %v2505_v13  ;;  %v2707_v60 = vpack.c.bf16 %v2673_v53, %v2673_v53 }
0x2a90   : > { %v2453_v24 = vpop.xlane.xlu0 %2452 }
0x2a91   : > { %v2495_v34 = vrot.slane %v2453_v24, %v2466_v22  ;;  %v2703_v22 = vld [vmem:[%s4571_s6 + $0x30] sm:$0xff] }
0x2a92   : > { %v2712_v40 = vpack.c.bf16 %v2704_v54, %v2703_v22 }
0x2a93   : > { %v2509_v50 = vsel %vm2508_vm9, %v2495_v34, %v2507_v21 }
0x2a94   : > { %2511 = vxpose.xlu1.b32.start.end [1/1] (short) (narrow) %v2509_v50, 8 }
0x2b10   : > { %v2527_v27 = vpop.trf.xlu1 }
0x2b11   : > { %v2544_v33 = vsel %vm2543_vm10, %v2527_v27, -inf }
0x2b12   : > { %2545 = vmax.xlane.f32.xlu0 %v2544_v33 }
0x2b9b   : > { %v2546_v49 = vpop.xlane.xlu0 %2545 }
0x2b9c   : > { %v2547_v12 = vsub.f32 %v2527_v27, %v2546_v49 }
0x2b9e   : > { %v2548_v28 = vmul.f32 1.442695, %v2547_v12 }
0x2ba0   : > { %3300 = vpow2.f32 %v2548_v28 }
0x2bad   : > { %v3301_v52 = vpop.eup %3300 }
0x2bae   : > { %v2550_v58 = vsel %vm2543_vm10, %v3301_v52, 0.0 }
0x2baf   : > { %2551 = vadd.xlane.f32.xlu0 %v2550_v58 }
0x2c38   : > { %v2552_v3 = vpop.xlane.xlu0 %2551 }
0x2c39   : > { %3302 = vrcp.f32 %v2552_v3 }
0x2c46   : > { %v3303_v18 = vpop.eup %3302 }
0x2c47   : > { %v2554_v37 = vmul.f32 %v3303_v18, %v3301_v52 }
0x2c49   : > { %2555 = vxpose.xlu0.b32.start.end [1/1] (short) (narrow) %v2554_v37, 8 }
0x2cc5   : > { %v2571_v41 = vpop.trf.xlu0 }
0x2cc6   : > { %v2597_v16 = vrot.slane %v2571_v41, %v3660_v20  ;;  %v2590_v45 = vrot.slane %v2571_v41, %v3651_v11  ;;  %v2632_v55 = vrot.slane %v2571_v41, %v2631_v26  ;;  %v2604_v56 = vrot.slane %v2571_v41, %v3648_v10 }
0x2cc7   : > { %v2713_v20 = vpack.c.bf16 %v2706_v17, %v2705_v19  ;;  %v2611_v11 = vrot.slane %v2571_v41, %v3669_v29  ;;  %v2617_v10 = vsub.s32 4, %v3645_v9  ;;  %v2698_v29 = vld [vmem:[%s4571_s6 + $0x8] sm:$0xff]  ;;  %v2625_v61 = vrot.slane %v2571_v41, %v2624_v15 }
0x2cc8   : > { %2599 = vbcast.lane.b32.xlu0 %v2597_v16, 256  ;;  %2592 = vbcast.lane.b32.xlu1 %v2590_v45, 256  ;;  %v2708_v25 = vpack.c.bf16 %v2698_v29, %v2697_v36  ;;  %v2639_v4 = vrot.slane %v2571_v41, %v2638_v62 }
0x2cc9   : > { %3024 = vmatpush3.bf16.msra.mxu0 %v2713_v20  ;;  %v2618_v7 = vrot.slane %v2571_v41, %v2617_v10  ;;  %v2809_v20 = vld [vmem:[%s4573_s8] sm:$0xff] }
0x2cca   : > { %3025 = vmatprep.subr.bf16.mxu0 %v3370_v31  ;;  %3036 = vmatpush3.bf16.msra.mxu1 %v2708_v25 }
0x2ccc   : > { %2634 = vbcast.lane.b32.xlu0 %v2632_v55, 256  ;;  %2606 = vbcast.lane.b32.xlu1 %v2604_v56, 256 }
0x2ccd   : > { %3026 = vmatpush3.bf16.msra.mxu0 %v2712_v40  ;;  %3038 = vmatmul.mubr.msk.bf16.vlgmr.msra.gmra.mxu1 %vm502_vm0, %v2707_v60 }
0x2cce   : > { %3027 = vmatprep.subr.bf16.mxu0 %v3370_v31 }
0x2cd0   : > { %2613 = vbcast.lane.b32.xlu1 %v2611_v11, 256  ;;  %v2810_v11 = vld [vmem:[%s4573_s8 + $0x8] sm:$0xff] }
0x2cd1   : > { %3028 = vmatpush3.bf16.msra.mxu0 %v2711_v47  ;;  %v2811_v22 = vpack.c.bf16 %v2810_v11, %v2809_v20 }
0x2cd2   : > { %3029 = vmatprep.subr.bf16.mxu0 %v3370_v31 }
0x2cd4   : > { %2620 = vbcast.lane.b32.xlu1 %v2618_v7, 256 }
0x2cd5   : > { %3030 = vmatpush3.bf16.msra.mxu0 %v2710_v2 }
0x2cd6   : > { %3041 = vmatprep.subr.bf16.mxu0 %v3370_v31 }
0x2cd8   : > { %2627 = vbcast.lane.b32.xlu1 %v2625_v61, 256 }
0x2cdc   : > { %2641 = vbcast.lane.b32.xlu1 %v2639_v4, 256 }
0x2d3a   : > { %v2593_v9 = vpop.permute.xlu1 %2592  ;;  %v2600_v14 = vpop.permute.xlu0 %2599 }
0x2d3b   : > { %v2644_v39 = vmul.f32 %v2600_v14, %v4395_v32  ;;  %v2643_v50 = vmul.f32 %v2593_v9, %v4389_v38 }
0x2d3d   : > { %v2675_v49 = vmax.f32 %v2644_v39, 0.0  ;;  %v2674_v32 = vmax.f32 %v2643_v50, 0.0 }
0x2d3e   : > { %v2607_v48 = vpop.permute.xlu1 %2606  ;;  %v2635_v59 = vpop.permute.xlu0 %2634 }
0x2d3f   : > { %v2649_v24 = vmul.f32 %v2635_v59, %v4408_v5  ;;  %v2645_v34 = vmul.f32 %v2607_v48, %v4364_v42  ;;  %v2682_v16 = vsel %vm589_vm2, %v2674_v32, -inf }
0x2d41   : > { %v2680_v12 = vmax.f32 %v2649_v24, 0.0  ;;  %v2676_v28 = vmax.f32 %v2645_v34, 0.0 }
0x2d42   : > { %v2614_v8 = vpop.permute.xlu1 %2613 }
0x2d43   : > { %v2646_v27 = vmul.f32 %v2614_v8, %v4370_v1  ;;  %v2690_v38 = vsel %vm589_vm2, %v2680_v12, -inf  ;;  %v2684_v1 = vsel %vm589_vm2, %v2676_v28, -inf }
0x2d44   : > { %v2691_v55 = vmax.f32 %v2684_v1, %v2690_v38 }
0x2d45   : > { %v2677_v18 = vmax.f32 %v2646_v27, 0.0 }
0x2d46   : > { %v2621_v6 = vpop.permute.xlu1 %2620 }
0x2d47   : > { %v2647_v13 = vmul.f32 %v2621_v6, %v4401_v51  ;;  %v2683_v51 = vsel %vm589_vm2, %v2675_v49, -inf  ;;  %v2685_v45 = vsel %vm589_vm2, %v2677_v18, -inf }
0x2d49   : > { %v2678_v52 = vmax.f32 %v2647_v13, 0.0 }
0x2d4a   : > { %v2628_v21 = vpop.permute.xlu1 %2627 }
0x2d4b   : > { %v2648_v33 = vmul.f32 %v2628_v21, %v4383_v23  ;;  %v2686_v23 = vsel %vm589_vm2, %v2678_v52, -inf }
0x2d4c   : > { %v2687_v56 = vmax.f32 %v2682_v16, %v2686_v23 }
0x2d4d   : > { %v2679_v58 = vmax.f32 %v2648_v33, 0.0 }
0x2d4e   : > { %v2642_v3 = vpop.permute.xlu1 %2641 }
0x2d4f   : > { %v2688_v5 = vsel %vm589_vm2, %v2679_v58, -inf  ;;  %v2650_v42 = vmul.f32 %v2642_v3, %v4417_v57 }
0x2d50   : > { %v2689_v41 = vmax.f32 %v2683_v51, %v2688_v5 }
0x2d51   : > { %v2681_v37 = vmax.f32 %v2650_v42, 0.0 }
0x2d52   : > { %v2694_v57 = vmax.f32 %v2687_v56, %v2689_v41 }
0x2d53   : > { %v2692_v26 = vsel %vm589_vm2, %v2681_v37, -inf }
0x2d54   : > { %v2693_v19 = vmax.f32 %v2685_v45, %v2692_v26 }
0x2d56   : > { %v2695_v17 = vmax.f32 %v2691_v55, %v2693_v19 }
0x2d58   : > { %v2696_v10 = vmax.f32 %v2694_v57, %v2695_v17 }
0x2d5a   : > { %v2709_v54 = vpack.c.bf16 %v2696_v10, %v2696_v10 }
0x2d5c   : > { %3032 = vmatmul.mubr.msk.bf16.vlgmr.msra.gmra.mxu0 %vm589_vm2, %v2709_v54 }
0x2d5d   : > { %3042 = vmatpush3.bf16.msra.mxu0 %v2811_v22  ;;  %3043 = vmatprep.mubr.msk.bf16.mxu0 %vm3371_vm11, %v3370_v31  ;;  %v3008_v31 = vld [vmem:[%s4574_s9] ss:$0 sm:$0xff] }
0x2d8d   : > { %v2794_v40 = vpop.f32.mrf.mxu1 }
0x2d8f   : > { %v3039_v36 = vpop.f32.mrf.mxu1 }
0x2d91   : > { %v2797_v29 = vpop.f32.mrf.mxu1 }
0x2d93   : > { %v3040_v46 = vpop.f32.mrf.mxu1 }
0x2e1c   : > { %v2751_v30 = vpop.f32.mrf.mxu0 }
0x2e1d   : > { %v2795_v7 = vadd.f32 %v2794_v40, %v2751_v30 }
0x2e1e   : > { %v3033_v15 = vpop.f32.mrf.mxu0 }
0x2e1f   : > { %v2807_v25 = vadd.f32 %v3007_v35, %v2795_v7 }
0x2e20   : > { %v2754_v44 = vpop.f32.mrf.mxu0 }
0x2e21   : > { %v2808_v43 = vpack.c.bf16 %v2807_v25, %v2807_v25 }
0x2e22   : > { %v3034_v53 = vpop.f32.mrf.mxu0 }
0x2e23   : > { %3044 = vmatmul.mubr.msk.bf16.vlgmr.msra.gmra.mxu0 %vm502_vm0, %v2808_v43 }
0x2ee3   : > { %v2856_v47 = vpop.f32.mrf.mxu0 }
0x2ee4   : > { %v2857_v60 = vadd.f32 %v3008_v31, %v2856_v47 }
0x2ee5   : > { %v3045_v61 = vpop.f32.mrf.mxu0 }
0x2ee6   : > { %2862 = vst [vmem:[%s420_s30] sm:$0xff] %v2857_v60 }
0x2ee7   : > { %v2859_v62 = vpop.f32.mrf.mxu0 }
0x2ee8   : > { %3317 = shalt.err (!%p3314_p5)
}
0x2ee9   : > { %s3318_s29 = scalar_lea.hbm %s4522_s21, 128  ;;  %s3322_s18 = scalar_lea.hbm %s4575_s10, 256 }
0x2eea   : > { %p3319_p7 = scmp.ne.s32.totalorder %s4522_s21, %s3318_s29  ;;  %p3323_p12 = scmp.lt.s32.totalorder %s4522_s21, %s4575_s10 }
0x2eeb   : > { %p3324_p13 = scmp.lt.s32.totalorder %s3322_s18, %s3318_s29 }
0x2eec   : > { %p3320_p10 = pnand %p3319_p7, %p3466_p6 }
0x2eed   : > { %p3325_p0 = por %p3324_p13, %p3323_p12 }
0x2eee   : > { %p3321_p11 = pneg %p3320_p10 }
0x2ef0   : > { %p3326_p1 = pnand %p3325_p0, %p3321_p11 }
0x2ef2   : > { %3329 = shalt.err (!%p3326_p1)
}
0x2ef3   : > { %3047 = dma.vmem_to_hbm [thread:$0]  (%p3466_p6), %s4524_s12, 128, %s4522_s21, %s2864_s20   ;;  %v3046_v63 = vpop.f32.mrf.mxu0 }
0x2ef4 PF: > { %s2889_s17 = sand.u32 1, %s3352_s13   ;;  %p3050_p2 = pnand %p2944_p9, %p3470_p8 }
0x2ef5   : > { %s2890_s28 = scalar_lea.sflag [#allocation4], %s2889_s17 }
0x2ef6   : > { %p3051_p3 = pneg %p3050_p2 }
0x2ef8   : > { %3347 = dma.done.wait (%p3051_p3), %s2890_s28, 128  }
0x2ef9   : > { %3349 = vsyncadd (%p3051_p3), %s2890_s28, 4294967168  ;;  %p20_p4 = scmp.ge.s32.totalorder %s3451_s19, 4   ;;  %s4587_s13 = smov %s3356_s14 }
0x2efa   : > { %s4588_s14 = smov %s3360_s15  ;;  %s4589_s15 = smov %s3464_s22 }
0x2efb   : > { %s4590_s16 = smov %s3451_s19  ;;  %22 = sbr.rel (!%p20_p4) target bundleno = 3 (0x3), region = 138 }
0x2f00   :  { %2895 = vsyncpa [#allocation4], 1 }
0x2f01   :  { %2897 = vsyncpa [#allocation4 + $0x1], 1 }

</bundles_post_ra>
